<compile_context>
chip_gen: v7x
topology: tpu7x:2x2x1
jax: 0.10.0
libtpu: 0.0.40
codegen_flags: <defaults>
</compile_context>

<pallas_src>
import jax
import jax.numpy as jnp
from jax import lax
from jax.experimental import pallas as pl
from jax.experimental.pallas import tpu as pltpu


# ---------------------------------------------------------------------------
# in-kernel helpers (channels-first: rows = channels, lanes = flattened space)
# ---------------------------------------------------------------------------
def _elu(x):
    # ELU(alpha=1); exp runs on the EUP slot.
    return jnp.where(x > 0, x, jnp.exp(x) - 1.0)


def _instance_norm_cf(y, eps=1e-5):
    # y: (C, N); per-channel (row) normalization over the spatial (lane) axis.
    n = y.shape[1]
    mean = jnp.sum(y, axis=1, keepdims=True) * (1.0 / n)
    ex2 = jnp.sum(y * y, axis=1, keepdims=True) * (1.0 / n)
    var = jnp.maximum(ex2 - mean * mean, 0.0)
    return (y - mean) * lax.rsqrt(var + eps)


def _layer_norm_cf(y, g, b, eps=1e-5):
    # y: (C, N); per-node (column) normalization over channels; g, b: (C, 1).
    c = y.shape[0]
    mean = jnp.sum(y, axis=0, keepdims=True) * (1.0 / c)
    ex2 = jnp.sum(y * y, axis=0, keepdims=True) * (1.0 / c)
    var = jnp.maximum(ex2 - mean * mean, 0.0)
    return (y - mean) * lax.rsqrt(var + eps) * g + b


def _shift_replicate(z, delta, pos, pos_max):
    """One-step spatial shift of a flattened (C, N) map with edge replication.

    delta: flat-index offset of the neighbour (+-1 along W, +-W along H);
    pos: (1, N) int32 position along that axis; pos_max: that axis' length.
    out(:, i) = z(:, i + delta) for interior positions, z(:, i) at the edge.
    """
    n = z.shape[1]
    rolled = pltpu.roll(z, (-delta) % n, axis=1)     # rolled[i] = z[i + delta]
    if delta > 0:
        keep = pos == (pos_max - 1)
    else:
        keep = pos == 0
    return jnp.where(keep, z, rolled)


def _conv3x3_cf(xf, w, b, row, col, H, W):
    """3x3 conv, replicate padding, channels-first.

    xf: (Cin, H*W); w: (Cout, 9*Cin) with column index (3*ky + kx)*Cin + ci;
    b: (Cout, 1).  Taps are built with lane rolls + edge masks and stacked
    along sublanes, giving a single MXU dot with N = H*W spatial columns.
    """
    shifted_w = {
        -1: _shift_replicate(xf, -1, col, W),
        0: xf,
        1: _shift_replicate(xf, 1, col, W),
    }
    taps = []
    for dy in (-1, 0, 1):
        for dx in (-1, 0, 1):
            base = shifted_w[dx]
            taps.append(base if dy == 0 else _shift_replicate(base, dy * W, row, H))
    patches = jnp.concatenate(taps, axis=0)                        # (9*Cin, H*W)
    return jnp.dot(w, patches, preferred_element_type=jnp.float32) + b


def _gcn_aggregate_cf(t, dinv, row, col, Hh, Wh):
    """GCNConv aggregation on the 8-connected grid graph with self loops.

    out(:, i) = dinv[i] * sum_{j in N(i) u {i}} dinv[j] * t(:, j), realised as a
    9-tap roll-and-mask stencil on the flattened (C, Nh) map (no dense N x N
    adjacency).  t: (C, Nh); dinv/row/col: (1, Nh).
    """
    n = t.shape[1]
    z = t * dinv
    agg = z                                                        # self-loop tap
    for dy in (-1, 0, 1):
        for dx in (-1, 0, 1):
            if dy == 0 and dx == 0:
                continue
            delta = dy * Wh + dx
            rolled = pltpu.roll(z, (-delta) % n, axis=1)
            valid = ((row + dy >= 0) & (row + dy < Hh)
                     & (col + dx >= 0) & (col + dx < Wh))
            agg = agg + jnp.where(valid, rolled, 0.0)
    return agg * dinv


# ---------------------------------------------------------------------------
# fused encoder kernel (one grid step per batch element)
# ---------------------------------------------------------------------------
def _make_kernel(Cin, C, Cr, Chid, H, W, offs):
    N = H * W
    Hh, Wh = H // 2, W // 2
    Nh = Hh * Wh

    def kernel(x_ref, w_ref, v_ref, o_ref):
        # ---- spatial index vectors (lane-resident, built from 3-D iota) ----
        row = lax.broadcasted_iota(jnp.int32, (1, H, W), 1).reshape(1, N)
        col = lax.broadcasted_iota(jnp.int32, (1, H, W), 2).reshape(1, N)
        rowh = lax.broadcasted_iota(jnp.int32, (1, Hh, Wh), 1).reshape(1, Nh)
        colh = lax.broadcasted_iota(jnp.int32, (1, Hh, Wh), 2).reshape(1, Nh)

        # ---- packed parameters (static slices of the two slabs) ----
        c1w = w_ref[offs["c1w"]:offs["c1w"] + C, 0:9 * Cin]
        c2w = w_ref[offs["c2w"]:offs["c2w"] + C, 0:9 * C]
        g1w = w_ref[offs["g1w"]:offs["g1w"] + Chid, 0:C]
        g2w = w_ref[offs["g2w"]:offs["g2w"] + C, 0:Chid]
        f1w = w_ref[offs["f1w"]:offs["f1w"] + C, 0:C]
        f2w = w_ref[offs["f2w"]:offs["f2w"] + C, 0:C]
        a1w = w_ref[offs["a1w"]:offs["a1w"] + Cr, 0:C]
        a2w = w_ref[offs["a2w"]:offs["a2w"] + C, 0:Cr]

        c1b = v_ref[0:C, 0:1]
        c2b = v_ref[0:C, 1:2]
        a1b = v_ref[0:Cr, 2:3]
        a2b = v_ref[0:C, 3:4]
        g1b = v_ref[0:Chid, 4:5]
        ln1g = v_ref[0:Chid, 5:6]
        ln1b = v_ref[0:Chid, 6:7]
        g2b = v_ref[0:C, 7:8]
        ln2g = v_ref[0:C, 8:9]
        ln2b = v_ref[0:C, 9:10]
        fb = v_ref[0:C, 10:11]

        x = x_ref[0]                                               # (Cin, H*W)

        # ---- ConvBlock: conv3x3+IN+ELU, conv3x3+IN+ChannelAttention+ELU ----
        y1 = _elu(_instance_norm_cf(_conv3x3_cf(x, c1w, c1b, row, col, H, W)))
        y2 = _instance_norm_cf(_conv3x3_cf(y1, c2w, c2b, row, col, H, W))
        # TODO(synk): ChannelAttention definition was not provided in the
        #             reference; SE-style (avg pool -> FC -> ReLU -> FC -> sigmoid).
        s_row = (jnp.sum(y2, axis=1, keepdims=True) * (1.0 / N)).reshape(1, C)
        hvec = jnp.maximum(jnp.sum(a1w * s_row, axis=1, keepdims=True) + a1b, 0.0)
        att = jax.nn.sigmoid(
            jnp.sum(a2w * hvec.reshape(1, Cr), axis=1, keepdims=True) + a2b)
        y2 = _elu(y2 * att)                                        # (C, H*W)

        # ---- MaxPool2d(2) ----
        a = y2.reshape(C, H * Wh, 2)
        pw = jnp.maximum(a[:, :, 0], a[:, :, 1])                   # pool along W
        b4 = pw.reshape(C, Hh, 2, Wh)
        xg = jnp.maximum(b4[:, :, 0, :], b4[:, :, 1, :]).reshape(C, Nh)

        # ---- GCNBlock: GCNConv -> LayerNorm -> ELU (x2) ----
        # per-node D^-1/2 of the 8-connected grid graph with self loops,
        # derived in-kernel (count of in-range taps in the 3x3 window).
        cnt_h = jnp.minimum(rowh + 1, Hh - 1) - jnp.maximum(rowh - 1, 0) + 1
        cnt_w = jnp.minimum(colh + 1, Wh - 1) - jnp.maximum(colh - 1, 0) + 1
        dinv = lax.rsqrt((cnt_h * cnt_w).astype(jnp.float32))      # (1, Nh)

        t1 = jnp.dot(g1w, xg, preferred_element_type=jnp.float32)  # (Chid, Nh)
        h1 = _gcn_aggregate_cf(t1, dinv, rowh, colh, Hh, Wh) + g1b
        h1 = _elu(_layer_norm_cf(h1, ln1g, ln1b))
        t2 = jnp.dot(g2w, h1, preferred_element_type=jnp.float32)  # (C, Nh)
        h2 = _gcn_aggregate_cf(t2, dinv, rowh, colh, Hh, Wh) + g2b
        x2 = _elu(_layer_norm_cf(h2, ln2g, ln2b))

        # ---- FusionModule: 1x1 conv on concat([pooled, gcn]) + IN + ELU ----
        y = (jnp.dot(f1w, xg, preferred_element_type=jnp.float32)
             + jnp.dot(f2w, x2, preferred_element_type=jnp.float32) + fb)
        o_ref[0] = _elu(_instance_norm_cf(y))                      # (C, Nh)

    return kernel


# ---------------------------------------------------------------------------
# parameter packing (2 slabs -> 3 kernel inputs total) + pallas_call wrapper
# ---------------------------------------------------------------------------
def _pack_weight_slab(wmats):
    """Row-stack matmul weights (each padded to 8-row / common 128-wide blocks)."""
    width = max(int(m.shape[1]) for m in wmats.values())
    width = ((width + 127) // 128) * 128
    offs, pieces, r = {}, [], 0
    for name, m in wmats.items():
        h, k = int(m.shape[0]), int(m.shape[1])
        hp = ((h + 7) // 8) * 8
        offs[name] = r
        pieces.append(jnp.pad(m.astype(jnp.float32), ((0, hp - h), (0, width - k))))
        r += hp
    return jnp.concatenate(pieces, axis=0), offs


def _pack_vector_slab(vecs):
    """Pack 1-D bias / gamma / beta vectors as columns of one small f32 slab."""
    rows = ((max(int(v.shape[0]) for v in vecs) + 7) // 8) * 8
    cols = ((len(vecs) + 127) // 128) * 128
    slab = jnp.concatenate(
        [jnp.pad(v.astype(jnp.float32).reshape(-1, 1),
                 ((0, rows - int(v.shape[0])), (0, 0))) for v in vecs], axis=1)
    return jnp.pad(slab, ((0, 0), (0, cols - len(vecs))))


def ginka_encoder_forward(p, x_nchw):
    B, Cin, H, W = x_nchw.shape
    C = int(p["conv1_b"].shape[0])
    Cr = int(p["ca_fc1_w"].shape[0])
    Chid = int(p["gcn_w1"].shape[0])
    Hh, Wh = H // 2, W // 2
    N, Nh = H * W, Hh * Wh

    # NCHW kept end-to-end; flattening trailing spatial dims is a free reshape.
    xf = x_nchw.reshape(B, Cin, N).astype(jnp.float32)

    wslab, offs = _pack_weight_slab({
        "c1w": p["conv1_w"], "c2w": p["conv2_w"],
        "g1w": p["gcn_w1"], "g2w": p["gcn_w2"],
        "f1w": p["fus_w1"], "f2w": p["fus_w2"],
        "a1w": p["ca_fc1_w"], "a2w": p["ca_fc2_w"],
    })
    vslab = _pack_vector_slab([
        p["conv1_b"], p["conv2_b"], p["ca_fc1_b"], p["ca_fc2_b"],
        p["gcn_b1"], p["ln1_g"], p["ln1_b"],
        p["gcn_b2"], p["ln2_g"], p["ln2_b"], p["fus_b"],
    ])

    kernel = _make_kernel(Cin, C, Cr, Chid, H, W, offs)

    out = pl.pallas_call(
        kernel,
        out_shape=jax.ShapeDtypeStruct((B, C, Nh), jnp.float32),
        grid=(B,),
        in_specs=[
            pl.BlockSpec((1, Cin, N), lambda i: (i, 0, 0)),
            pl.BlockSpec(wslab.shape, lambda i: (0, 0)),
            pl.BlockSpec(vslab.shape, lambda i: (0, 0)),
        ],
        out_specs=pl.BlockSpec((1, C, Nh), lambda i: (i, 0, 0)),
        compiler_params=pltpu.CompilerParams(
            dimension_semantics=("parallel",),
            # whole-sample-resident working set is well under 1 MiB here; keep a
            # 32 MiB cap so scaled-up H/W/C still stay under v7x's 64 MiB VMEM.
            vmem_limit_bytes=32 * 1024 * 1024,
        ),
    )(xf, wslab, vslab)

    return out.reshape(B, C, Hh, Wh)


# ---------------------------------------------------------------------------
# deterministic synthetic parameters (PyTorch layouts, converted once)
# ---------------------------------------------------------------------------
def init_params(key, in_ch, out_ch):
    cr = max(1, out_ch // 4)          # channel-attention reduction
    hid = out_ch * 2                  # GCN hidden width
    ks = jax.random.split(key, 10)
    # PyTorch conv weights (Cout, Cin, 3, 3) -> channels-first im2col (Cout, 9*Cin)
    # with column index (3*ky + kx)*Cin + ci (matches the in-kernel tap order).
    w1 = 0.2 * jax.random.normal(ks[0], (out_ch, in_ch, 3, 3), jnp.float32)
    w2 = 0.2 * jax.random.normal(ks[1], (out_ch, out_ch, 3, 3), jnp.float32)
    return {
        "conv1_w": jnp.transpose(w1, (0, 2, 3, 1)).reshape(out_ch, 9 * in_ch),
        "conv1_b": 0.1 * jax.random.normal(ks[2], (out_ch,), jnp.float32),
        "conv2_w": jnp.transpose(w2, (0, 2, 3, 1)).reshape(out_ch, 9 * out_ch),
        "conv2_b": 0.1 * jax.random.normal(ks[3], (out_ch,), jnp.float32),
        # channel attention (SE-style guess; see TODO in the kernel)
        "ca_fc1_w": 0.3 * jax.random.normal(ks[4], (cr, out_ch), jnp.float32),
        "ca_fc1_b": jnp.zeros((cr,), jnp.float32),
        "ca_fc2_w": 0.3 * jax.random.normal(ks[5], (out_ch, cr), jnp.float32),
        "ca_fc2_b": jnp.zeros((out_ch,), jnp.float32),
        # GCN block (GCNConv weights stored (out, in) as in PyG)
        "gcn_w1": 0.3 * jax.random.normal(ks[6], (hid, out_ch), jnp.float32),
        "gcn_b1": jnp.zeros((hid,), jnp.float32),
        "ln1_g": jnp.ones((hid,), jnp.float32),
        "ln1_b": jnp.zeros((hid,), jnp.float32),
        "gcn_w2": 0.3 * jax.random.normal(ks[7], (out_ch, hid), jnp.float32),
        "gcn_b2": jnp.zeros((out_ch,), jnp.float32),
        "ln2_g": jnp.ones((out_ch,), jnp.float32),
        "ln2_b": jnp.zeros((out_ch,), jnp.float32),
        # 1x1 fusion conv on concat([pooled, gcn]) split into its two halves
        "fus_w1": 0.3 * jax.random.normal(ks[8], (out_ch, out_ch), jnp.float32),
        "fus_w2": 0.3 * jax.random.normal(ks[9], (out_ch, out_ch), jnp.float32),
        "fus_b": jnp.zeros((out_ch,), jnp.float32),
    }


if __name__ == "__main__":
    B, in_ch, out_ch, H, W = 2, 4, 8, 16, 16
    key = jax.random.PRNGKey(0)
    kx, kp = jax.random.split(key)
    x = jax.random.normal(kx, (B, in_ch, H, W), jnp.float32)   # NCHW, like PyTorch
    params = init_params(kp, in_ch, out_ch)

    out = jax.jit(ginka_encoder_forward)(params, x)
    out = jax.block_until_ready(out)

    assert out.shape == (B, out_ch, H // 2, W // 2), out.shape
    assert bool(jnp.all(jnp.isfinite(out)))
    print("KERNEL_OK")
</pallas_src>

<mosaic_0001>
module attributes {stable_mosaic.version = 11 : i64} {
  func.func @kernel(%arg0: i32, %arg1: memref<1x4x256xf32, #tpu.memory_space<vmem>>, %arg2: memref<72x128xf32, #tpu.memory_space<vmem>>, %arg3: memref<16x128xf32, #tpu.memory_space<vmem>>, %arg4: memref<1x8x64xf32, #tpu.memory_space<vmem>>) attributes {dimension_semantics = [#tpu.dimension_semantics<parallel>], iteration_bounds = array<i64: 2>, scalar_prefetch = 0 : i64, scratch_operands = 0 : i64, tpu.core_type = #tpu.core_type<tc>, window_params = [{transform_indices = @transform_0, window_bounds = array<i64: 1, 4, 256>}, {pipeline_mode = #tpu.pipeline_mode<synchronous>, transform_indices = @transform_1, window_bounds = array<i64: 72, 128>}, {pipeline_mode = #tpu.pipeline_mode<synchronous>, transform_indices = @transform_2, window_bounds = array<i64: 16, 128>}, {transform_indices = @transform_3, window_bounds = array<i64: 1, 8, 64>}]} {
    %0 = tpu.iota {dimensions = array<i32: 1>} : vector<1x16x16xi32>
    %1 = vector.shape_cast %0 : vector<1x16x16xi32> to vector<1x256xi32>
    %2 = tpu.iota {dimensions = array<i32: 2>} : vector<1x16x16xi32>
    %3 = vector.shape_cast %2 : vector<1x16x16xi32> to vector<1x256xi32>
    %4 = tpu.iota {dimensions = array<i32: 1>} : vector<1x8x8xi32>
    %5 = vector.shape_cast %4 : vector<1x8x8xi32> to vector<1x64xi32>
    %6 = tpu.iota {dimensions = array<i32: 2>} : vector<1x8x8xi32>
    %7 = vector.shape_cast %6 : vector<1x8x8xi32> to vector<1x64xi32>
    %c0 = arith.constant 0 : index
    %c0_0 = arith.constant 0 : index
    %8 = vector.load %arg2[%c0, %c0_0] : memref<72x128xf32, #tpu.memory_space<vmem>>, vector<8x36xf32>
    %c8 = arith.constant 8 : index
    %c0_1 = arith.constant 0 : index
    %9 = vector.load %arg2[%c8, %c0_1] : memref<72x128xf32, #tpu.memory_space<vmem>>, vector<8x72xf32>
    %c16 = arith.constant 16 : index
    %c0_2 = arith.constant 0 : index
    %10 = vector.load %arg2[%c16, %c0_2] : memref<72x128xf32, #tpu.memory_space<vmem>>, vector<16x8xf32>
    %c32 = arith.constant 32 : index
    %c0_3 = arith.constant 0 : index
    %11 = vector.load %arg2[%c32, %c0_3] : memref<72x128xf32, #tpu.memory_space<vmem>>, vector<8x16xf32>
    %c40 = arith.constant 40 : index
    %c0_4 = arith.constant 0 : index
    %12 = vector.load %arg2[%c40, %c0_4] : memref<72x128xf32, #tpu.memory_space<vmem>>, vector<8x8xf32>
    %c48 = arith.constant 48 : index
    %c0_5 = arith.constant 0 : index
    %13 = vector.load %arg2[%c48, %c0_5] : memref<72x128xf32, #tpu.memory_space<vmem>>, vector<8x8xf32>
    %c56 = arith.constant 56 : index
    %c0_6 = arith.constant 0 : index
    %14 = vector.load %arg2[%c56, %c0_6] : memref<72x128xf32, #tpu.memory_space<vmem>>, vector<2x8xf32>
    %c64 = arith.constant 64 : index
    %c0_7 = arith.constant 0 : index
    %15 = vector.load %arg2[%c64, %c0_7] : memref<72x128xf32, #tpu.memory_space<vmem>>, vector<8x2xf32>
    %c0_8 = arith.constant 0 : index
    %c0_9 = arith.constant 0 : index
    %16 = vector.load %arg3[%c0_8, %c0_9] : memref<16x128xf32, #tpu.memory_space<vmem>>, vector<8x1xf32>
    %c0_10 = arith.constant 0 : index
    %c1 = arith.constant 1 : index
    %17 = vector.load %arg3[%c0_10, %c1] : memref<16x128xf32, #tpu.memory_space<vmem>>, vector<8x1xf32>
    %c0_11 = arith.constant 0 : index
    %c2 = arith.constant 2 : index
    %18 = vector.load %arg3[%c0_11, %c2] : memref<16x128xf32, #tpu.memory_space<vmem>>, vector<2x1xf32>
    %c0_12 = arith.constant 0 : index
    %c3 = arith.constant 3 : index
    %19 = vector.load %arg3[%c0_12, %c3] : memref<16x128xf32, #tpu.memory_space<vmem>>, vector<8x1xf32>
    %c0_13 = arith.constant 0 : index
    %c4 = arith.constant 4 : index
    %20 = vector.load %arg3[%c0_13, %c4] : memref<16x128xf32, #tpu.memory_space<vmem>>, vector<16x1xf32>
    %c0_14 = arith.constant 0 : index
    %c5 = arith.constant 5 : index
    %21 = vector.load %arg3[%c0_14, %c5] : memref<16x128xf32, #tpu.memory_space<vmem>>, vector<16x1xf32>
    %c0_15 = arith.constant 0 : index
    %c6 = arith.constant 6 : index
    %22 = vector.load %arg3[%c0_15, %c6] : memref<16x128xf32, #tpu.memory_space<vmem>>, vector<16x1xf32>
    %c0_16 = arith.constant 0 : index
    %c7 = arith.constant 7 : index
    %23 = vector.load %arg3[%c0_16, %c7] : memref<16x128xf32, #tpu.memory_space<vmem>>, vector<8x1xf32>
    %c0_17 = arith.constant 0 : index
    %c8_18 = arith.constant 8 : index
    %24 = vector.load %arg3[%c0_17, %c8_18] : memref<16x128xf32, #tpu.memory_space<vmem>>, vector<8x1xf32>
    %c0_19 = arith.constant 0 : index
    %c9 = arith.constant 9 : index
    %25 = vector.load %arg3[%c0_19, %c9] : memref<16x128xf32, #tpu.memory_space<vmem>>, vector<8x1xf32>
    %c0_20 = arith.constant 0 : index
    %c10 = arith.constant 10 : index
    %26 = vector.load %arg3[%c0_20, %c10] : memref<16x128xf32, #tpu.memory_space<vmem>>, vector<8x1xf32>
    %c0_21 = arith.constant 0 : index
    %c0_22 = arith.constant 0 : index
    %c0_23 = arith.constant 0 : index
    %27 = vector.load %arg1[%c0_21, %c0_22, %c0_23] : memref<1x4x256xf32, #tpu.memory_space<vmem>>, vector<1x4x256xf32>
    %28 = vector.shape_cast %27 : vector<1x4x256xf32> to vector<4x256xf32>
    %c1_i32 = arith.constant 1 : i32
    %29 = tpu.dynamic_rotate %28 by %c1_i32 dim 1 : vector<4x256xf32>, i32 -> vector<4x256xf32>
    %c0_i32 = arith.constant 0 : i32
    %30 = vector.broadcast %c0_i32 : i32 to vector<1x256xi32>
    %31 = arith.cmpi eq, %3, %30 : vector<1x256xi32>
    %32 = vector.shape_cast %31 : vector<1x256xi1> to vector<1x256xi1>
    %33 = vector.broadcast %32 : vector<1x256xi1> to vector<4x256xi1>
    %34 = arith.select %33, %28, %29 : vector<4x256xi1>, vector<4x256xf32>
    %c255_i32 = arith.constant 255 : i32
    %35 = tpu.dynamic_rotate %28 by %c255_i32 dim 1 : vector<4x256xf32>, i32 -> vector<4x256xf32>
    %c15_i32 = arith.constant 15 : i32
    %36 = vector.broadcast %c15_i32 : i32 to vector<1x256xi32>
    %37 = arith.cmpi eq, %3, %36 : vector<1x256xi32>
    %38 = vector.shape_cast %37 : vector<1x256xi1> to vector<1x256xi1>
    %39 = vector.broadcast %38 : vector<1x256xi1> to vector<4x256xi1>
    %40 = arith.select %39, %28, %35 : vector<4x256xi1>, vector<4x256xf32>
    %c16_i32 = arith.constant 16 : i32
    %41 = tpu.dynamic_rotate %34 by %c16_i32 dim 1 : vector<4x256xf32>, i32 -> vector<4x256xf32>
    %c0_i32_24 = arith.constant 0 : i32
    %42 = vector.broadcast %c0_i32_24 : i32 to vector<1x256xi32>
    %43 = arith.cmpi eq, %1, %42 : vector<1x256xi32>
    %44 = vector.shape_cast %43 : vector<1x256xi1> to vector<1x256xi1>
    %45 = vector.broadcast %44 : vector<1x256xi1> to vector<4x256xi1>
    %46 = arith.select %45, %34, %41 : vector<4x256xi1>, vector<4x256xf32>
    %c16_i32_25 = arith.constant 16 : i32
    %47 = tpu.dynamic_rotate %28 by %c16_i32_25 dim 1 : vector<4x256xf32>, i32 -> vector<4x256xf32>
    %c0_i32_26 = arith.constant 0 : i32
    %48 = vector.broadcast %c0_i32_26 : i32 to vector<1x256xi32>
    %49 = arith.cmpi eq, %1, %48 : vector<1x256xi32>
    %50 = vector.shape_cast %49 : vector<1x256xi1> to vector<1x256xi1>
    %51 = vector.broadcast %50 : vector<1x256xi1> to vector<4x256xi1>
    %52 = arith.select %51, %28, %47 : vector<4x256xi1>, vector<4x256xf32>
    %c16_i32_27 = arith.constant 16 : i32
    %53 = tpu.dynamic_rotate %40 by %c16_i32_27 dim 1 : vector<4x256xf32>, i32 -> vector<4x256xf32>
    %c0_i32_28 = arith.constant 0 : i32
    %54 = vector.broadcast %c0_i32_28 : i32 to vector<1x256xi32>
    %55 = arith.cmpi eq, %1, %54 : vector<1x256xi32>
    %56 = vector.shape_cast %55 : vector<1x256xi1> to vector<1x256xi1>
    %57 = vector.broadcast %56 : vector<1x256xi1> to vector<4x256xi1>
    %58 = arith.select %57, %40, %53 : vector<4x256xi1>, vector<4x256xf32>
    %c240_i32 = arith.constant 240 : i32
    %59 = tpu.dynamic_rotate %34 by %c240_i32 dim 1 : vector<4x256xf32>, i32 -> vector<4x256xf32>
    %c15_i32_29 = arith.constant 15 : i32
    %60 = vector.broadcast %c15_i32_29 : i32 to vector<1x256xi32>
    %61 = arith.cmpi eq, %1, %60 : vector<1x256xi32>
    %62 = vector.shape_cast %61 : vector<1x256xi1> to vector<1x256xi1>
    %63 = vector.broadcast %62 : vector<1x256xi1> to vector<4x256xi1>
    %64 = arith.select %63, %34, %59 : vector<4x256xi1>, vector<4x256xf32>
    %c240_i32_30 = arith.constant 240 : i32
    %65 = tpu.dynamic_rotate %28 by %c240_i32_30 dim 1 : vector<4x256xf32>, i32 -> vector<4x256xf32>
    %c15_i32_31 = arith.constant 15 : i32
    %66 = vector.broadcast %c15_i32_31 : i32 to vector<1x256xi32>
    %67 = arith.cmpi eq, %1, %66 : vector<1x256xi32>
    %68 = vector.shape_cast %67 : vector<1x256xi1> to vector<1x256xi1>
    %69 = vector.broadcast %68 : vector<1x256xi1> to vector<4x256xi1>
    %70 = arith.select %69, %28, %65 : vector<4x256xi1>, vector<4x256xf32>
    %c240_i32_32 = arith.constant 240 : i32
    %71 = tpu.dynamic_rotate %40 by %c240_i32_32 dim 1 : vector<4x256xf32>, i32 -> vector<4x256xf32>
    %c15_i32_33 = arith.constant 15 : i32
    %72 = vector.broadcast %c15_i32_33 : i32 to vector<1x256xi32>
    %73 = arith.cmpi eq, %1, %72 : vector<1x256xi32>
    %74 = vector.shape_cast %73 : vector<1x256xi1> to vector<1x256xi1>
    %75 = vector.broadcast %74 : vector<1x256xi1> to vector<4x256xi1>
    %76 = arith.select %75, %40, %71 : vector<4x256xi1>, vector<4x256xf32>
    %77 = tpu.concatenate %46, %52, %58, %34, %28, %40, %64, %70, %76 in 0 : vector<4x256xf32>, vector<4x256xf32>, vector<4x256xf32>, vector<4x256xf32>, vector<4x256xf32>, vector<4x256xf32>, vector<4x256xf32>, vector<4x256xf32>, vector<4x256xf32> -> vector<36x256xf32>
    %cst = arith.constant dense<0.000000e+00> : vector<8x256xf32>
    %78 = tpu.matmul %8, %77, %cst {dimension_numbers = #tpu.dot_dimension_numbers<[1], [0], [0], [1], [0, 0, 1, 1], [], []>} : vector<8x36xf32>, vector<36x256xf32>, vector<8x256xf32> -> vector<8x256xf32>
    %79 = vector.broadcast %16 : vector<8x1xf32> to vector<8x256xf32>
    %80 = arith.addf %78, %79 : vector<8x256xf32>
    %cst_34 = arith.constant dense<0.000000e+00> : vector<8xf32>
    %81 = vector.multi_reduction <add>, %80, %cst_34 [1] : vector<8x256xf32> to vector<8xf32>
    %82 = vector.shape_cast %81 : vector<8xf32> to vector<8x1xf32>
    %cst_35 = arith.constant 3.906250e-03 : f32
    %83 = vector.broadcast %cst_35 : f32 to vector<8x1xf32>
    %84 = arith.mulf %82, %83 : vector<8x1xf32>
    %85 = arith.mulf %80, %80 : vector<8x256xf32>
    %cst_36 = arith.constant dense<0.000000e+00> : vector<8xf32>
    %86 = vector.multi_reduction <add>, %85, %cst_36 [1] : vector<8x256xf32> to vector<8xf32>
    %87 = vector.shape_cast %86 : vector<8xf32> to vector<8x1xf32>
    %cst_37 = arith.constant 3.906250e-03 : f32
    %88 = vector.broadcast %cst_37 : f32 to vector<8x1xf32>
    %89 = arith.mulf %87, %88 : vector<8x1xf32>
    %90 = arith.mulf %84, %84 : vector<8x1xf32>
    %91 = arith.subf %89, %90 : vector<8x1xf32>
    %cst_38 = arith.constant 0.000000e+00 : f32
    %92 = vector.broadcast %cst_38 : f32 to vector<8x1xf32>
    %93 = arith.maximumf %91, %92 : vector<8x1xf32>
    %94 = vector.broadcast %84 : vector<8x1xf32> to vector<8x256xf32>
    %95 = arith.subf %80, %94 : vector<8x256xf32>
    %cst_39 = arith.constant 9.99999974E-6 : f32
    %96 = vector.broadcast %cst_39 : f32 to vector<8x1xf32>
    %97 = arith.addf %93, %96 : vector<8x1xf32>
    %98 = math.rsqrt %97 : vector<8x1xf32>
    %99 = vector.broadcast %98 : vector<8x1xf32> to vector<8x256xf32>
    %100 = arith.mulf %95, %99 : vector<8x256xf32>
    %cst_40 = arith.constant 0.000000e+00 : f32
    %101 = vector.broadcast %cst_40 : f32 to vector<8x256xf32>
    %102 = arith.cmpf ogt, %100, %101 : vector<8x256xf32>
    %103 = math.exp %100 : vector<8x256xf32>
    %cst_41 = arith.constant 1.000000e+00 : f32
    %104 = vector.broadcast %cst_41 : f32 to vector<8x256xf32>
    %105 = arith.subf %103, %104 : vector<8x256xf32>
    %106 = arith.select %102, %100, %105 : vector<8x256xi1>, vector<8x256xf32>
    %c1_i32_42 = arith.constant 1 : i32
    %107 = tpu.dynamic_rotate %106 by %c1_i32_42 dim 1 : vector<8x256xf32>, i32 -> vector<8x256xf32>
    %c0_i32_43 = arith.constant 0 : i32
    %108 = vector.broadcast %c0_i32_43 : i32 to vector<1x256xi32>
    %109 = arith.cmpi eq, %3, %108 : vector<1x256xi32>
    %110 = vector.shape_cast %109 : vector<1x256xi1> to vector<1x256xi1>
    %111 = vector.broadcast %110 : vector<1x256xi1> to vector<8x256xi1>
    %112 = arith.select %111, %106, %107 : vector<8x256xi1>, vector<8x256xf32>
    %c255_i32_44 = arith.constant 255 : i32
    %113 = tpu.dynamic_rotate %106 by %c255_i32_44 dim 1 : vector<8x256xf32>, i32 -> vector<8x256xf32>
    %c15_i32_45 = arith.constant 15 : i32
    %114 = vector.broadcast %c15_i32_45 : i32 to vector<1x256xi32>
    %115 = arith.cmpi eq, %3, %114 : vector<1x256xi32>
    %116 = vector.shape_cast %115 : vector<1x256xi1> to vector<1x256xi1>
    %117 = vector.broadcast %116 : vector<1x256xi1> to vector<8x256xi1>
    %118 = arith.select %117, %106, %113 : vector<8x256xi1>, vector<8x256xf32>
    %c16_i32_46 = arith.constant 16 : i32
    %119 = tpu.dynamic_rotate %112 by %c16_i32_46 dim 1 : vector<8x256xf32>, i32 -> vector<8x256xf32>
    %c0_i32_47 = arith.constant 0 : i32
    %120 = vector.broadcast %c0_i32_47 : i32 to vector<1x256xi32>
    %121 = arith.cmpi eq, %1, %120 : vector<1x256xi32>
    %122 = vector.shape_cast %121 : vector<1x256xi1> to vector<1x256xi1>
    %123 = vector.broadcast %122 : vector<1x256xi1> to vector<8x256xi1>
    %124 = arith.select %123, %112, %119 : vector<8x256xi1>, vector<8x256xf32>
    %c16_i32_48 = arith.constant 16 : i32
    %125 = tpu.dynamic_rotate %106 by %c16_i32_48 dim 1 : vector<8x256xf32>, i32 -> vector<8x256xf32>
    %c0_i32_49 = arith.constant 0 : i32
    %126 = vector.broadcast %c0_i32_49 : i32 to vector<1x256xi32>
    %127 = arith.cmpi eq, %1, %126 : vector<1x256xi32>
    %128 = vector.shape_cast %127 : vector<1x256xi1> to vector<1x256xi1>
    %129 = vector.broadcast %128 : vector<1x256xi1> to vector<8x256xi1>
    %130 = arith.select %129, %106, %125 : vector<8x256xi1>, vector<8x256xf32>
    %c16_i32_50 = arith.constant 16 : i32
    %131 = tpu.dynamic_rotate %118 by %c16_i32_50 dim 1 : vector<8x256xf32>, i32 -> vector<8x256xf32>
    %c0_i32_51 = arith.constant 0 : i32
    %132 = vector.broadcast %c0_i32_51 : i32 to vector<1x256xi32>
    %133 = arith.cmpi eq, %1, %132 : vector<1x256xi32>
    %134 = vector.shape_cast %133 : vector<1x256xi1> to vector<1x256xi1>
    %135 = vector.broadcast %134 : vector<1x256xi1> to vector<8x256xi1>
    %136 = arith.select %135, %118, %131 : vector<8x256xi1>, vector<8x256xf32>
    %c240_i32_52 = arith.constant 240 : i32
    %137 = tpu.dynamic_rotate %112 by %c240_i32_52 dim 1 : vector<8x256xf32>, i32 -> vector<8x256xf32>
    %c15_i32_53 = arith.constant 15 : i32
    %138 = vector.broadcast %c15_i32_53 : i32 to vector<1x256xi32>
    %139 = arith.cmpi eq, %1, %138 : vector<1x256xi32>
    %140 = vector.shape_cast %139 : vector<1x256xi1> to vector<1x256xi1>
    %141 = vector.broadcast %140 : vector<1x256xi1> to vector<8x256xi1>
    %142 = arith.select %141, %112, %137 : vector<8x256xi1>, vector<8x256xf32>
    %c240_i32_54 = arith.constant 240 : i32
    %143 = tpu.dynamic_rotate %106 by %c240_i32_54 dim 1 : vector<8x256xf32>, i32 -> vector<8x256xf32>
    %c15_i32_55 = arith.constant 15 : i32
    %144 = vector.broadcast %c15_i32_55 : i32 to vector<1x256xi32>
    %145 = arith.cmpi eq, %1, %144 : vector<1x256xi32>
    %146 = vector.shape_cast %145 : vector<1x256xi1> to vector<1x256xi1>
    %147 = vector.broadcast %146 : vector<1x256xi1> to vector<8x256xi1>
    %148 = arith.select %147, %106, %143 : vector<8x256xi1>, vector<8x256xf32>
    %c240_i32_56 = arith.constant 240 : i32
    %149 = tpu.dynamic_rotate %118 by %c240_i32_56 dim 1 : vector<8x256xf32>, i32 -> vector<8x256xf32>
    %c15_i32_57 = arith.constant 15 : i32
    %150 = vector.broadcast %c15_i32_57 : i32 to vector<1x256xi32>
    %151 = arith.cmpi eq, %1, %150 : vector<1x256xi32>
    %152 = vector.shape_cast %151 : vector<1x256xi1> to vector<1x256xi1>
    %153 = vector.broadcast %152 : vector<1x256xi1> to vector<8x256xi1>
    %154 = arith.select %153, %118, %149 : vector<8x256xi1>, vector<8x256xf32>
    %155 = tpu.concatenate %124, %130, %136, %112, %106, %118, %142, %148, %154 in 0 : vector<8x256xf32>, vector<8x256xf32>, vector<8x256xf32>, vector<8x256xf32>, vector<8x256xf32>, vector<8x256xf32>, vector<8x256xf32>, vector<8x256xf32>, vector<8x256xf32> -> vector<72x256xf32>
    %cst_58 = arith.constant dense<0.000000e+00> : vector<8x256xf32>
    %156 = tpu.matmul %9, %155, %cst_58 {dimension_numbers = #tpu.dot_dimension_numbers<[1], [0], [0], [1], [0, 0, 1, 1], [], []>} : vector<8x72xf32>, vector<72x256xf32>, vector<8x256xf32> -> vector<8x256xf32>
    %157 = vector.broadcast %17 : vector<8x1xf32> to vector<8x256xf32>
    %158 = arith.addf %156, %157 : vector<8x256xf32>
    %cst_59 = arith.constant dense<0.000000e+00> : vector<8xf32>
    %159 = vector.multi_reduction <add>, %158, %cst_59 [1] : vector<8x256xf32> to vector<8xf32>
    %160 = vector.shape_cast %159 : vector<8xf32> to vector<8x1xf32>
    %cst_60 = arith.constant 3.906250e-03 : f32
    %161 = vector.broadcast %cst_60 : f32 to vector<8x1xf32>
    %162 = arith.mulf %160, %161 : vector<8x1xf32>
    %163 = arith.mulf %158, %158 : vector<8x256xf32>
    %cst_61 = arith.constant dense<0.000000e+00> : vector<8xf32>
    %164 = vector.multi_reduction <add>, %163, %cst_61 [1] : vector<8x256xf32> to vector<8xf32>
    %165 = vector.shape_cast %164 : vector<8xf32> to vector<8x1xf32>
    %cst_62 = arith.constant 3.906250e-03 : f32
    %166 = vector.broadcast %cst_62 : f32 to vector<8x1xf32>
    %167 = arith.mulf %165, %166 : vector<8x1xf32>
    %168 = arith.mulf %162, %162 : vector<8x1xf32>
    %169 = arith.subf %167, %168 : vector<8x1xf32>
    %cst_63 = arith.constant 0.000000e+00 : f32
    %170 = vector.broadcast %cst_63 : f32 to vector<8x1xf32>
    %171 = arith.maximumf %169, %170 : vector<8x1xf32>
    %172 = vector.broadcast %162 : vector<8x1xf32> to vector<8x256xf32>
    %173 = arith.subf %158, %172 : vector<8x256xf32>
    %cst_64 = arith.constant 9.99999974E-6 : f32
    %174 = vector.broadcast %cst_64 : f32 to vector<8x1xf32>
    %175 = arith.addf %171, %174 : vector<8x1xf32>
    %176 = math.rsqrt %175 : vector<8x1xf32>
    %177 = vector.broadcast %176 : vector<8x1xf32> to vector<8x256xf32>
    %178 = arith.mulf %173, %177 : vector<8x256xf32>
    %cst_65 = arith.constant dense<0.000000e+00> : vector<8xf32>
    %179 = vector.multi_reduction <add>, %178, %cst_65 [1] : vector<8x256xf32> to vector<8xf32>
    %180 = vector.shape_cast %179 : vector<8xf32> to vector<8x1xf32>
    %cst_66 = arith.constant 3.906250e-03 : f32
    %181 = vector.broadcast %cst_66 : f32 to vector<8x1xf32>
    %182 = arith.mulf %180, %181 : vector<8x1xf32>
    %183 = vector.shape_cast %182 : vector<8x1xf32> to vector<1x8xf32>
    %184 = vector.broadcast %183 : vector<1x8xf32> to vector<2x8xf32>
    %185 = arith.mulf %14, %184 : vector<2x8xf32>
    %cst_67 = arith.constant dense<0.000000e+00> : vector<2xf32>
    %186 = vector.multi_reduction <add>, %185, %cst_67 [1] : vector<2x8xf32> to vector<2xf32>
    %187 = vector.shape_cast %186 : vector<2xf32> to vector<2x1xf32>
    %188 = arith.addf %187, %18 : vector<2x1xf32>
    %cst_68 = arith.constant 0.000000e+00 : f32
    %189 = vector.broadcast %cst_68 : f32 to vector<2x1xf32>
    %190 = arith.maximumf %188, %189 : vector<2x1xf32>
    %191 = vector.shape_cast %190 : vector<2x1xf32> to vector<1x2xf32>
    %192 = vector.broadcast %191 : vector<1x2xf32> to vector<8x2xf32>
    %193 = arith.mulf %15, %192 : vector<8x2xf32>
    %cst_69 = arith.constant dense<0.000000e+00> : vector<8xf32>
    %194 = vector.multi_reduction <add>, %193, %cst_69 [1] : vector<8x2xf32> to vector<8xf32>
    %195 = vector.shape_cast %194 : vector<8xf32> to vector<8x1xf32>
    %196 = arith.addf %195, %19 : vector<8x1xf32>
    %197 = arith.negf %196 : vector<8x1xf32>
    %198 = math.exp %197 : vector<8x1xf32>
    %cst_70 = arith.constant 1.000000e+00 : f32
    %199 = vector.broadcast %cst_70 : f32 to vector<8x1xf32>
    %200 = arith.addf %199, %198 : vector<8x1xf32>
    %201 = arith.divf %199, %200 : vector<8x1xf32>
    %202 = vector.broadcast %201 : vector<8x1xf32> to vector<8x256xf32>
    %203 = arith.mulf %178, %202 : vector<8x256xf32>
    %cst_71 = arith.constant 0.000000e+00 : f32
    %204 = vector.broadcast %cst_71 : f32 to vector<8x256xf32>
    %205 = arith.cmpf ogt, %203, %204 : vector<8x256xf32>
    %206 = math.exp %203 : vector<8x256xf32>
    %cst_72 = arith.constant 1.000000e+00 : f32
    %207 = vector.broadcast %cst_72 : f32 to vector<8x256xf32>
    %208 = arith.subf %206, %207 : vector<8x256xf32>
    %209 = arith.select %205, %203, %208 : vector<8x256xi1>, vector<8x256xf32>
    %210 = vector.shape_cast %209 : vector<8x256xf32> to vector<8x128x2xf32>
    %211 = vector.extract_strided_slice %210 {offsets = [0, 0, 0], sizes = [8, 128, 1], strides = [1, 1, 1]} : vector<8x128x2xf32> to vector<8x128x1xf32>
    %212 = vector.shape_cast %211 : vector<8x128x1xf32> to vector<8x128xf32>
    %213 = vector.extract_strided_slice %210 {offsets = [0, 0, 1], sizes = [8, 128, 1], strides = [1, 1, 1]} : vector<8x128x2xf32> to vector<8x128x1xf32>
    %214 = vector.shape_cast %213 : vector<8x128x1xf32> to vector<8x128xf32>
    %215 = arith.maximumf %212, %214 : vector<8x128xf32>
    %216 = vector.shape_cast %215 : vector<8x128xf32> to vector<8x8x2x8xf32>
    %217 = vector.extract_strided_slice %216 {offsets = [0, 0, 0, 0], sizes = [8, 8, 1, 8], strides = [1, 1, 1, 1]} : vector<8x8x2x8xf32> to vector<8x8x1x8xf32>
    %218 = vector.shape_cast %217 : vector<8x8x1x8xf32> to vector<8x8x8xf32>
    %219 = vector.extract_strided_slice %216 {offsets = [0, 0, 1, 0], sizes = [8, 8, 1, 8], strides = [1, 1, 1, 1]} : vector<8x8x2x8xf32> to vector<8x8x1x8xf32>
    %220 = vector.shape_cast %219 : vector<8x8x1x8xf32> to vector<8x8x8xf32>
    %221 = arith.maximumf %218, %220 : vector<8x8x8xf32>
    %222 = vector.shape_cast %221 : vector<8x8x8xf32> to vector<8x64xf32>
    %c1_i32_73 = arith.constant 1 : i32
    %223 = vector.broadcast %c1_i32_73 : i32 to vector<1x64xi32>
    %224 = arith.addi %5, %223 : vector<1x64xi32>
    %c7_i32 = arith.constant 7 : i32
    %225 = vector.broadcast %c7_i32 : i32 to vector<1x64xi32>
    %226 = arith.minsi %224, %225 : vector<1x64xi32>
    %c1_i32_74 = arith.constant 1 : i32
    %227 = vector.broadcast %c1_i32_74 : i32 to vector<1x64xi32>
    %228 = arith.subi %5, %227 : vector<1x64xi32>
    %c0_i32_75 = arith.constant 0 : i32
    %229 = vector.broadcast %c0_i32_75 : i32 to vector<1x64xi32>
    %230 = arith.maxsi %228, %229 : vector<1x64xi32>
    %231 = arith.subi %226, %230 : vector<1x64xi32>
    %c1_i32_76 = arith.constant 1 : i32
    %232 = vector.broadcast %c1_i32_76 : i32 to vector<1x64xi32>
    %233 = arith.addi %231, %232 : vector<1x64xi32>
    %c1_i32_77 = arith.constant 1 : i32
    %234 = vector.broadcast %c1_i32_77 : i32 to vector<1x64xi32>
    %235 = arith.addi %7, %234 : vector<1x64xi32>
    %c7_i32_78 = arith.constant 7 : i32
    %236 = vector.broadcast %c7_i32_78 : i32 to vector<1x64xi32>
    %237 = arith.minsi %235, %236 : vector<1x64xi32>
    %c1_i32_79 = arith.constant 1 : i32
    %238 = vector.broadcast %c1_i32_79 : i32 to vector<1x64xi32>
    %239 = arith.subi %7, %238 : vector<1x64xi32>
    %c0_i32_80 = arith.constant 0 : i32
    %240 = vector.broadcast %c0_i32_80 : i32 to vector<1x64xi32>
    %241 = arith.maxsi %239, %240 : vector<1x64xi32>
    %242 = arith.subi %237, %241 : vector<1x64xi32>
    %c1_i32_81 = arith.constant 1 : i32
    %243 = vector.broadcast %c1_i32_81 : i32 to vector<1x64xi32>
    %244 = arith.addi %242, %243 : vector<1x64xi32>
    %245 = arith.muli %233, %244 : vector<1x64xi32>
    %246 = arith.sitofp %245 : vector<1x64xi32> to vector<1x64xf32>
    %247 = math.rsqrt %246 : vector<1x64xf32>
    %cst_82 = arith.constant dense<0.000000e+00> : vector<16x64xf32>
    %248 = tpu.matmul %10, %222, %cst_82 {dimension_numbers = #tpu.dot_dimension_numbers<[1], [0], [0], [1], [0, 0, 1, 1], [], []>} : vector<16x8xf32>, vector<8x64xf32>, vector<16x64xf32> -> vector<16x64xf32>
    %249 = vector.broadcast %247 : vector<1x64xf32> to vector<16x64xf32>
    %250 = arith.mulf %248, %249 : vector<16x64xf32>
    %c9_i32 = arith.constant 9 : i32
    %251 = tpu.dynamic_rotate %250 by %c9_i32 dim 1 : vector<16x64xf32>, i32 -> vector<16x64xf32>
    %c-1_i32 = arith.constant -1 : i32
    %252 = vector.broadcast %c-1_i32 : i32 to vector<1x64xi32>
    %253 = arith.addi %5, %252 : vector<1x64xi32>
    %c0_i32_83 = arith.constant 0 : i32
    %254 = vector.broadcast %c0_i32_83 : i32 to vector<1x64xi32>
    %255 = arith.cmpi sge, %253, %254 : vector<1x64xi32>
    %c-1_i32_84 = arith.constant -1 : i32
    %256 = vector.broadcast %c-1_i32_84 : i32 to vector<1x64xi32>
    %257 = arith.addi %5, %256 : vector<1x64xi32>
    %c8_i32 = arith.constant 8 : i32
    %258 = vector.broadcast %c8_i32 : i32 to vector<1x64xi32>
    %259 = arith.cmpi slt, %257, %258 : vector<1x64xi32>
    %260 = arith.andi %255, %259 : vector<1x64xi1>
    %c-1_i32_85 = arith.constant -1 : i32
    %261 = vector.broadcast %c-1_i32_85 : i32 to vector<1x64xi32>
    %262 = arith.addi %7, %261 : vector<1x64xi32>
    %c0_i32_86 = arith.constant 0 : i32
    %263 = vector.broadcast %c0_i32_86 : i32 to vector<1x64xi32>
    %264 = arith.cmpi sge, %262, %263 : vector<1x64xi32>
    %265 = arith.andi %260, %264 : vector<1x64xi1>
    %c-1_i32_87 = arith.constant -1 : i32
    %266 = vector.broadcast %c-1_i32_87 : i32 to vector<1x64xi32>
    %267 = arith.addi %7, %266 : vector<1x64xi32>
    %c8_i32_88 = arith.constant 8 : i32
    %268 = vector.broadcast %c8_i32_88 : i32 to vector<1x64xi32>
    %269 = arith.cmpi slt, %267, %268 : vector<1x64xi32>
    %270 = arith.andi %265, %269 : vector<1x64xi1>
    %cst_89 = arith.constant 0.000000e+00 : f32
    %271 = vector.shape_cast %270 : vector<1x64xi1> to vector<1x64xi1>
    %272 = vector.broadcast %271 : vector<1x64xi1> to vector<16x64xi1>
    %273 = vector.broadcast %cst_89 : f32 to vector<16x64xf32>
    %274 = arith.select %272, %251, %273 : vector<16x64xi1>, vector<16x64xf32>
    %275 = arith.addf %250, %274 : vector<16x64xf32>
    %c8_i32_90 = arith.constant 8 : i32
    %276 = tpu.dynamic_rotate %250 by %c8_i32_90 dim 1 : vector<16x64xf32>, i32 -> vector<16x64xf32>
    %c-1_i32_91 = arith.constant -1 : i32
    %277 = vector.broadcast %c-1_i32_91 : i32 to vector<1x64xi32>
    %278 = arith.addi %5, %277 : vector<1x64xi32>
    %c0_i32_92 = arith.constant 0 : i32
    %279 = vector.broadcast %c0_i32_92 : i32 to vector<1x64xi32>
    %280 = arith.cmpi sge, %278, %279 : vector<1x64xi32>
    %c-1_i32_93 = arith.constant -1 : i32
    %281 = vector.broadcast %c-1_i32_93 : i32 to vector<1x64xi32>
    %282 = arith.addi %5, %281 : vector<1x64xi32>
    %c8_i32_94 = arith.constant 8 : i32
    %283 = vector.broadcast %c8_i32_94 : i32 to vector<1x64xi32>
    %284 = arith.cmpi slt, %282, %283 : vector<1x64xi32>
    %285 = arith.andi %280, %284 : vector<1x64xi1>
    %c0_i32_95 = arith.constant 0 : i32
    %286 = vector.broadcast %c0_i32_95 : i32 to vector<1x64xi32>
    %287 = arith.addi %7, %286 : vector<1x64xi32>
    %c0_i32_96 = arith.constant 0 : i32
    %288 = vector.broadcast %c0_i32_96 : i32 to vector<1x64xi32>
    %289 = arith.cmpi sge, %287, %288 : vector<1x64xi32>
    %290 = arith.andi %285, %289 : vector<1x64xi1>
    %c0_i32_97 = arith.constant 0 : i32
    %291 = vector.broadcast %c0_i32_97 : i32 to vector<1x64xi32>
    %292 = arith.addi %7, %291 : vector<1x64xi32>
    %c8_i32_98 = arith.constant 8 : i32
    %293 = vector.broadcast %c8_i32_98 : i32 to vector<1x64xi32>
    %294 = arith.cmpi slt, %292, %293 : vector<1x64xi32>
    %295 = arith.andi %290, %294 : vector<1x64xi1>
    %cst_99 = arith.constant 0.000000e+00 : f32
    %296 = vector.shape_cast %295 : vector<1x64xi1> to vector<1x64xi1>
    %297 = vector.broadcast %296 : vector<1x64xi1> to vector<16x64xi1>
    %298 = vector.broadcast %cst_99 : f32 to vector<16x64xf32>
    %299 = arith.select %297, %276, %298 : vector<16x64xi1>, vector<16x64xf32>
    %300 = arith.addf %275, %299 : vector<16x64xf32>
    %c7_i32_100 = arith.constant 7 : i32
    %301 = tpu.dynamic_rotate %250 by %c7_i32_100 dim 1 : vector<16x64xf32>, i32 -> vector<16x64xf32>
    %c-1_i32_101 = arith.constant -1 : i32
    %302 = vector.broadcast %c-1_i32_101 : i32 to vector<1x64xi32>
    %303 = arith.addi %5, %302 : vector<1x64xi32>
    %c0_i32_102 = arith.constant 0 : i32
    %304 = vector.broadcast %c0_i32_102 : i32 to vector<1x64xi32>
    %305 = arith.cmpi sge, %303, %304 : vector<1x64xi32>
    %c-1_i32_103 = arith.constant -1 : i32
    %306 = vector.broadcast %c-1_i32_103 : i32 to vector<1x64xi32>
    %307 = arith.addi %5, %306 : vector<1x64xi32>
    %c8_i32_104 = arith.constant 8 : i32
    %308 = vector.broadcast %c8_i32_104 : i32 to vector<1x64xi32>
    %309 = arith.cmpi slt, %307, %308 : vector<1x64xi32>
    %310 = arith.andi %305, %309 : vector<1x64xi1>
    %c1_i32_105 = arith.constant 1 : i32
    %311 = vector.broadcast %c1_i32_105 : i32 to vector<1x64xi32>
    %312 = arith.addi %7, %311 : vector<1x64xi32>
    %c0_i32_106 = arith.constant 0 : i32
    %313 = vector.broadcast %c0_i32_106 : i32 to vector<1x64xi32>
    %314 = arith.cmpi sge, %312, %313 : vector<1x64xi32>
    %315 = arith.andi %310, %314 : vector<1x64xi1>
    %c1_i32_107 = arith.constant 1 : i32
    %316 = vector.broadcast %c1_i32_107 : i32 to vector<1x64xi32>
    %317 = arith.addi %7, %316 : vector<1x64xi32>
    %c8_i32_108 = arith.constant 8 : i32
    %318 = vector.broadcast %c8_i32_108 : i32 to vector<1x64xi32>
    %319 = arith.cmpi slt, %317, %318 : vector<1x64xi32>
    %320 = arith.andi %315, %319 : vector<1x64xi1>
    %cst_109 = arith.constant 0.000000e+00 : f32
    %321 = vector.shape_cast %320 : vector<1x64xi1> to vector<1x64xi1>
    %322 = vector.broadcast %321 : vector<1x64xi1> to vector<16x64xi1>
    %323 = vector.broadcast %cst_109 : f32 to vector<16x64xf32>
    %324 = arith.select %322, %301, %323 : vector<16x64xi1>, vector<16x64xf32>
    %325 = arith.addf %300, %324 : vector<16x64xf32>
    %c1_i32_110 = arith.constant 1 : i32
    %326 = tpu.dynamic_rotate %250 by %c1_i32_110 dim 1 : vector<16x64xf32>, i32 -> vector<16x64xf32>
    %c0_i32_111 = arith.constant 0 : i32
    %327 = vector.broadcast %c0_i32_111 : i32 to vector<1x64xi32>
    %328 = arith.addi %5, %327 : vector<1x64xi32>
    %c0_i32_112 = arith.constant 0 : i32
    %329 = vector.broadcast %c0_i32_112 : i32 to vector<1x64xi32>
    %330 = arith.cmpi sge, %328, %329 : vector<1x64xi32>
    %c0_i32_113 = arith.constant 0 : i32
    %331 = vector.broadcast %c0_i32_113 : i32 to vector<1x64xi32>
    %332 = arith.addi %5, %331 : vector<1x64xi32>
    %c8_i32_114 = arith.constant 8 : i32
    %333 = vector.broadcast %c8_i32_114 : i32 to vector<1x64xi32>
    %334 = arith.cmpi slt, %332, %333 : vector<1x64xi32>
    %335 = arith.andi %330, %334 : vector<1x64xi1>
    %c-1_i32_115 = arith.constant -1 : i32
    %336 = vector.broadcast %c-1_i32_115 : i32 to vector<1x64xi32>
    %337 = arith.addi %7, %336 : vector<1x64xi32>
    %c0_i32_116 = arith.constant 0 : i32
    %338 = vector.broadcast %c0_i32_116 : i32 to vector<1x64xi32>
    %339 = arith.cmpi sge, %337, %338 : vector<1x64xi32>
    %340 = arith.andi %335, %339 : vector<1x64xi1>
    %c-1_i32_117 = arith.constant -1 : i32
    %341 = vector.broadcast %c-1_i32_117 : i32 to vector<1x64xi32>
    %342 = arith.addi %7, %341 : vector<1x64xi32>
    %c8_i32_118 = arith.constant 8 : i32
    %343 = vector.broadcast %c8_i32_118 : i32 to vector<1x64xi32>
    %344 = arith.cmpi slt, %342, %343 : vector<1x64xi32>
    %345 = arith.andi %340, %344 : vector<1x64xi1>
    %cst_119 = arith.constant 0.000000e+00 : f32
    %346 = vector.shape_cast %345 : vector<1x64xi1> to vector<1x64xi1>
    %347 = vector.broadcast %346 : vector<1x64xi1> to vector<16x64xi1>
    %348 = vector.broadcast %cst_119 : f32 to vector<16x64xf32>
    %349 = arith.select %347, %326, %348 : vector<16x64xi1>, vector<16x64xf32>
    %350 = arith.addf %325, %349 : vector<16x64xf32>
    %c63_i32 = arith.constant 63 : i32
    %351 = tpu.dynamic_rotate %250 by %c63_i32 dim 1 : vector<16x64xf32>, i32 -> vector<16x64xf32>
    %c0_i32_120 = arith.constant 0 : i32
    %352 = vector.broadcast %c0_i32_120 : i32 to vector<1x64xi32>
    %353 = arith.addi %5, %352 : vector<1x64xi32>
    %c0_i32_121 = arith.constant 0 : i32
    %354 = vector.broadcast %c0_i32_121 : i32 to vector<1x64xi32>
    %355 = arith.cmpi sge, %353, %354 : vector<1x64xi32>
    %c0_i32_122 = arith.constant 0 : i32
    %356 = vector.broadcast %c0_i32_122 : i32 to vector<1x64xi32>
    %357 = arith.addi %5, %356 : vector<1x64xi32>
    %c8_i32_123 = arith.constant 8 : i32
    %358 = vector.broadcast %c8_i32_123 : i32 to vector<1x64xi32>
    %359 = arith.cmpi slt, %357, %358 : vector<1x64xi32>
    %360 = arith.andi %355, %359 : vector<1x64xi1>
    %c1_i32_124 = arith.constant 1 : i32
    %361 = vector.broadcast %c1_i32_124 : i32 to vector<1x64xi32>
    %362 = arith.addi %7, %361 : vector<1x64xi32>
    %c0_i32_125 = arith.constant 0 : i32
    %363 = vector.broadcast %c0_i32_125 : i32 to vector<1x64xi32>
    %364 = arith.cmpi sge, %362, %363 : vector<1x64xi32>
    %365 = arith.andi %360, %364 : vector<1x64xi1>
    %c1_i32_126 = arith.constant 1 : i32
    %366 = vector.broadcast %c1_i32_126 : i32 to vector<1x64xi32>
    %367 = arith.addi %7, %366 : vector<1x64xi32>
    %c8_i32_127 = arith.constant 8 : i32
    %368 = vector.broadcast %c8_i32_127 : i32 to vector<1x64xi32>
    %369 = arith.cmpi slt, %367, %368 : vector<1x64xi32>
    %370 = arith.andi %365, %369 : vector<1x64xi1>
    %cst_128 = arith.constant 0.000000e+00 : f32
    %371 = vector.shape_cast %370 : vector<1x64xi1> to vector<1x64xi1>
    %372 = vector.broadcast %371 : vector<1x64xi1> to vector<16x64xi1>
    %373 = vector.broadcast %cst_128 : f32 to vector<16x64xf32>
    %374 = arith.select %372, %351, %373 : vector<16x64xi1>, vector<16x64xf32>
    %375 = arith.addf %350, %374 : vector<16x64xf32>
    %c57_i32 = arith.constant 57 : i32
    %376 = tpu.dynamic_rotate %250 by %c57_i32 dim 1 : vector<16x64xf32>, i32 -> vector<16x64xf32>
    %c1_i32_129 = arith.constant 1 : i32
    %377 = vector.broadcast %c1_i32_129 : i32 to vector<1x64xi32>
    %378 = arith.addi %5, %377 : vector<1x64xi32>
    %c0_i32_130 = arith.constant 0 : i32
    %379 = vector.broadcast %c0_i32_130 : i32 to vector<1x64xi32>
    %380 = arith.cmpi sge, %378, %379 : vector<1x64xi32>
    %c1_i32_131 = arith.constant 1 : i32
    %381 = vector.broadcast %c1_i32_131 : i32 to vector<1x64xi32>
    %382 = arith.addi %5, %381 : vector<1x64xi32>
    %c8_i32_132 = arith.constant 8 : i32
    %383 = vector.broadcast %c8_i32_132 : i32 to vector<1x64xi32>
    %384 = arith.cmpi slt, %382, %383 : vector<1x64xi32>
    %385 = arith.andi %380, %384 : vector<1x64xi1>
    %c-1_i32_133 = arith.constant -1 : i32
    %386 = vector.broadcast %c-1_i32_133 : i32 to vector<1x64xi32>
    %387 = arith.addi %7, %386 : vector<1x64xi32>
    %c0_i32_134 = arith.constant 0 : i32
    %388 = vector.broadcast %c0_i32_134 : i32 to vector<1x64xi32>
    %389 = arith.cmpi sge, %387, %388 : vector<1x64xi32>
    %390 = arith.andi %385, %389 : vector<1x64xi1>
    %c-1_i32_135 = arith.constant -1 : i32
    %391 = vector.broadcast %c-1_i32_135 : i32 to vector<1x64xi32>
    %392 = arith.addi %7, %391 : vector<1x64xi32>
    %c8_i32_136 = arith.constant 8 : i32
    %393 = vector.broadcast %c8_i32_136 : i32 to vector<1x64xi32>
    %394 = arith.cmpi slt, %392, %393 : vector<1x64xi32>
    %395 = arith.andi %390, %394 : vector<1x64xi1>
    %cst_137 = arith.constant 0.000000e+00 : f32
    %396 = vector.shape_cast %395 : vector<1x64xi1> to vector<1x64xi1>
    %397 = vector.broadcast %396 : vector<1x64xi1> to vector<16x64xi1>
    %398 = vector.broadcast %cst_137 : f32 to vector<16x64xf32>
    %399 = arith.select %397, %376, %398 : vector<16x64xi1>, vector<16x64xf32>
    %400 = arith.addf %375, %399 : vector<16x64xf32>
    %c56_i32 = arith.constant 56 : i32
    %401 = tpu.dynamic_rotate %250 by %c56_i32 dim 1 : vector<16x64xf32>, i32 -> vector<16x64xf32>
    %c1_i32_138 = arith.constant 1 : i32
    %402 = vector.broadcast %c1_i32_138 : i32 to vector<1x64xi32>
    %403 = arith.addi %5, %402 : vector<1x64xi32>
    %c0_i32_139 = arith.constant 0 : i32
    %404 = vector.broadcast %c0_i32_139 : i32 to vector<1x64xi32>
    %405 = arith.cmpi sge, %403, %404 : vector<1x64xi32>
    %c1_i32_140 = arith.constant 1 : i32
    %406 = vector.broadcast %c1_i32_140 : i32 to vector<1x64xi32>
    %407 = arith.addi %5, %406 : vector<1x64xi32>
    %c8_i32_141 = arith.constant 8 : i32
    %408 = vector.broadcast %c8_i32_141 : i32 to vector<1x64xi32>
    %409 = arith.cmpi slt, %407, %408 : vector<1x64xi32>
    %410 = arith.andi %405, %409 : vector<1x64xi1>
    %c0_i32_142 = arith.constant 0 : i32
    %411 = vector.broadcast %c0_i32_142 : i32 to vector<1x64xi32>
    %412 = arith.addi %7, %411 : vector<1x64xi32>
    %c0_i32_143 = arith.constant 0 : i32
    %413 = vector.broadcast %c0_i32_143 : i32 to vector<1x64xi32>
    %414 = arith.cmpi sge, %412, %413 : vector<1x64xi32>
    %415 = arith.andi %410, %414 : vector<1x64xi1>
    %c0_i32_144 = arith.constant 0 : i32
    %416 = vector.broadcast %c0_i32_144 : i32 to vector<1x64xi32>
    %417 = arith.addi %7, %416 : vector<1x64xi32>
    %c8_i32_145 = arith.constant 8 : i32
    %418 = vector.broadcast %c8_i32_145 : i32 to vector<1x64xi32>
    %419 = arith.cmpi slt, %417, %418 : vector<1x64xi32>
    %420 = arith.andi %415, %419 : vector<1x64xi1>
    %cst_146 = arith.constant 0.000000e+00 : f32
    %421 = vector.shape_cast %420 : vector<1x64xi1> to vector<1x64xi1>
    %422 = vector.broadcast %421 : vector<1x64xi1> to vector<16x64xi1>
    %423 = vector.broadcast %cst_146 : f32 to vector<16x64xf32>
    %424 = arith.select %422, %401, %423 : vector<16x64xi1>, vector<16x64xf32>
    %425 = arith.addf %400, %424 : vector<16x64xf32>
    %c55_i32 = arith.constant 55 : i32
    %426 = tpu.dynamic_rotate %250 by %c55_i32 dim 1 : vector<16x64xf32>, i32 -> vector<16x64xf32>
    %c1_i32_147 = arith.constant 1 : i32
    %427 = vector.broadcast %c1_i32_147 : i32 to vector<1x64xi32>
    %428 = arith.addi %5, %427 : vector<1x64xi32>
    %c0_i32_148 = arith.constant 0 : i32
    %429 = vector.broadcast %c0_i32_148 : i32 to vector<1x64xi32>
    %430 = arith.cmpi sge, %428, %429 : vector<1x64xi32>
    %c1_i32_149 = arith.constant 1 : i32
    %431 = vector.broadcast %c1_i32_149 : i32 to vector<1x64xi32>
    %432 = arith.addi %5, %431 : vector<1x64xi32>
    %c8_i32_150 = arith.constant 8 : i32
    %433 = vector.broadcast %c8_i32_150 : i32 to vector<1x64xi32>
    %434 = arith.cmpi slt, %432, %433 : vector<1x64xi32>
    %435 = arith.andi %430, %434 : vector<1x64xi1>
    %c1_i32_151 = arith.constant 1 : i32
    %436 = vector.broadcast %c1_i32_151 : i32 to vector<1x64xi32>
    %437 = arith.addi %7, %436 : vector<1x64xi32>
    %c0_i32_152 = arith.constant 0 : i32
    %438 = vector.broadcast %c0_i32_152 : i32 to vector<1x64xi32>
    %439 = arith.cmpi sge, %437, %438 : vector<1x64xi32>
    %440 = arith.andi %435, %439 : vector<1x64xi1>
    %c1_i32_153 = arith.constant 1 : i32
    %441 = vector.broadcast %c1_i32_153 : i32 to vector<1x64xi32>
    %442 = arith.addi %7, %441 : vector<1x64xi32>
    %c8_i32_154 = arith.constant 8 : i32
    %443 = vector.broadcast %c8_i32_154 : i32 to vector<1x64xi32>
    %444 = arith.cmpi slt, %442, %443 : vector<1x64xi32>
    %445 = arith.andi %440, %444 : vector<1x64xi1>
    %cst_155 = arith.constant 0.000000e+00 : f32
    %446 = vector.shape_cast %445 : vector<1x64xi1> to vector<1x64xi1>
    %447 = vector.broadcast %446 : vector<1x64xi1> to vector<16x64xi1>
    %448 = vector.broadcast %cst_155 : f32 to vector<16x64xf32>
    %449 = arith.select %447, %426, %448 : vector<16x64xi1>, vector<16x64xf32>
    %450 = arith.addf %425, %449 : vector<16x64xf32>
    %451 = vector.broadcast %247 : vector<1x64xf32> to vector<16x64xf32>
    %452 = arith.mulf %450, %451 : vector<16x64xf32>
    %453 = vector.broadcast %20 : vector<16x1xf32> to vector<16x64xf32>
    %454 = arith.addf %452, %453 : vector<16x64xf32>
    %cst_156 = arith.constant dense<0.000000e+00> : vector<64xf32>
    %455 = vector.multi_reduction <add>, %454, %cst_156 [0] : vector<16x64xf32> to vector<64xf32>
    %456 = vector.shape_cast %455 : vector<64xf32> to vector<1x64xf32>
    %cst_157 = arith.constant 6.250000e-02 : f32
    %457 = vector.broadcast %cst_157 : f32 to vector<1x64xf32>
    %458 = arith.mulf %456, %457 : vector<1x64xf32>
    %459 = arith.mulf %454, %454 : vector<16x64xf32>
    %cst_158 = arith.constant dense<0.000000e+00> : vector<64xf32>
    %460 = vector.multi_reduction <add>, %459, %cst_158 [0] : vector<16x64xf32> to vector<64xf32>
    %461 = vector.shape_cast %460 : vector<64xf32> to vector<1x64xf32>
    %cst_159 = arith.constant 6.250000e-02 : f32
    %462 = vector.broadcast %cst_159 : f32 to vector<1x64xf32>
    %463 = arith.mulf %461, %462 : vector<1x64xf32>
    %464 = arith.mulf %458, %458 : vector<1x64xf32>
    %465 = arith.subf %463, %464 : vector<1x64xf32>
    %cst_160 = arith.constant 0.000000e+00 : f32
    %466 = vector.broadcast %cst_160 : f32 to vector<1x64xf32>
    %467 = arith.maximumf %465, %466 : vector<1x64xf32>
    %468 = vector.broadcast %458 : vector<1x64xf32> to vector<16x64xf32>
    %469 = arith.subf %454, %468 : vector<16x64xf32>
    %cst_161 = arith.constant 9.99999974E-6 : f32
    %470 = vector.broadcast %cst_161 : f32 to vector<1x64xf32>
    %471 = arith.addf %467, %470 : vector<1x64xf32>
    %472 = math.rsqrt %471 : vector<1x64xf32>
    %473 = vector.broadcast %472 : vector<1x64xf32> to vector<16x64xf32>
    %474 = arith.mulf %469, %473 : vector<16x64xf32>
    %475 = vector.broadcast %21 : vector<16x1xf32> to vector<16x64xf32>
    %476 = arith.mulf %474, %475 : vector<16x64xf32>
    %477 = vector.broadcast %22 : vector<16x1xf32> to vector<16x64xf32>
    %478 = arith.addf %476, %477 : vector<16x64xf32>
    %cst_162 = arith.constant 0.000000e+00 : f32
    %479 = vector.broadcast %cst_162 : f32 to vector<16x64xf32>
    %480 = arith.cmpf ogt, %478, %479 : vector<16x64xf32>
    %481 = math.exp %478 : vector<16x64xf32>
    %cst_163 = arith.constant 1.000000e+00 : f32
    %482 = vector.broadcast %cst_163 : f32 to vector<16x64xf32>
    %483 = arith.subf %481, %482 : vector<16x64xf32>
    %484 = arith.select %480, %478, %483 : vector<16x64xi1>, vector<16x64xf32>
    %cst_164 = arith.constant dense<0.000000e+00> : vector<8x64xf32>
    %485 = tpu.matmul %11, %484, %cst_164 {dimension_numbers = #tpu.dot_dimension_numbers<[1], [0], [0], [1], [0, 0, 1, 1], [], []>} : vector<8x16xf32>, vector<16x64xf32>, vector<8x64xf32> -> vector<8x64xf32>
    %486 = vector.broadcast %247 : vector<1x64xf32> to vector<8x64xf32>
    %487 = arith.mulf %485, %486 : vector<8x64xf32>
    %c9_i32_165 = arith.constant 9 : i32
    %488 = tpu.dynamic_rotate %487 by %c9_i32_165 dim 1 : vector<8x64xf32>, i32 -> vector<8x64xf32>
    %c-1_i32_166 = arith.constant -1 : i32
    %489 = vector.broadcast %c-1_i32_166 : i32 to vector<1x64xi32>
    %490 = arith.addi %5, %489 : vector<1x64xi32>
    %c0_i32_167 = arith.constant 0 : i32
    %491 = vector.broadcast %c0_i32_167 : i32 to vector<1x64xi32>
    %492 = arith.cmpi sge, %490, %491 : vector<1x64xi32>
    %c-1_i32_168 = arith.constant -1 : i32
    %493 = vector.broadcast %c-1_i32_168 : i32 to vector<1x64xi32>
    %494 = arith.addi %5, %493 : vector<1x64xi32>
    %c8_i32_169 = arith.constant 8 : i32
    %495 = vector.broadcast %c8_i32_169 : i32 to vector<1x64xi32>
    %496 = arith.cmpi slt, %494, %495 : vector<1x64xi32>
    %497 = arith.andi %492, %496 : vector<1x64xi1>
    %c-1_i32_170 = arith.constant -1 : i32
    %498 = vector.broadcast %c-1_i32_170 : i32 to vector<1x64xi32>
    %499 = arith.addi %7, %498 : vector<1x64xi32>
    %c0_i32_171 = arith.constant 0 : i32
    %500 = vector.broadcast %c0_i32_171 : i32 to vector<1x64xi32>
    %501 = arith.cmpi sge, %499, %500 : vector<1x64xi32>
    %502 = arith.andi %497, %501 : vector<1x64xi1>
    %c-1_i32_172 = arith.constant -1 : i32
    %503 = vector.broadcast %c-1_i32_172 : i32 to vector<1x64xi32>
    %504 = arith.addi %7, %503 : vector<1x64xi32>
    %c8_i32_173 = arith.constant 8 : i32
    %505 = vector.broadcast %c8_i32_173 : i32 to vector<1x64xi32>
    %506 = arith.cmpi slt, %504, %505 : vector<1x64xi32>
    %507 = arith.andi %502, %506 : vector<1x64xi1>
    %cst_174 = arith.constant 0.000000e+00 : f32
    %508 = vector.shape_cast %507 : vector<1x64xi1> to vector<1x64xi1>
    %509 = vector.broadcast %508 : vector<1x64xi1> to vector<8x64xi1>
    %510 = vector.broadcast %cst_174 : f32 to vector<8x64xf32>
    %511 = arith.select %509, %488, %510 : vector<8x64xi1>, vector<8x64xf32>
    %512 = arith.addf %487, %511 : vector<8x64xf32>
    %c8_i32_175 = arith.constant 8 : i32
    %513 = tpu.dynamic_rotate %487 by %c8_i32_175 dim 1 : vector<8x64xf32>, i32 -> vector<8x64xf32>
    %c-1_i32_176 = arith.constant -1 : i32
    %514 = vector.broadcast %c-1_i32_176 : i32 to vector<1x64xi32>
    %515 = arith.addi %5, %514 : vector<1x64xi32>
    %c0_i32_177 = arith.constant 0 : i32
    %516 = vector.broadcast %c0_i32_177 : i32 to vector<1x64xi32>
    %517 = arith.cmpi sge, %515, %516 : vector<1x64xi32>
    %c-1_i32_178 = arith.constant -1 : i32
    %518 = vector.broadcast %c-1_i32_178 : i32 to vector<1x64xi32>
    %519 = arith.addi %5, %518 : vector<1x64xi32>
    %c8_i32_179 = arith.constant 8 : i32
    %520 = vector.broadcast %c8_i32_179 : i32 to vector<1x64xi32>
    %521 = arith.cmpi slt, %519, %520 : vector<1x64xi32>
    %522 = arith.andi %517, %521 : vector<1x64xi1>
    %c0_i32_180 = arith.constant 0 : i32
    %523 = vector.broadcast %c0_i32_180 : i32 to vector<1x64xi32>
    %524 = arith.addi %7, %523 : vector<1x64xi32>
    %c0_i32_181 = arith.constant 0 : i32
    %525 = vector.broadcast %c0_i32_181 : i32 to vector<1x64xi32>
    %526 = arith.cmpi sge, %524, %525 : vector<1x64xi32>
    %527 = arith.andi %522, %526 : vector<1x64xi1>
    %c0_i32_182 = arith.constant 0 : i32
    %528 = vector.broadcast %c0_i32_182 : i32 to vector<1x64xi32>
    %529 = arith.addi %7, %528 : vector<1x64xi32>
    %c8_i32_183 = arith.constant 8 : i32
    %530 = vector.broadcast %c8_i32_183 : i32 to vector<1x64xi32>
    %531 = arith.cmpi slt, %529, %530 : vector<1x64xi32>
    %532 = arith.andi %527, %531 : vector<1x64xi1>
    %cst_184 = arith.constant 0.000000e+00 : f32
    %533 = vector.shape_cast %532 : vector<1x64xi1> to vector<1x64xi1>
    %534 = vector.broadcast %533 : vector<1x64xi1> to vector<8x64xi1>
    %535 = vector.broadcast %cst_184 : f32 to vector<8x64xf32>
    %536 = arith.select %534, %513, %535 : vector<8x64xi1>, vector<8x64xf32>
    %537 = arith.addf %512, %536 : vector<8x64xf32>
    %c7_i32_185 = arith.constant 7 : i32
    %538 = tpu.dynamic_rotate %487 by %c7_i32_185 dim 1 : vector<8x64xf32>, i32 -> vector<8x64xf32>
    %c-1_i32_186 = arith.constant -1 : i32
    %539 = vector.broadcast %c-1_i32_186 : i32 to vector<1x64xi32>
    %540 = arith.addi %5, %539 : vector<1x64xi32>
    %c0_i32_187 = arith.constant 0 : i32
    %541 = vector.broadcast %c0_i32_187 : i32 to vector<1x64xi32>
    %542 = arith.cmpi sge, %540, %541 : vector<1x64xi32>
    %c-1_i32_188 = arith.constant -1 : i32
    %543 = vector.broadcast %c-1_i32_188 : i32 to vector<1x64xi32>
    %544 = arith.addi %5, %543 : vector<1x64xi32>
    %c8_i32_189 = arith.constant 8 : i32
    %545 = vector.broadcast %c8_i32_189 : i32 to vector<1x64xi32>
    %546 = arith.cmpi slt, %544, %545 : vector<1x64xi32>
    %547 = arith.andi %542, %546 : vector<1x64xi1>
    %c1_i32_190 = arith.constant 1 : i32
    %548 = vector.broadcast %c1_i32_190 : i32 to vector<1x64xi32>
    %549 = arith.addi %7, %548 : vector<1x64xi32>
    %c0_i32_191 = arith.constant 0 : i32
    %550 = vector.broadcast %c0_i32_191 : i32 to vector<1x64xi32>
    %551 = arith.cmpi sge, %549, %550 : vector<1x64xi32>
    %552 = arith.andi %547, %551 : vector<1x64xi1>
    %c1_i32_192 = arith.constant 1 : i32
    %553 = vector.broadcast %c1_i32_192 : i32 to vector<1x64xi32>
    %554 = arith.addi %7, %553 : vector<1x64xi32>
    %c8_i32_193 = arith.constant 8 : i32
    %555 = vector.broadcast %c8_i32_193 : i32 to vector<1x64xi32>
    %556 = arith.cmpi slt, %554, %555 : vector<1x64xi32>
    %557 = arith.andi %552, %556 : vector<1x64xi1>
    %cst_194 = arith.constant 0.000000e+00 : f32
    %558 = vector.shape_cast %557 : vector<1x64xi1> to vector<1x64xi1>
    %559 = vector.broadcast %558 : vector<1x64xi1> to vector<8x64xi1>
    %560 = vector.broadcast %cst_194 : f32 to vector<8x64xf32>
    %561 = arith.select %559, %538, %560 : vector<8x64xi1>, vector<8x64xf32>
    %562 = arith.addf %537, %561 : vector<8x64xf32>
    %c1_i32_195 = arith.constant 1 : i32
    %563 = tpu.dynamic_rotate %487 by %c1_i32_195 dim 1 : vector<8x64xf32>, i32 -> vector<8x64xf32>
    %c0_i32_196 = arith.constant 0 : i32
    %564 = vector.broadcast %c0_i32_196 : i32 to vector<1x64xi32>
    %565 = arith.addi %5, %564 : vector<1x64xi32>
    %c0_i32_197 = arith.constant 0 : i32
    %566 = vector.broadcast %c0_i32_197 : i32 to vector<1x64xi32>
    %567 = arith.cmpi sge, %565, %566 : vector<1x64xi32>
    %c0_i32_198 = arith.constant 0 : i32
    %568 = vector.broadcast %c0_i32_198 : i32 to vector<1x64xi32>
    %569 = arith.addi %5, %568 : vector<1x64xi32>
    %c8_i32_199 = arith.constant 8 : i32
    %570 = vector.broadcast %c8_i32_199 : i32 to vector<1x64xi32>
    %571 = arith.cmpi slt, %569, %570 : vector<1x64xi32>
    %572 = arith.andi %567, %571 : vector<1x64xi1>
    %c-1_i32_200 = arith.constant -1 : i32
    %573 = vector.broadcast %c-1_i32_200 : i32 to vector<1x64xi32>
    %574 = arith.addi %7, %573 : vector<1x64xi32>
    %c0_i32_201 = arith.constant 0 : i32
    %575 = vector.broadcast %c0_i32_201 : i32 to vector<1x64xi32>
    %576 = arith.cmpi sge, %574, %575 : vector<1x64xi32>
    %577 = arith.andi %572, %576 : vector<1x64xi1>
    %c-1_i32_202 = arith.constant -1 : i32
    %578 = vector.broadcast %c-1_i32_202 : i32 to vector<1x64xi32>
    %579 = arith.addi %7, %578 : vector<1x64xi32>
    %c8_i32_203 = arith.constant 8 : i32
    %580 = vector.broadcast %c8_i32_203 : i32 to vector<1x64xi32>
    %581 = arith.cmpi slt, %579, %580 : vector<1x64xi32>
    %582 = arith.andi %577, %581 : vector<1x64xi1>
    %cst_204 = arith.constant 0.000000e+00 : f32
    %583 = vector.shape_cast %582 : vector<1x64xi1> to vector<1x64xi1>
    %584 = vector.broadcast %583 : vector<1x64xi1> to vector<8x64xi1>
    %585 = vector.broadcast %cst_204 : f32 to vector<8x64xf32>
    %586 = arith.select %584, %563, %585 : vector<8x64xi1>, vector<8x64xf32>
    %587 = arith.addf %562, %586 : vector<8x64xf32>
    %c63_i32_205 = arith.constant 63 : i32
    %588 = tpu.dynamic_rotate %487 by %c63_i32_205 dim 1 : vector<8x64xf32>, i32 -> vector<8x64xf32>
    %c0_i32_206 = arith.constant 0 : i32
    %589 = vector.broadcast %c0_i32_206 : i32 to vector<1x64xi32>
    %590 = arith.addi %5, %589 : vector<1x64xi32>
    %c0_i32_207 = arith.constant 0 : i32
    %591 = vector.broadcast %c0_i32_207 : i32 to vector<1x64xi32>
    %592 = arith.cmpi sge, %590, %591 : vector<1x64xi32>
    %c0_i32_208 = arith.constant 0 : i32
    %593 = vector.broadcast %c0_i32_208 : i32 to vector<1x64xi32>
    %594 = arith.addi %5, %593 : vector<1x64xi32>
    %c8_i32_209 = arith.constant 8 : i32
    %595 = vector.broadcast %c8_i32_209 : i32 to vector<1x64xi32>
    %596 = arith.cmpi slt, %594, %595 : vector<1x64xi32>
    %597 = arith.andi %592, %596 : vector<1x64xi1>
    %c1_i32_210 = arith.constant 1 : i32
    %598 = vector.broadcast %c1_i32_210 : i32 to vector<1x64xi32>
    %599 = arith.addi %7, %598 : vector<1x64xi32>
    %c0_i32_211 = arith.constant 0 : i32
    %600 = vector.broadcast %c0_i32_211 : i32 to vector<1x64xi32>
    %601 = arith.cmpi sge, %599, %600 : vector<1x64xi32>
    %602 = arith.andi %597, %601 : vector<1x64xi1>
    %c1_i32_212 = arith.constant 1 : i32
    %603 = vector.broadcast %c1_i32_212 : i32 to vector<1x64xi32>
    %604 = arith.addi %7, %603 : vector<1x64xi32>
    %c8_i32_213 = arith.constant 8 : i32
    %605 = vector.broadcast %c8_i32_213 : i32 to vector<1x64xi32>
    %606 = arith.cmpi slt, %604, %605 : vector<1x64xi32>
    %607 = arith.andi %602, %606 : vector<1x64xi1>
    %cst_214 = arith.constant 0.000000e+00 : f32
    %608 = vector.shape_cast %607 : vector<1x64xi1> to vector<1x64xi1>
    %609 = vector.broadcast %608 : vector<1x64xi1> to vector<8x64xi1>
    %610 = vector.broadcast %cst_214 : f32 to vector<8x64xf32>
    %611 = arith.select %609, %588, %610 : vector<8x64xi1>, vector<8x64xf32>
    %612 = arith.addf %587, %611 : vector<8x64xf32>
    %c57_i32_215 = arith.constant 57 : i32
    %613 = tpu.dynamic_rotate %487 by %c57_i32_215 dim 1 : vector<8x64xf32>, i32 -> vector<8x64xf32>
    %c1_i32_216 = arith.constant 1 : i32
    %614 = vector.broadcast %c1_i32_216 : i32 to vector<1x64xi32>
    %615 = arith.addi %5, %614 : vector<1x64xi32>
    %c0_i32_217 = arith.constant 0 : i32
    %616 = vector.broadcast %c0_i32_217 : i32 to vector<1x64xi32>
    %617 = arith.cmpi sge, %615, %616 : vector<1x64xi32>
    %c1_i32_218 = arith.constant 1 : i32
    %618 = vector.broadcast %c1_i32_218 : i32 to vector<1x64xi32>
    %619 = arith.addi %5, %618 : vector<1x64xi32>
    %c8_i32_219 = arith.constant 8 : i32
    %620 = vector.broadcast %c8_i32_219 : i32 to vector<1x64xi32>
    %621 = arith.cmpi slt, %619, %620 : vector<1x64xi32>
    %622 = arith.andi %617, %621 : vector<1x64xi1>
    %c-1_i32_220 = arith.constant -1 : i32
    %623 = vector.broadcast %c-1_i32_220 : i32 to vector<1x64xi32>
    %624 = arith.addi %7, %623 : vector<1x64xi32>
    %c0_i32_221 = arith.constant 0 : i32
    %625 = vector.broadcast %c0_i32_221 : i32 to vector<1x64xi32>
    %626 = arith.cmpi sge, %624, %625 : vector<1x64xi32>
    %627 = arith.andi %622, %626 : vector<1x64xi1>
    %c-1_i32_222 = arith.constant -1 : i32
    %628 = vector.broadcast %c-1_i32_222 : i32 to vector<1x64xi32>
    %629 = arith.addi %7, %628 : vector<1x64xi32>
    %c8_i32_223 = arith.constant 8 : i32
    %630 = vector.broadcast %c8_i32_223 : i32 to vector<1x64xi32>
    %631 = arith.cmpi slt, %629, %630 : vector<1x64xi32>
    %632 = arith.andi %627, %631 : vector<1x64xi1>
    %cst_224 = arith.constant 0.000000e+00 : f32
    %633 = vector.shape_cast %632 : vector<1x64xi1> to vector<1x64xi1>
    %634 = vector.broadcast %633 : vector<1x64xi1> to vector<8x64xi1>
    %635 = vector.broadcast %cst_224 : f32 to vector<8x64xf32>
    %636 = arith.select %634, %613, %635 : vector<8x64xi1>, vector<8x64xf32>
    %637 = arith.addf %612, %636 : vector<8x64xf32>
    %c56_i32_225 = arith.constant 56 : i32
    %638 = tpu.dynamic_rotate %487 by %c56_i32_225 dim 1 : vector<8x64xf32>, i32 -> vector<8x64xf32>
    %c1_i32_226 = arith.constant 1 : i32
    %639 = vector.broadcast %c1_i32_226 : i32 to vector<1x64xi32>
    %640 = arith.addi %5, %639 : vector<1x64xi32>
    %c0_i32_227 = arith.constant 0 : i32
    %641 = vector.broadcast %c0_i32_227 : i32 to vector<1x64xi32>
    %642 = arith.cmpi sge, %640, %641 : vector<1x64xi32>
    %c1_i32_228 = arith.constant 1 : i32
    %643 = vector.broadcast %c1_i32_228 : i32 to vector<1x64xi32>
    %644 = arith.addi %5, %643 : vector<1x64xi32>
    %c8_i32_229 = arith.constant 8 : i32
    %645 = vector.broadcast %c8_i32_229 : i32 to vector<1x64xi32>
    %646 = arith.cmpi slt, %644, %645 : vector<1x64xi32>
    %647 = arith.andi %642, %646 : vector<1x64xi1>
    %c0_i32_230 = arith.constant 0 : i32
    %648 = vector.broadcast %c0_i32_230 : i32 to vector<1x64xi32>
    %649 = arith.addi %7, %648 : vector<1x64xi32>
    %c0_i32_231 = arith.constant 0 : i32
    %650 = vector.broadcast %c0_i32_231 : i32 to vector<1x64xi32>
    %651 = arith.cmpi sge, %649, %650 : vector<1x64xi32>
    %652 = arith.andi %647, %651 : vector<1x64xi1>
    %c0_i32_232 = arith.constant 0 : i32
    %653 = vector.broadcast %c0_i32_232 : i32 to vector<1x64xi32>
    %654 = arith.addi %7, %653 : vector<1x64xi32>
    %c8_i32_233 = arith.constant 8 : i32
    %655 = vector.broadcast %c8_i32_233 : i32 to vector<1x64xi32>
    %656 = arith.cmpi slt, %654, %655 : vector<1x64xi32>
    %657 = arith.andi %652, %656 : vector<1x64xi1>
    %cst_234 = arith.constant 0.000000e+00 : f32
    %658 = vector.shape_cast %657 : vector<1x64xi1> to vector<1x64xi1>
    %659 = vector.broadcast %658 : vector<1x64xi1> to vector<8x64xi1>
    %660 = vector.broadcast %cst_234 : f32 to vector<8x64xf32>
    %661 = arith.select %659, %638, %660 : vector<8x64xi1>, vector<8x64xf32>
    %662 = arith.addf %637, %661 : vector<8x64xf32>
    %c55_i32_235 = arith.constant 55 : i32
    %663 = tpu.dynamic_rotate %487 by %c55_i32_235 dim 1 : vector<8x64xf32>, i32 -> vector<8x64xf32>
    %c1_i32_236 = arith.constant 1 : i32
    %664 = vector.broadcast %c1_i32_236 : i32 to vector<1x64xi32>
    %665 = arith.addi %5, %664 : vector<1x64xi32>
    %c0_i32_237 = arith.constant 0 : i32
    %666 = vector.broadcast %c0_i32_237 : i32 to vector<1x64xi32>
    %667 = arith.cmpi sge, %665, %666 : vector<1x64xi32>
    %c1_i32_238 = arith.constant 1 : i32
    %668 = vector.broadcast %c1_i32_238 : i32 to vector<1x64xi32>
    %669 = arith.addi %5, %668 : vector<1x64xi32>
    %c8_i32_239 = arith.constant 8 : i32
    %670 = vector.broadcast %c8_i32_239 : i32 to vector<1x64xi32>
    %671 = arith.cmpi slt, %669, %670 : vector<1x64xi32>
    %672 = arith.andi %667, %671 : vector<1x64xi1>
    %c1_i32_240 = arith.constant 1 : i32
    %673 = vector.broadcast %c1_i32_240 : i32 to vector<1x64xi32>
    %674 = arith.addi %7, %673 : vector<1x64xi32>
    %c0_i32_241 = arith.constant 0 : i32
    %675 = vector.broadcast %c0_i32_241 : i32 to vector<1x64xi32>
    %676 = arith.cmpi sge, %674, %675 : vector<1x64xi32>
    %677 = arith.andi %672, %676 : vector<1x64xi1>
    %c1_i32_242 = arith.constant 1 : i32
    %678 = vector.broadcast %c1_i32_242 : i32 to vector<1x64xi32>
    %679 = arith.addi %7, %678 : vector<1x64xi32>
    %c8_i32_243 = arith.constant 8 : i32
    %680 = vector.broadcast %c8_i32_243 : i32 to vector<1x64xi32>
    %681 = arith.cmpi slt, %679, %680 : vector<1x64xi32>
    %682 = arith.andi %677, %681 : vector<1x64xi1>
    %cst_244 = arith.constant 0.000000e+00 : f32
    %683 = vector.shape_cast %682 : vector<1x64xi1> to vector<1x64xi1>
    %684 = vector.broadcast %683 : vector<1x64xi1> to vector<8x64xi1>
    %685 = vector.broadcast %cst_244 : f32 to vector<8x64xf32>
    %686 = arith.select %684, %663, %685 : vector<8x64xi1>, vector<8x64xf32>
    %687 = arith.addf %662, %686 : vector<8x64xf32>
    %688 = vector.broadcast %247 : vector<1x64xf32> to vector<8x64xf32>
    %689 = arith.mulf %687, %688 : vector<8x64xf32>
    %690 = vector.broadcast %23 : vector<8x1xf32> to vector<8x64xf32>
    %691 = arith.addf %689, %690 : vector<8x64xf32>
    %cst_245 = arith.constant dense<0.000000e+00> : vector<64xf32>
    %692 = vector.multi_reduction <add>, %691, %cst_245 [0] : vector<8x64xf32> to vector<64xf32>
    %693 = vector.shape_cast %692 : vector<64xf32> to vector<1x64xf32>
    %cst_246 = arith.constant 1.250000e-01 : f32
    %694 = vector.broadcast %cst_246 : f32 to vector<1x64xf32>
    %695 = arith.mulf %693, %694 : vector<1x64xf32>
    %696 = arith.mulf %691, %691 : vector<8x64xf32>
    %cst_247 = arith.constant dense<0.000000e+00> : vector<64xf32>
    %697 = vector.multi_reduction <add>, %696, %cst_247 [0] : vector<8x64xf32> to vector<64xf32>
    %698 = vector.shape_cast %697 : vector<64xf32> to vector<1x64xf32>
    %cst_248 = arith.constant 1.250000e-01 : f32
    %699 = vector.broadcast %cst_248 : f32 to vector<1x64xf32>
    %700 = arith.mulf %698, %699 : vector<1x64xf32>
    %701 = arith.mulf %695, %695 : vector<1x64xf32>
    %702 = arith.subf %700, %701 : vector<1x64xf32>
    %cst_249 = arith.constant 0.000000e+00 : f32
    %703 = vector.broadcast %cst_249 : f32 to vector<1x64xf32>
    %704 = arith.maximumf %702, %703 : vector<1x64xf32>
    %705 = vector.broadcast %695 : vector<1x64xf32> to vector<8x64xf32>
    %706 = arith.subf %691, %705 : vector<8x64xf32>
    %cst_250 = arith.constant 9.99999974E-6 : f32
    %707 = vector.broadcast %cst_250 : f32 to vector<1x64xf32>
    %708 = arith.addf %704, %707 : vector<1x64xf32>
    %709 = math.rsqrt %708 : vector<1x64xf32>
    %710 = vector.broadcast %709 : vector<1x64xf32> to vector<8x64xf32>
    %711 = arith.mulf %706, %710 : vector<8x64xf32>
    %712 = vector.broadcast %24 : vector<8x1xf32> to vector<8x64xf32>
    %713 = arith.mulf %711, %712 : vector<8x64xf32>
    %714 = vector.broadcast %25 : vector<8x1xf32> to vector<8x64xf32>
    %715 = arith.addf %713, %714 : vector<8x64xf32>
    %cst_251 = arith.constant 0.000000e+00 : f32
    %716 = vector.broadcast %cst_251 : f32 to vector<8x64xf32>
    %717 = arith.cmpf ogt, %715, %716 : vector<8x64xf32>
    %718 = math.exp %715 : vector<8x64xf32>
    %cst_252 = arith.constant 1.000000e+00 : f32
    %719 = vector.broadcast %cst_252 : f32 to vector<8x64xf32>
    %720 = arith.subf %718, %719 : vector<8x64xf32>
    %721 = arith.select %717, %715, %720 : vector<8x64xi1>, vector<8x64xf32>
    %cst_253 = arith.constant dense<0.000000e+00> : vector<8x64xf32>
    %722 = tpu.matmul %12, %222, %cst_253 {dimension_numbers = #tpu.dot_dimension_numbers<[1], [0], [0], [1], [0, 0, 1, 1], [], []>} : vector<8x8xf32>, vector<8x64xf32>, vector<8x64xf32> -> vector<8x64xf32>
    %cst_254 = arith.constant dense<0.000000e+00> : vector<8x64xf32>
    %723 = tpu.matmul %13, %721, %cst_254 {dimension_numbers = #tpu.dot_dimension_numbers<[1], [0], [0], [1], [0, 0, 1, 1], [], []>} : vector<8x8xf32>, vector<8x64xf32>, vector<8x64xf32> -> vector<8x64xf32>
    %724 = arith.addf %722, %723 : vector<8x64xf32>
    %725 = vector.broadcast %26 : vector<8x1xf32> to vector<8x64xf32>
    %726 = arith.addf %724, %725 : vector<8x64xf32>
    %cst_255 = arith.constant dense<0.000000e+00> : vector<8xf32>
    %727 = vector.multi_reduction <add>, %726, %cst_255 [1] : vector<8x64xf32> to vector<8xf32>
    %728 = vector.shape_cast %727 : vector<8xf32> to vector<8x1xf32>
    %cst_256 = arith.constant 1.562500e-02 : f32
    %729 = vector.broadcast %cst_256 : f32 to vector<8x1xf32>
    %730 = arith.mulf %728, %729 : vector<8x1xf32>
    %731 = arith.mulf %726, %726 : vector<8x64xf32>
    %cst_257 = arith.constant dense<0.000000e+00> : vector<8xf32>
    %732 = vector.multi_reduction <add>, %731, %cst_257 [1] : vector<8x64xf32> to vector<8xf32>
    %733 = vector.shape_cast %732 : vector<8xf32> to vector<8x1xf32>
    %cst_258 = arith.constant 1.562500e-02 : f32
    %734 = vector.broadcast %cst_258 : f32 to vector<8x1xf32>
    %735 = arith.mulf %733, %734 : vector<8x1xf32>
    %736 = arith.mulf %730, %730 : vector<8x1xf32>
    %737 = arith.subf %735, %736 : vector<8x1xf32>
    %cst_259 = arith.constant 0.000000e+00 : f32
    %738 = vector.broadcast %cst_259 : f32 to vector<8x1xf32>
    %739 = arith.maximumf %737, %738 : vector<8x1xf32>
    %740 = vector.broadcast %730 : vector<8x1xf32> to vector<8x64xf32>
    %741 = arith.subf %726, %740 : vector<8x64xf32>
    %cst_260 = arith.constant 9.99999974E-6 : f32
    %742 = vector.broadcast %cst_260 : f32 to vector<8x1xf32>
    %743 = arith.addf %739, %742 : vector<8x1xf32>
    %744 = math.rsqrt %743 : vector<8x1xf32>
    %745 = vector.broadcast %744 : vector<8x1xf32> to vector<8x64xf32>
    %746 = arith.mulf %741, %745 : vector<8x64xf32>
    %cst_261 = arith.constant 0.000000e+00 : f32
    %747 = vector.broadcast %cst_261 : f32 to vector<8x64xf32>
    %748 = arith.cmpf ogt, %746, %747 : vector<8x64xf32>
    %749 = math.exp %746 : vector<8x64xf32>
    %cst_262 = arith.constant 1.000000e+00 : f32
    %750 = vector.broadcast %cst_262 : f32 to vector<8x64xf32>
    %751 = arith.subf %749, %750 : vector<8x64xf32>
    %752 = arith.select %748, %746, %751 : vector<8x64xi1>, vector<8x64xf32>
    %c0_263 = arith.constant 0 : index
    %c0_264 = arith.constant 0 : index
    %c0_265 = arith.constant 0 : index
    %753 = vector.load %arg4[%c0_263, %c0_264, %c0_265] : memref<1x8x64xf32, #tpu.memory_space<vmem>>, vector<1x8x64xf32>
    %754 = vector.shape_cast %753 : vector<1x8x64xf32> to vector<8x64xf32>
    %755 = vector.shape_cast %752 : vector<8x64xf32> to vector<1x8x64xf32>
    tpu.vector_store %arg4[%c0_263, %c0_264, %c0_265], %755 {strides = array<i32>} : memref<1x8x64xf32, #tpu.memory_space<vmem>>, vector<1x8x64xf32>,
    return
  }
  func.func @transform_0(%arg0: i32) -> (i32, i32, i32) {
    %c0_i32 = arith.constant 0 : i32
    %c0_i32_0 = arith.constant 0 : i32
    %c0_i32_1 = arith.constant 0 : i32
    return %arg0, %c0_i32, %c0_i32_0 : i32, i32, i32
  }
  func.func @transform_1(%arg0: i32) -> (i32, i32) {
    %c0_i32 = arith.constant 0 : i32
    %c0_i32_0 = arith.constant 0 : i32
    %c0_i32_1 = arith.constant 0 : i32
    return %c0_i32, %c0_i32_0 : i32, i32
  }
  func.func @transform_2(%arg0: i32) -> (i32, i32) {
    %c0_i32 = arith.constant 0 : i32
    %c0_i32_0 = arith.constant 0 : i32
    %c0_i32_1 = arith.constant 0 : i32
    return %c0_i32, %c0_i32_0 : i32, i32
  }
  func.func @transform_3(%arg0: i32) -> (i32, i32, i32) {
    %c0_i32 = arith.constant 0 : i32
    %c0_i32_0 = arith.constant 0 : i32
    %c0_i32_1 = arith.constant 0 : i32
    return %arg0, %c0_i32, %c0_i32_0 : i32, i32, i32
  }
}

</mosaic_0001>

<bundles_post_ra>
// kernel: ginka_encoder_forward.1
= control target key start
LH: loop header
LB: loop body
LE: loop exit
PB: predicated region body
PF: predicated region fallthrough
CT: control target
= control target key end

     0   :  { %s6107_s12 = smov 0   ;;  %s9320_s0 = inlined_call_operand.vmem [shape: f32[2,4,256], index: 0, kind: input, shape index: {}]   ;;  %s9321_s1 = inlined_call_operand.vmem [shape: f32[72,128], index: 1, kind: input, shape index: {}]   ;;  %s9322_s2 = inlined_call_operand.vmem [shape: f32[16,128], index: 2, kind: input, shape index: {}]   ;;  %s9323_s3 = inlined_call_operand.vmem [shape: f32[2,8,64], index: 3, kind: output, shape index: {}]  }
   0x1 LB: > { %s5698_s13 = sadd.s32 4294967295, %s5999_s12   ;;  %p5702_p0 = scmp.ge.s32.totalorder %s5999_s12, 1  ;;  %s5999_s12 = sphi %s6107_s12, %s13_s12  }
   0x2   : > { %p137_p1 = scmp.lt.s32.totalorder %s5999_s12, 3 }
   0x4   : > { %p138_p2 = pnand %p5702_p0, %p137_p1 }
   0x6   : > { %141 = sbr.rel (%p138_p2) target bundleno = 4720 (0x1270), region = 32 }
   0xd   : > { %v169_v0 = vlaneseq  ;;  %v6001_v1 = vmov 1983009808   ;;  %v6002_v3 = vmov 1934713408   ;;  %v9368_v5 = vmov 0   ;;  %p160_p3 = scmp.lt.s32.totalorder %s5698_s13, 1 }
   0xe   : > { %v174_v2 = vunpack.c.l.s4 %v6001_v1  ;;  %v189_v4 = vunpack.c.l.s4 %v6002_v3  ;;  %5912 = vset.pattern.permute.xlu1 %v9368_v5  ;;  %s9334_s18 = smov 64   ;;  %s9361_s19 = smov 16   ;;  %vm9568_vm0 = vcmask 130048   ;;  %vm300_vm1 = vcmask 261120  }
   0xf   : > { %v6116_v6 = vshrl.u32 %v169_v0, 7  ;;  %v6118_v7 = vand.u32 127, %v169_v0  ;;  %s10109_s13 = smov (!%p160_p3, %s5698_s13), 1  ;;  %s9343_s20 = smov 48   ;;  %vm302_vm2 = vcmask 392192   ;;  %vm9569_vm3 = vcmask 523264  }
  0x10   : > { %v175_v8 = vunpack.c.0.s8 %v174_v2  ;;  %v190_v9 = vunpack.c.0.s8 %v189_v4  ;;  %s9324_s14 = sshll.u32 %s10109_s13, 3  ;;  %s9351_s21 = smov 32   ;;  %vm306_vm4 = vcmask 654336   ;;  %vm308_vm5 = vcmask 785408  }
  0x11   : > { %v321_v10 = vcombine.high %v6118_v7, %v9368_v5  ;;  %s164_s17 = scalar_lea.vmem %s9320_s0, %s9324_s14  ;;  %v171_v26 = vadd.s32 8, %v6116_v6  ;;  %s9340_s22 = smov 96   ;;  %v172_v38 = vcombine.high %v6116_v6, %v9368_v5  ;;  %vm310_vm6 = vcmask 916480  }
  0x12   : > { %v6123_v11 = vsub.s32 %v175_v8, %v6116_v6  ;;  %v6126_v12 = vsub.s32 %v190_v9, %v6116_v6  ;;  %v6156_v21 = vld [vmem:[%s164_s17] sm:$0xff]  ;;  %s9327_s23 = smov 80   ;;  %s6010_s24 = smov 1   ;;  %v6281_v3 = vsub.s32 0, %v6116_v6  ;;  %vm458_vm7 = vcmp.lt.s32.totalorder %v6118_v7, 1 }
  0x13   : > { %v6171_v24 = vcombine.high %v6156_v21, %v6156_v21  ;;  %s6011_s25 = smov 112   ;;  %s9325_s26 = smov 127   ;;  %v221_v40 = vcombine.high %v171_v26, %v9368_v5  ;;  %vm474_vm10 = vcmp.lt.s32.totalorder %v6118_v7, 127  ;;  %vm490_vm15 = vcmp.lt.s32.totalorder %v6118_v7, 16 }
  0x14   : > { %9572 = vst [vmem:[#allocation2_spill] sm:$0xff] %v6123_v11  ;;  %9573 = vst [vmem:[#allocation3_spill] sm:$0xff] %v6126_v12  ;;  %v328_v13 = vrot.slane %v6118_v7, %v6123_v11  ;;  %v335_v14 = vrot.slane %v321_v10, %v6123_v11  ;;  %v179_v28 = vrot.slane %v6116_v6, %v6123_v11  ;;  %s9349_s15 = smov 108   ;;  %s6018_s16 = smov 126  }
  0x15   : > { %v6184_v27 = vpack.i.bf16 %v6171_v24, %v6156_v21  ;;  %v228_v30 = vrot.slane %v171_v26, %v6123_v11  ;;  %v186_v42 = vrot.slane %v172_v38, %v6123_v11  ;;  %v235_v44 = vrot.slane %v221_v40, %v6123_v11  ;;  %9590 = vst [vmem:[#allocation20_spill] sm:$0xff] %v6281_v3  ;;  %s9345_s17 = smov 104   ;;  %s9342_s27 = smov 100  }
  0x16   : > { %v6135_v15 = vrot.slane %v328_v13, %v6126_v12  ;;  %v6138_v16 = vrot.slane %v335_v14, %v6126_v12  ;;  %v336_v17 = vcombine.high %v328_v13, %v9368_v5  ;;  %v351_v20 = vcombine.high %v335_v14, %v9368_v5  ;;  %s6022_s28 = smov 122   ;;  %s6023_s29 = smov 120  }
  0x17   : > { %v6198_v31 = vrot.slane %v179_v28, %v6126_v12  ;;  %v6203_v32 = vrot.slane %v228_v30, %v6126_v12  ;;  %v187_v34 = vcombine.high %v179_v28, %v9368_v5  ;;  %v236_v36 = vcombine.high %v228_v30, %v9368_v5  ;;  %s9336_s30 = smov 92   ;;  %s6025_s4 = smov 118  }
  0x18   : > { %9574 = vst [vmem:[#allocation4_spill] sm:$0xff] %v6135_v15  ;;  %9575 = vst [vmem:[#allocation5_spill] sm:$0xff] %v6138_v16  ;;  %v6148_v18 = vcombine.high %v6135_v15, %v9368_v5  ;;  %376 = vrot.lane.b32.xlu1 %v6138_v16, %s9334_s18  ;;  %v6153_v19 = vrot.slane %v336_v17, %v6126_v12  ;;  %v6167_v23 = vrot.slane %v351_v20, %v6126_v12  ;;  %v6014_v40 = vmov 1   ;;  %s9333_s5 = smov 88   ;;  %s6027_s6 = smov 116  }
  0x19   : > { %v6177_v25 = vcombine.high %v6138_v16, %v9368_v5  ;;  %9582 = vst [vmem:[#allocation12_spill] sm:$0xff] %v6198_v31  ;;  %v6209_v33 = vcombine.high %v6198_v31, %v9368_v5  ;;  %v266_v35 = vcombine.high %v6203_v32, %v9368_v5  ;;  %v6220_v37 = vrot.slane %v187_v34, %v6126_v12  ;;  %s9331_s7 = smov 84   ;;  %s6029_s8 = smov 114  }
  0x1a   : > { %9576 = vst [vmem:[#allocation6_spill] sm:$0xff] %v6148_v18  ;;  %9577 = vst [vmem:[#allocation7_spill] sm:$0xff] %v6153_v19  ;;  %370 = vrot.lane.b32.xlu0 %v6148_v18, %s9361_s19  ;;  %v6162_v22 = vcombine.high %v6153_v19, %v9368_v5  ;;  %v6192_v29 = vcombine.high %v6167_v23, %v9368_v5  ;;  %v250_v39 = vrot.slane %v236_v36, %v6126_v12  ;;  %s9328_s9 = smov 76   ;;  %s6031_s10 = smov 110  }
  0x1b   : > { %9579 = vst [vmem:[#allocation9_spill] sm:$0xff] %v6167_v23  ;;  %9580 = vst [vmem:[#allocation10_spill] sm:$0xff] %v6177_v25  ;;  %v6231_v41 = vcombine.high %v6220_v37, %v9368_v5  ;;  %v6240_v45 = vrot.slane %v186_v42, %v6126_v12  ;;  %v258_v46 = vrot.slane %v235_v44, %v6126_v12  ;;  %5943 = vset.pattern.permute.xlu0 %v6014_v40  ;;  %s9329_s11 = smov 72   ;;  %s6033_s14 = smov 106  }
  0x1c   : > { %9578 = vst [vmem:[#allocation8_spill] sm:$0xff] %v6162_v22  ;;  %374 = vrot.lane.b32.xlu1 %v6162_v22, %s9343_s20  ;;  %9581 = vst [vmem:[#allocation11_spill] sm:$0xff] %v6192_v29  ;;  %v267_v43 = vcombine.high %v250_v39, %v9368_v5  ;;  %v202_v48 = vcombine.high %v186_v42, %v9368_v5  ;;  %v251_v50 = vcombine.high %v235_v44, %v9368_v5 }
  0x1d   : > { %9583 = vst [vmem:[#allocation13_spill] sm:$0xff] %v6209_v33  ;;  %9584 = vst [vmem:[#allocation14_spill] sm:$0xff] %v6220_v37  ;;  %v6248_v47 = vcombine.high %v6240_v45, %v9368_v5  ;;  %v268_v49 = vcombine.high %v258_v46, %v9368_v5 }
  0x1e   : > { %372 = vrot.lane.b32.xlu0 %v6153_v19, %s9351_s21  ;;  %9585 = vst [vmem:[#allocation15_spill] sm:$0xff] %v6231_v41  ;;  %9586 = vst [vmem:[#allocation16_spill] sm:$0xff] %v6240_v45  ;;  %v6257_v51 = vrot.slane %v202_v48, %v6126_v12  ;;  %v265_v52 = vrot.slane %v251_v50, %v6126_v12 }
  0x1f   : > { %9587 = vst [vmem:[#allocation17_spill] sm:$0xff] %v6248_v47 }
  0x20   : > { %380 = vrot.lane.b32.xlu1 %v6167_v23, %s9340_s22  ;;  %9588 = vst [vmem:[#allocation18_spill] sm:$0xff] %v6257_v51  ;;  %v6265_v53 = vcombine.high %v6257_v51, %v9368_v5  ;;  %v269_v54 = vcombine.high %v265_v52, %v9368_v5 }
  0x22   : > { %378 = vrot.lane.b32.xlu0 %v6177_v25, %s9327_s23  ;;  %9589 = vst [vmem:[#allocation19_spill] sm:$0xff] %v6265_v53 }
  0x24   : > { %5883 = vrot.lane.b32.xlu1 %v6184_v27, %s6010_s24 }
  0x26   : > { %382 = vrot.lane.b32.xlu0 %v6192_v29, %s6011_s25 }
  0x28   : > { %472 = vrot.lane.b32.xlu1 %v6171_v24, %s9325_s26 }
  0x2a   : > { %470 = vrot.lane.b32.xlu0 %v6156_v21, %s9325_s26 }
  0x2c   : > { %270 = vrot.lane.b32.xlu1 %v6209_v33, %s9361_s19 }
  0x2e   : > { %284 = vrot.lane.b32.xlu0 %v266_v35, %s9361_s19 }
  0x30   : > { %272 = vrot.lane.b32.xlu1 %v6220_v37, %s9351_s21 }
  0x32   : > { %286 = vrot.lane.b32.xlu0 %v250_v39, %s9351_s21 }
  0x34   : > { %274 = vrot.lane.b32.xlu1 %v6231_v41, %s9343_s20 }
  0x36   : > { %288 = vrot.lane.b32.xlu0 %v267_v43, %s9343_s20 }
  0x38   : > { %276 = vrot.lane.b32.xlu1 %v6240_v45, %s9334_s18 }
  0x3a   : > { %290 = vrot.lane.b32.xlu0 %v258_v46, %s9334_s18 }
  0x3c   : > { %278 = vrot.lane.b32.xlu1 %v6248_v47, %s9327_s23 }
  0x3e   : > { %292 = vrot.lane.b32.xlu0 %v268_v49, %s9327_s23 }
  0x40   : > { %280 = vrot.lane.b32.xlu1 %v6257_v51, %s9340_s22 }
  0x42   : > { %294 = vrot.lane.b32.xlu0 %v265_v52, %s9340_s22 }
  0x44   : > { %282 = vrot.lane.b32.xlu1 %v6265_v53, %s6011_s25 }
  0x46   : > { %296 = vrot.lane.b32.xlu0 %v269_v54, %s6011_s25 }
  0x4a   : > { %5888 = vrot.lane.b32.xlu0 %v6184_v27, %s9361_s19 }
  0x8a   : > { %v377_v55 = vpop.permute.xlu1 %376 }
  0x8c   : > { %v371_v56 = vpop.permute.xlu0 %370 }
  0x8d   : > { %v384_v58 = vsel %vm9568_vm0, %v6135_v15, %v371_v56 }
  0x8e   : > { %v375_v57 = vpop.permute.xlu1 %374 }
  0x90   : > { %v373_v59 = vpop.permute.xlu0 %372 }
  0x91   : > { %v385_v60 = vsel %vm300_vm1, %v384_v58, %v373_v59 }
  0x92   : > { %v386_v61 = vsel %vm302_vm2, %v385_v60, %v375_v57  ;;  %v381_v62 = vpop.permute.xlu1 %380 }
  0x93   : > { %v387_v63 = vsel %vm9569_vm3, %v386_v61, %v377_v55 }
  0x94   : > { %v379_v0 = vpop.permute.xlu0 %378 }
  0x95   : > { %v388_v1 = vsel %vm306_vm4, %v387_v63, %v379_v0  ;;  %v6352_v63 = vld [vmem:[%s9322_s2] sm:$0xff] }
  0x96   : > { %v5884_v2 = vpop.permute.xlu1 %5883  ;;  %v389_v4 = vsel %vm308_vm5, %v388_v1, %v381_v62  ;;  %v9370_v62 = vmov 0.0  }
  0x97   : > { %v5886_v9 = vunpack.i.h.bf16 %v5884_v2  ;;  %v5885_v10 = vunpack.i.l.bf16 %v5884_v2  ;;  %676 = vmatprep.mubr.f32.mxu0 %v9370_v62  ;;  %848 = vmatprep.mubr.f32.mxu1 %v9370_v62 }
  0x98   : > { %v383_v8 = vpop.permute.xlu0 %382 }
  0x99   : > { %v390_v13 = vsel %vm310_vm6, %v389_v4, %v383_v8  ;;  %v459_v30 = vsel %vm458_vm7, %v5885_v10, %v5886_v9  ;;  %v460_v34 = vsel %vm458_vm7, %v5886_v9, %v5885_v10 }
  0x9a   : > { %vm461_vm8 = vcmp.eq.s32.totalorder %v390_v13, 0  ;;  %vm477_vm9 = vcmp.eq.s32.totalorder %v390_v13, 15  ;;  %v473_v14 = vpop.permute.xlu1 %472 }
  0x9b   : > { %v462_v17 = vsel %vm461_vm8, 1, %v9368_v5  ;;  %v478_v20 = vsel %vm477_vm9, 1, %v9368_v5  ;;  %vm588_vm9 = vcmask 1043456  }
  0x9c   : > { %v466_v26 = vrot.slane %v462_v17, %v6281_v3  ;;  %v482_v28 = vrot.slane %v478_v20, %v6281_v3  ;;  %v471_v35 = vpop.permute.xlu0 %470 }
  0x9d   : > { %v475_v36 = vsel %vm474_vm10, %v471_v35, %v473_v14  ;;  %v476_v38 = vsel %vm474_vm10, %v473_v14, %v471_v35 }
  0x9e   : > { %vm6299_vm11 = vcmp.eq.s32.totalorder %v466_v26, 1  ;;  %vm6303_vm12 = vcmp.eq.s32.totalorder %v482_v28, 1  ;;  %v271_v42 = vpop.permute.xlu1 %270 }
  0x9f   : > { %v6310_v43 = vsel %vm6303_vm12, %v6156_v21, %v475_v36  ;;  %v6315_v44 = vsel %vm6303_vm12, %v6171_v24, %v476_v38  ;;  %v6320_v46 = vsel %vm6299_vm11, %v6156_v21, %v460_v34  ;;  %v6325_v48 = vsel %vm6299_vm11, %v6171_v24, %v459_v30 }
  0xa0   : > { %v5902_v49 = vpack.i.bf16 %v6315_v44, %v6310_v43  ;;  %v5892_v50 = vpack.i.bf16 %v6325_v48, %v6320_v46  ;;  %v285_v52 = vpop.permute.xlu0 %284  ;;  %v299_v55 = vsel %vm9568_vm0, %v6198_v31, %v271_v42 }
  0xa1   : > { %v312_v57 = vsel %vm9568_vm0, %v6203_v32, %v285_v52 }
  0xa2   : > { %5903 = vrot.lane.b32.xlu0 %v5902_v49, %s9361_s19  ;;  %5893 = vrot.lane.b32.xlu1 %v5892_v50, %s9361_s19  ;;  %v273_v54 = vpop.permute.xlu1 %272 }
  0xa3   : > { %v301_v59 = vsel %vm300_vm1, %v299_v55, %v273_v54 }
  0xa4   : > { %v287_v56 = vpop.permute.xlu0 %286 }
  0xa5   : > { %v313_v61 = vsel %vm300_vm1, %v312_v57, %v287_v56 }
  0xa6   : > { %5908 = vrot.lane.b32.xlu0 %v5892_v50, %s6011_s25  ;;  %5898 = vrot.lane.b32.xlu1 %v6184_v27, %s6011_s25  ;;  %v275_v58 = vpop.permute.xlu1 %274 }
  0xa7   : > { %v303_v27 = vsel %vm302_vm2, %v301_v59, %v275_v58 }
  0xa8   : > { %v289_v60 = vpop.permute.xlu0 %288 }
  0xa9   : > { %v314_v0 = vsel %vm302_vm2, %v313_v61, %v289_v60 }
  0xaa   : > { %558 = vrot.lane.b32.xlu0 %v6315_v44, %s6011_s25  ;;  %556 = vrot.lane.b32.xlu1 %v6310_v43, %s6011_s25  ;;  %v277_v32 = vpop.permute.xlu1 %276 }
  0xab   : > { %v305_v2 = vsel %vm9569_vm3, %v303_v27, %v277_v32 }
  0xac   : > { %v291_v1 = vpop.permute.xlu0 %290 }
  0xad   : > { %v315_v8 = vsel %vm9569_vm3, %v314_v0, %v291_v1  ;;  %v573_v1 = vrot.slane %v6325_v48, 4 }
  0xae   : > { %v279_v4 = vpop.permute.xlu1 %278  ;;  %599 = vperm.xlu1 %5912, %v6352_v63  }
  0xaf   : > { %v307_v10 = vsel %vm306_vm4, %v305_v2, %v279_v4  ;;  %v572_v2 = vrot.slane %v6320_v46, 4  ;;  %v579_v4 = vrot.slane %v6315_v44, 4 }
  0xb0   : > { %v293_v9 = vpop.permute.xlu0 %292 }
  0xb1   : > { %v316_v13 = vsel %vm306_vm4, %v315_v8, %v293_v9 }
  0xb2   : > { %v281_v14 = vpop.permute.xlu1 %280 }
  0xb3   : > { %v309_v17 = vsel %vm308_vm5, %v307_v10, %v281_v14 }
  0xb4   : > { %v295_v20 = vpop.permute.xlu0 %294 }
  0xb5   : > { %v317_v26 = vsel %vm308_vm5, %v316_v13, %v295_v20 }
  0xb6   : > { %v283_v28 = vpop.permute.xlu1 %282 }
  0xb7   : > { %v311_v30 = vsel %vm310_vm6, %v309_v17, %v283_v28 }
  0xb8   : > { %v297_v34 = vpop.permute.xlu0 %296  ;;  %vm493_vm14 = vcmp.eq.s32.totalorder %v311_v30, 0  ;;  %vm532_vm5 = vcmp.eq.s32.totalorder %v311_v30, 15 }
  0xb9   : > { %v318_v35 = vsel %vm310_vm6, %v317_v26, %v297_v34  ;;  %v495_v38 = vsel %vm493_vm14, 1, %v9368_v5  ;;  %v534_v60 = vsel %vm532_vm5, 1, %v9368_v5  ;;  %vm602_vm5 = vcmask 293888  }
  0xba   : > { %vm494_vm13 = vcmp.eq.s32.totalorder %v318_v35, 0  ;;  %v500_v50 = vrot.slane %v495_v38, %v6281_v3  ;;  %vm533_vm4 = vcmp.eq.s32.totalorder %v318_v35, 15  ;;  %v539_v17 = vrot.slane %v534_v60, %v6281_v3 }
  0xbb   : > { %v496_v36 = vsel %vm494_vm13, 1, %v9368_v5  ;;  %v535_v59 = vsel %vm533_vm4, 1, %v9368_v5  ;;  %vm529_vm13 = vcmp.lt.s32.totalorder %v6118_v7, 112 }
  0xbc   : > { %v5889_v42 = vpop.permute.xlu0 %5888  ;;  %v504_v49 = vrot.slane %v496_v36, %v6281_v3  ;;  %vm6373_vm6 = vcmp.eq.s32.totalorder %v500_v50, 1  ;;  %v543_v14 = vrot.slane %v535_v59, %v6281_v3  ;;  %vm6432_vm4 = vcmp.eq.s32.totalorder %v539_v17, 1 }
  0xbd   : > { %v5891_v52 = vunpack.i.h.bf16 %v5889_v42  ;;  %v5890_v54 = vunpack.i.l.bf16 %v5889_v42 }
  0xbe   : > { %vm6369_vm8 = vcmp.eq.s32.totalorder %v504_v49, 1  ;;  %vm6419_vm14 = vcmp.eq.s32.totalorder %v543_v14, 1 }
  0xbf   : > { %v514_v57 = vsel %vm490_vm15, %v5891_v52, %v5890_v54  ;;  %v513_v58 = vsel %vm490_vm15, %v5890_v54, %v5891_v52 }
  0xc0   : > { %v516_v61 = vsel %vm6369_vm8, %v6171_v24, %v513_v58  ;;  %v515_v27 = vsel %vm6373_vm6, %v6156_v21, %v514_v57 }
  0xc1   : > { %v567_v20 = vrot.slane %v516_v61, 4  ;;  %v566_v26 = vrot.slane %v515_v27, 4 }
 0x114   : > { %v5904_v32 = vpop.permute.xlu0 %5903  ;;  %v5894_v0 = vpop.permute.xlu1 %5893 }
 0x115   : > { %v5906_v8 = vunpack.i.h.bf16 %v5904_v32  ;;  %v5905_v9 = vunpack.i.l.bf16 %v5904_v32  ;;  %v5896_v10 = vunpack.i.h.bf16 %v5894_v0  ;;  %v5895_v13 = vunpack.i.l.bf16 %v5894_v0 }
 0x117   : > { %v491_v28 = vsel %vm490_vm15, %v5895_v13, %v5896_v10  ;;  %v521_v30 = vsel %vm490_vm15, %v5905_v9, %v5906_v8  ;;  %v492_v34 = vsel %vm490_vm15, %v5896_v10, %v5895_v13  ;;  %v522_v35 = vsel %vm490_vm15, %v5906_v8, %v5905_v9 }
 0x118   : > { %v5909_v36 = vpop.permute.xlu0 %5908  ;;  %v5899_v38 = vpop.permute.xlu1 %5898  ;;  %v508_v42 = vsel %vm6369_vm8, %v6325_v48, %v491_v28  ;;  %v524_v49 = vsel %vm6369_vm8, %v6315_v44, %v521_v30  ;;  %v507_v50 = vsel %vm6373_vm6, %v6320_v46, %v492_v34  ;;  %v523_v52 = vsel %vm6373_vm6, %v6310_v43, %v522_v35 }
 0x119   : > { %v5911_v54 = vunpack.i.h.bf16 %v5909_v36  ;;  %v5910_v57 = vunpack.i.l.bf16 %v5909_v36  ;;  %v5901_v58 = vunpack.i.h.bf16 %v5899_v38  ;;  %v5900_v59 = vunpack.i.l.bf16 %v5899_v38 }
 0x11a   : > { %v590_v60 = vsel %vm588_vm9, %v508_v42, %v567_v20  ;;  %v592_v61 = vsel %vm588_vm9, %v524_v49, %v573_v1  ;;  %v589_v27 = vsel %vm588_vm9, %v507_v50, %v566_v26  ;;  %v591_v32 = vsel %vm588_vm9, %v523_v52, %v572_v2 }
 0x11b   : > { %v531_v8 = vsel %vm529_vm13, %v5911_v54, %v5910_v57  ;;  %v552_v9 = vsel %vm529_vm13, %v5900_v59, %v5901_v58  ;;  %v553_v10 = vsel %vm529_vm13, %v5901_v58, %v5900_v59  ;;  %v5761_v13 = vpack.c.bf16 %v592_v61, %v590_v60 }
 0x11c   : > { %v5763_v20 = vpack.c.bf16 %v591_v32, %v589_v27  ;;  %v555_v1 = vsel %vm6419_vm14, %v6171_v24, %v553_v10  ;;  %v530_v14 = vsel %vm529_vm13, %v5910_v57, %v5911_v54  ;;  %v578_v28 = vrot.slane %v6310_v43, 4  ;;  %v559_v30 = vpop.permute.xlu0 %558  ;;  %v557_v34 = vpop.permute.xlu1 %556 }
 0x11d   : > { %v585_v26 = vrot.slane %v555_v1, 4  ;;  %5762 = vmatprep.subr.bf16.mxu0 %v5761_v13  ;;  %v547_v35 = vsel %vm6419_vm14, %v6325_v48, %v531_v8  ;;  %v554_v17 = vsel %vm6432_vm4, %v6156_v21, %v552_v9  ;;  %v594_v36 = vsel %vm588_vm9, %v6171_v24, %v579_v4 }
 0x11e   : > { %5764 = vmatpush1.bf16.msra.mxu0 %v5763_v20  ;;  %v584_v42 = vrot.slane %v554_v17, 4  ;;  %v546_v50 = vsel %vm6432_vm4, %v6320_v46, %v530_v14  ;;  %v561_v52 = vsel %vm529_vm13, %v559_v30, %v557_v34  ;;  %v593_v48 = vsel %vm588_vm9, %v6156_v21, %v578_v28  ;;  %v437_v46 = vld [vmem:[%s9321_s1] sm:$0xff] }
 0x11f   : > { %v596_v38 = vsel %vm588_vm9, %v547_v35, %v585_v26  ;;  %v560_v24 = vsel %vm529_vm13, %v557_v34, %v559_v30  ;;  %v563_v4 = vsel %vm6419_vm14, %v6315_v44, %v561_v52 }
 0x120   : > { %v5765_v49 = vpack.c.bf16 %v596_v38, %v594_v36  ;;  %v595_v54 = vsel %vm588_vm9, %v546_v50, %v584_v42  ;;  %v562_v21 = vsel %vm6432_vm4, %v6310_v43, %v560_v24 }
 0x121   : > { %v5767_v57 = vpack.c.bf16 %v595_v54, %v593_v48 }
 0x122   : > { %5766 = vmatprep.subr.bf16.mxu0 %v5765_v49 }
 0x123   : > { %5768 = vmatpush1.bf16.msra.mxu0 %v5767_v57 }
 0x124   : > { %5706 = vmatprep.subr.msk.mxu0 %vm588_vm9, %v563_v4 }
 0x127   : > { %5707 = vmatpush1.msk.msra.mxu0 %vm588_vm9, %v562_v21 }
 0x128   : > { %5708 = vmatmul.mubr.msk.f32.vlgmr.msra.gmra.mrb[0].mxu0 %vm602_vm5, %v437_v46 }
 0x12d   : > { %v600_v58 = vpop.permute.xlu1 %599 }
 0x1fb   : > { %v678_v59 = vpop.f32.mrb[0].mxu0 }
 0x1fc   : > { %v679_v60 = vadd.f32 %v678_v59, %v600_v58  ;;  %v680_v61 = vpop.f32.mrb[1].mxu0 }
 0x1fd   : > { %v681_v27 = vadd.f32 %v680_v61, %v600_v58 }
 0x1fe   : > { %v687_v44 = vmul.f32 %v679_v60, %v679_v60 }
 0x1ff   : > { %v683_v32 = vadd.f32 %v681_v27, %v679_v60  ;;  %v688_v8 = vmul.f32 %v681_v27, %v681_v27 }
 0x201   : > { %684 = vadd.xlane.f32.xlu0 %v683_v32  ;;  %v689_v9 = vadd.f32 %v688_v8, %v687_v44 }
 0x203   : > { %690 = vadd.xlane.f32.xlu1 %v689_v9 }
 0x28e   : > { %v685_v10 = vpop.xlane.xlu0 %684 }
 0x28f   : > { %v686_v13 = vmul.f32 0.00390625, %v685_v10 }
 0x290   : > { %v691_v20 = vpop.xlane.xlu1 %690 }
 0x291   : > { %v692_v1 = vmul.f32 0.00390625, %v691_v20  ;;  %v693_v14 = vmul.f32 %v686_v13, %v686_v13  ;;  %v696_v30 = vsub.f32 %v679_v60, %v686_v13  ;;  %v697_v34 = vsub.f32 %v681_v27, %v686_v13 }
 0x293   : > { %v694_v43 = vsub.f32 %v692_v1, %v693_v14 }
 0x295   : > { %v695_v26 = vmax.f32 %v694_v43, 0.0 }
 0x297   : > { %v698_v28 = vadd.f32 1e-05, %v695_v26 }
 0x299   : > { %5960 = vrsqrt.f32 %v698_v28 }
 0x2a3   : > { %v5961_v35 = vpop.eup %5960 }
 0x2a4   : > { %v700_v17 = vmul.f32 %v5961_v35, %v696_v30  ;;  %v701_v36 = vmul.f32 %v5961_v35, %v697_v34 }
 0x2a6   : > { %v704_v38 = vmul.f32 1.442695, %v700_v17  ;;  %v706_v42 = vmul.f32 1.442695, %v701_v36  ;;  %vm702_vm9 = vcmp.gt.f32.partialorder %v700_v17, 0.0  ;;  %vm703_vm5 = vcmp.gt.f32.partialorder %v701_v36, 0.0 }
 0x2a8   : > { %5962 = vpow2.f32 %v704_v38 }
 0x2a9   : > { %5964 = vpow2.f32 %v706_v42 }
 0x2b2   : > { %v5963_v49 = vpop.eup %5962 }
 0x2b3   : > { %v5965_v50 = vpop.eup %5964  ;;  %v5709_v52 = vadd.f32 -1.0, %v5963_v49 }
 0x2b4   : > { %v5710_v48 = vadd.f32 -1.0, %v5965_v50 }
 0x2b5   : > { %v6469_v54 = vsel %vm702_vm9, %v700_v17, %v5709_v52  ;;  %vm908_vm9 = vcmask 1046534  }
 0x2b6   : > { %v6471_v57 = vsel %vm703_vm5, %v701_v36, %v5710_v48  ;;  %720 = vrot.lane.b32.xlu1 %v6469_v54, %s9325_s26  ;;  %vm910_vm5 = vcmask 1047559  }
 0x2b7   : > { %v5913_v24 = vpack.i.bf16 %v6471_v57, %v6469_v54 }
 0x2b9   : > { %5914 = vrot.lane.b32.xlu0 %v5913_v24, %s6010_s24  ;;  %s6020_s24 = smov 124  }
 0x2bd   : > { %722 = vrot.lane.b32.xlu0 %v6471_v57, %s9325_s26  ;;  %s9332_s26 = smov 68  }
 0x2c1   : > { %5919 = vrot.lane.b32.xlu0 %v5913_v24, %s9361_s19 }
 0x328   : > { %v721_v60 = vpop.permute.xlu1 %720 }
 0x32b   : > { %v5915_v4 = vpop.permute.xlu0 %5914 }
 0x32c   : > { %v5917_v46 = vunpack.i.h.bf16 %v5915_v4  ;;  %v5916_v21 = vunpack.i.l.bf16 %v5915_v4 }
 0x32e   : > { %v716_v58 = vsel %vm458_vm7, %v5916_v21, %v5917_v46  ;;  %v717_v59 = vsel %vm458_vm7, %v5917_v46, %v5916_v21  ;;  %vm780_vm7 = vcmask 588800  }
 0x32f   : > { %v723_v61 = vpop.permute.xlu0 %722  ;;  %v6488_v27 = vsel %vm6299_vm11, %v6469_v54, %v717_v59  ;;  %v719_v44 = vsel %vm6299_vm11, %v6471_v57, %v716_v58  ;;  %vm914_vm11 = vcmask 15360  }
 0x330   : > { %v724_v32 = vsel %vm474_vm10, %v721_v60, %v723_v61  ;;  %v725_v8 = vsel %vm474_vm10, %v723_v61, %v721_v60  ;;  %v5933_v9 = vpack.i.bf16 %v719_v44, %v6488_v27  ;;  %vm886_vm10 = vcmask 58368  }
 0x331   : > { %v6501_v10 = vsel %vm6303_vm12, %v6471_v57, %v725_v8  ;;  %v6506_v13 = vsel %vm6303_vm12, %v6469_v54, %v724_v32 }
 0x332   : > { %5934 = vrot.lane.b32.xlu0 %v5933_v9, %s6011_s25  ;;  %5924 = vrot.lane.b32.xlu1 %v5933_v9, %s9361_s19  ;;  %v5928_v39 = vpack.i.bf16 %v6501_v10, %v6506_v13 }
 0x333   : > { %v5920_v20 = vpop.permute.xlu0 %5919 }
 0x334   : > { %v5922_v1 = vunpack.i.h.bf16 %v5920_v20  ;;  %v5921_v14 = vunpack.i.l.bf16 %v5920_v20 }
 0x336   : > { %768 = vrot.lane.b32.xlu0 %v6506_v13, %s6011_s25  ;;  %5929 = vrot.lane.b32.xlu1 %v5928_v39, %s9361_s19  ;;  %v740_v30 = vsel %vm490_vm15, %v5921_v14, %v5922_v1  ;;  %v741_v34 = vsel %vm490_vm15, %v5922_v1, %v5921_v14  ;;  %v5777_v1 = vpack.c.bf16 %v6501_v10, %v6471_v57 }
 0x337   : > { %v743_v49 = vsel %vm6369_vm8, %v6471_v57, %v740_v30  ;;  %v742_v52 = vsel %vm6373_vm6, %v6469_v54, %v741_v34 }
 0x33a   : > { %5939 = vrot.lane.b32.xlu1 %v5913_v24, %s6011_s25  ;;  %777 = vperm.xlu0 %5943, %v6352_v63  }
 0x33e   : > { %770 = vrot.lane.b32.xlu1 %v6501_v10, %s6011_s25 }
 0x3a4   : > { %v5925_v43 = vpop.permute.xlu1 %5924  ;;  %v5935_v36 = vpop.permute.xlu0 %5934 }
 0x3a5   : > { %v5927_v26 = vunpack.i.h.bf16 %v5925_v43  ;;  %v5926_v28 = vunpack.i.l.bf16 %v5925_v43  ;;  %v5937_v21 = vunpack.i.h.bf16 %v5935_v36  ;;  %v5936_v58 = vunpack.i.l.bf16 %v5935_v36 }
 0x3a7   : > { %v732_v35 = vsel %vm490_vm15, %v5926_v28, %v5927_v26  ;;  %v733_v17 = vsel %vm490_vm15, %v5927_v26, %v5926_v28  ;;  %v757_v14 = vsel %vm529_vm13, %v5937_v21, %v5936_v58  ;;  %v5779_v28 = vpack.c.bf16 %v6506_v13, %v6469_v54 }
 0x3a8   : > { %v5930_v38 = vpop.permute.xlu1 %5929  ;;  %v735_v42 = vsel %vm6369_vm8, %v719_v44, %v732_v35  ;;  %v734_v50 = vsel %vm6373_vm6, %v6488_v27, %v733_v17  ;;  %v759_v30 = vsel %vm6419_vm14, %v719_v44, %v757_v14  ;;  %v756_v34 = vsel %vm529_vm13, %v5936_v58, %v5937_v21 }
 0x3a9   : > { %v5932_v48 = vunpack.i.h.bf16 %v5930_v38  ;;  %v5931_v24 = vunpack.i.l.bf16 %v5930_v38  ;;  %v5769_v4 = vpack.c.bf16 %v743_v49, %v735_v42  ;;  %v5771_v46 = vpack.c.bf16 %v742_v52, %v734_v50 }
 0x3aa   : > { %v758_v38 = vsel %vm6432_vm4, %v6488_v27, %v756_v34 }
 0x3ab   : > { %5770 = vmatprep.subr.bf16.mxu1 %v5769_v4  ;;  %v748_v59 = vsel %vm490_vm15, %v5931_v24, %v5932_v48  ;;  %v749_v60 = vsel %vm490_vm15, %v5932_v48, %v5931_v24 }
 0x3ac   : > { %v5940_v61 = vpop.permute.xlu1 %5939  ;;  %5772 = vmatpush1.bf16.msra.mxu1 %v5771_v46  ;;  %v751_v32 = vsel %vm6369_vm8, %v6501_v10, %v748_v59  ;;  %v750_v8 = vsel %vm6373_vm6, %v6506_v13, %v749_v60  ;;  %vm883_vm8 = vcmask 1041409   ;;  %vm900_vm6 = vcmask 1042434  }
 0x3ad   : > { %v5942_v9 = vunpack.i.h.bf16 %v5940_v61  ;;  %v5941_v39 = vunpack.i.l.bf16 %v5940_v61  ;;  %v5773_v40 = vpack.c.bf16 %v719_v44, %v751_v32  ;;  %v5775_v20 = vpack.c.bf16 %v6488_v27, %v750_v8 }
 0x3af   : > { %5774 = vmatprep.subr.bf16.mxu1 %v5773_v40  ;;  %v765_v55 = vsel %vm529_vm13, %v5942_v9, %v5941_v39  ;;  %v764_v43 = vsel %vm529_vm13, %v5941_v39, %v5942_v9 }
 0x3b0   : > { %5776 = vmatpush1.bf16.msra.mxu1 %v5775_v20  ;;  %v767_v56 = vsel %vm6419_vm14, %v6471_v57, %v765_v55  ;;  %v771_v26 = vpop.permute.xlu1 %770  ;;  %v766_v17 = vsel %vm6432_vm4, %v6469_v54, %v764_v43  ;;  %v769_v57 = vpop.permute.xlu0 %768  ;;  %v438_v54 = vld [vmem:[%s9321_s1 + $0x8] sm:$0xff]  ;;  %v6591_v55 = vsub.s32 %v6118_v7, %v6116_v6 }
 0x3b1   : > { %5778 = vmatprep.subr.bf16.mxu1 %v5777_v1  ;;  %v5781_v35 = vpack.c.bf16 %v767_v56, %v759_v30  ;;  %v773_v36 = vsel %vm529_vm13, %v771_v26, %v769_v57  ;;  %v5783_v42 = vpack.c.bf16 %v766_v17, %v758_v38  ;;  %v772_v44 = vsel %vm529_vm13, %v769_v57, %v771_v26  ;;  %v444_v26 = vld [vmem:[%s9321_s1 + $0x38] sm:$0x3]  ;;  %v447_v17 = vld [vmem:[%s9322_s2] sm:$0x3] }
 0x3b2   : > { %v775_v49 = vsel %vm6419_vm14, %v6501_v10, %v773_v36  ;;  %v774_v50 = vsel %vm6432_vm4, %v6506_v13, %v772_v44  ;;  %9603 = vst [vmem:[#allocation21_spill] sm:$0xff] %v6591_v55  ;;  %v445_v38 = vld [vmem:[%s9321_s1 + $0x40] sm:$0xff]  ;;  %vm902_vm13 = vcmask 1043459   ;;  %vm904_vm14 = vcmask 1044484  }
 0x3b3   : > { %vm906_vm4 = vcmask 1045509  }
 0x3b4   : > { %5780 = vmatpush1.bf16.msra.mxu1 %v5779_v28 }
 0x3b5   : > { %5782 = vmatprep.subr.bf16.mxu1 %v5781_v35  ;;  %v6015_v35 = vmov 2  }
 0x3b6   : > { %5944 = vset.pattern.permute.xlu1 %v6015_v35 }
 0x3b8   : > { %5784 = vmatpush1.bf16.msra.mxu1 %v5783_v42 }
 0x3b9   : > { %800 = vmatprep.subr.mxu1 %v775_v49  ;;  %v778_v27 = vpop.permute.xlu0 %777 }
 0x3bc   : > { %801 = vmatpush1.msra.mxu1 %v774_v50 }
 0x3bd   : > { %5711 = vmatmul.mubr.msk.f32.vlgmr.msra.gmra.mrb[0].mxu1 %vm780_vm7, %v438_v54  ;;  %5756 = vmatprep.subr.mxu1 %v9370_v62  ;;  %v6016_v54 = vmov 3   ;;  %vm9567_vm7 = vcmask 64512  }
 0x3be   : > { %5945 = vset.pattern.permute.xlu0 %v6016_v54 }
 0x490   : > { %v850_v52 = vpop.f32.mrb[0].mxu1 }
 0x491   : > { %v851_v48 = vadd.f32 %v850_v52, %v778_v27  ;;  %v852_v24 = vpop.f32.mrb[1].mxu1 }
 0x492   : > { %v853_v0 = vadd.f32 %v852_v24, %v778_v27 }
 0x493   : > { %v859_v10 = vmul.f32 %v851_v48, %v851_v48 }
 0x494   : > { %v855_v4 = vadd.f32 %v853_v0, %v851_v48  ;;  %v860_v46 = vmul.f32 %v853_v0, %v853_v0 }
 0x496   : > { %856 = vadd.xlane.f32.xlu1 %v855_v4  ;;  %v861_v21 = vadd.f32 %v860_v46, %v859_v10 }
 0x498   : > { %862 = vadd.xlane.f32.xlu0 %v861_v21 }
 0x523   : > { %v857_v58 = vpop.xlane.xlu1 %856 }
 0x524   : > { %v858_v59 = vmul.f32 0.00390625, %v857_v58 }
 0x525   : > { %v863_v60 = vpop.xlane.xlu0 %862 }
 0x526   : > { %v864_v2 = vmul.f32 0.00390625, %v863_v60  ;;  %v865_v13 = vmul.f32 %v858_v59, %v858_v59  ;;  %v868_v9 = vsub.f32 %v851_v48, %v858_v59  ;;  %v869_v39 = vsub.f32 %v853_v0, %v858_v59 }
 0x528   : > { %v866_v61 = vsub.f32 %v864_v2, %v865_v13 }
 0x52a   : > { %v867_v32 = vmax.f32 %v866_v61, 0.0 }
 0x52c   : > { %v870_v8 = vadd.f32 1e-05, %v867_v32 }
 0x52e   : > { %5966 = vrsqrt.f32 %v870_v8 }
 0x538   : > { %v5967_v40 = vpop.eup %5966 }
 0x539   : > { %v872_v20 = vmul.f32 %v5967_v40, %v868_v9  ;;  %v6586_v1 = vmul.f32 %v5967_v40, %v869_v39 }
 0x53b   : > { %v874_v14 = vadd.f32 %v6586_v1, %v872_v20 }
 0x53d   : > { %875 = vadd.xlane.f32.xlu1 %v874_v14 }
 0x5ca   : > { %v876_v56 = vpop.xlane.xlu1 %875 }
 0x5cb   : > { %v877_v43 = vmul.f32 0.00390625, %v876_v56 }
 0x5cd   : > { %v882_v28 = vrot.slane %v877_v43, %v6591_v55 }
 0x5cf   : > { %v885_v30 = vmul.f32 %v882_v28, %v444_v26 }
 0x5d1   : > { %v887_v34 = vsel %vm886_vm10, %v885_v30, 0.0  ;;  %vm408_vm10 = vcmask 195584  }
 0x5d2   : > { %888 = vadd.xlane.f32.xlu0 %v887_v34 }
 0x65f   : > { %v889_v6 = vpop.xlane.xlu0 %888 }
 0x660   : > { %v890_v7 = vadd.f32 %v889_v6, %v447_v17 }
 0x662   : > { %v891_v57 = vmax.f32 %v890_v7, 0.0 }
 0x664   : > { %894 = vperm.xlu1 %5944, %v891_v57  }
 0x668   : > { %5946 = vset.pattern.permute.xlu1 %v9368_v5 }
 0x6e3   : > { %v895_v36 = vpop.permute.xlu1 %894 }
 0x6e4   : > { %v899_v42 = vrot.slane %v895_v36, %v6591_v55 }
 0x6e6   : > { %v913_v44 = vmul.f32 %v899_v42, %v445_v38 }
 0x6e8   : > { %v915_v49 = vsel %vm914_vm11, %v913_v44, 0.0  ;;  %vm411_vm11 = vcmask 326656  }
 0x6e9   : > { %916 = vadd.xlane.f32.xlu0 %v915_v49 }
 0x776   : > { %v917_v50 = vpop.xlane.xlu0 %916 }
 0x777   : > { %v918_v27 = vadd.f32 %v917_v50, %v6352_v63 }
 0x779   : > { %v5712_v52 = vmul.f32 -1.442695, %v918_v27 }
 0x77b   : > { %5968 = vpow2.f32 %v5712_v52 }
 0x785   : > { %v5969_v48 = vpop.eup %5968 }
 0x786   : > { %v922_v24 = vadd.f32 1.0, %v5969_v48 }
 0x788   : > { %5970 = vrcp.f32 %v922_v24 }
 0x792   : > { %v5971_v0 = vpop.eup %5970 }
 0x793   : > { %927 = vperm.xlu0 %5945, %v5971_v0  }
 0x797   : > { %5947 = vset.pattern.permute.xlu0 %v9368_v5 }
 0x812   : > { %v6607_v10 = vpop.permute.xlu0 %927 }
 0x813   : > { %v930_v4 = vmul.f32 %v6607_v10, %v872_v20  ;;  %v931_v63 = vmul.f32 %v6607_v10, %v6586_v1 }
 0x815   : > { %v934_v46 = vmul.f32 1.442695, %v930_v4  ;;  %vm932_vm12 = vcmp.gt.f32.partialorder %v930_v4, 0.0  ;;  %v936_v60 = vmul.f32 1.442695, %v931_v63  ;;  %vm933_vm15 = vcmp.gt.f32.partialorder %v931_v63, 0.0 }
 0x817   : > { %5972 = vpow2.f32 %v934_v46 }
 0x818   : > { %5974 = vpow2.f32 %v936_v60 }
 0x821   : > { %v5973_v21 = vpop.eup %5972 }
 0x822   : > { %v5713_v58 = vadd.f32 -1.0, %v5973_v21  ;;  %v5975_v2 = vpop.eup %5974 }
 0x823   : > { %v5714_v13 = vadd.f32 -1.0, %v5975_v2 }
 0x824   : > { %v6610_v59 = vsel %vm932_vm12, %v930_v4, %v5713_v58  ;;  %vm414_vm12 = vcmask 457728  }
 0x825   : > { %970 = vrot.lane.b32.xlu0 %v6610_v59, %s9349_s15  ;;  %943 = vrot.lane.b32.xlu1 %v6610_v59, %s6018_s16  ;;  %s9355_s15 = smov 62   ;;  %v6722_v61 = vsel %vm933_vm15, %v931_v63, %v5714_v13 }
 0x826   : > { %9604 = vst [vmem:[#allocation22_spill] sm:$0xff] %v6722_v61 }
 0x829   : > { %976 = vrot.lane.b32.xlu0 %v6610_v59, %s9345_s17  ;;  %946 = vrot.lane.b32.xlu1 %v6610_v59, %s6020_s24  ;;  %s6049_s17 = smov 70  }
 0x82d   : > { %982 = vrot.lane.b32.xlu0 %v6610_v59, %s9342_s27  ;;  %949 = vrot.lane.b32.xlu1 %v6610_v59, %s6022_s28  ;;  %s6047_s27 = smov 74  }
 0x831   : > { %988 = vrot.lane.b32.xlu0 %v6610_v59, %s9340_s22  ;;  %952 = vrot.lane.b32.xlu1 %v6610_v59, %s6023_s29  ;;  %s6045_s22 = smov 78  }
 0x835   : > { %994 = vrot.lane.b32.xlu0 %v6610_v59, %s9336_s30  ;;  %955 = vrot.lane.b32.xlu1 %v6610_v59, %s6025_s4  ;;  %s6042_s30 = smov 86  }
 0x839   : > { %1000 = vrot.lane.b32.xlu0 %v6610_v59, %s9333_s5  ;;  %958 = vrot.lane.b32.xlu1 %v6610_v59, %s6027_s6  ;;  %s6040_s5 = smov 90  }
 0x83d   : > { %1006 = vrot.lane.b32.xlu0 %v6610_v59, %s9331_s7  ;;  %961 = vrot.lane.b32.xlu1 %v6610_v59, %s6029_s8  ;;  %s6038_s7 = smov 94  }
 0x841   : > { %1012 = vrot.lane.b32.xlu0 %v6610_v59, %s9327_s23  ;;  %964 = vrot.lane.b32.xlu1 %v6610_v59, %s6011_s25  ;;  %s6035_s23 = smov 102  }
 0x845   : > { %1018 = vrot.lane.b32.xlu0 %v6610_v59, %s9328_s9  ;;  %967 = vrot.lane.b32.xlu1 %v6610_v59, %s6031_s10  ;;  %s6036_s9 = smov 98  }
 0x849   : > { %1024 = vrot.lane.b32.xlu0 %v6610_v59, %s9329_s11  ;;  %973 = vrot.lane.b32.xlu1 %v6610_v59, %s6033_s14  ;;  %s9337_s11 = smov 60  }
 0x84d   : > { %1030 = vrot.lane.b32.xlu0 %v6610_v59, %s9332_s26  ;;  %979 = vrot.lane.b32.xlu1 %v6610_v59, %s6035_s23  ;;  %s9338_s26 = smov 56  }
 0x851   : > { %1036 = vrot.lane.b32.xlu0 %v6610_v59, %s9334_s18  ;;  %985 = vrot.lane.b32.xlu1 %v6610_v59, %s6036_s9  ;;  %s9341_s18 = smov 52  }
 0x855   : > { %1042 = vrot.lane.b32.xlu0 %v6610_v59, %s9337_s11  ;;  %991 = vrot.lane.b32.xlu1 %v6610_v59, %s6038_s7  ;;  %s6043_s11 = smov 82  }
 0x859   : > { %1048 = vrot.lane.b32.xlu0 %v6610_v59, %s9338_s26  ;;  %997 = vrot.lane.b32.xlu1 %v6610_v59, %s6040_s5  ;;  %s9346_s26 = smov 44  }
 0x85d   : > { %1054 = vrot.lane.b32.xlu0 %v6610_v59, %s9341_s18  ;;  %1003 = vrot.lane.b32.xlu1 %v6610_v59, %s6042_s30  ;;  %s9347_s18 = smov 40  }
 0x861   : > { %1060 = vrot.lane.b32.xlu0 %v6610_v59, %s9343_s20  ;;  %1009 = vrot.lane.b32.xlu1 %v6610_v59, %s6043_s11  ;;  %s9350_s20 = smov 36  }
 0x865   : > { %1066 = vrot.lane.b32.xlu0 %v6610_v59, %s9346_s26  ;;  %1015 = vrot.lane.b32.xlu1 %v6610_v59, %s6045_s22  ;;  %s9353_s26 = smov 66  }
 0x869   : > { %1072 = vrot.lane.b32.xlu0 %v6610_v59, %s9347_s18  ;;  %1021 = vrot.lane.b32.xlu1 %v6610_v59, %s6047_s27  ;;  %s9354_s18 = smov 28  }
 0x86d   : > { %1078 = vrot.lane.b32.xlu0 %v6610_v59, %s9350_s20  ;;  %1027 = vrot.lane.b32.xlu1 %v6610_v59, %s6049_s17  ;;  %s9356_s20 = smov 24  }
 0x871   : > { %1084 = vrot.lane.b32.xlu0 %v6610_v59, %s9351_s21  ;;  %1033 = vrot.lane.b32.xlu1 %v6610_v59, %s9353_s26  ;;  %s9358_s21 = smov 58   ;;  %s9359_s26 = smov 20  }
 0x875   : > { %1090 = vrot.lane.b32.xlu0 %v6610_v59, %s9354_s18  ;;  %1039 = vrot.lane.b32.xlu1 %v6610_v59, %s9355_s15  ;;  %s9360_s18 = smov 54   ;;  %s9363_s15 = smov 50  }
 0x879   : > { %1096 = vrot.lane.b32.xlu0 %v6610_v59, %s9356_s20  ;;  %1045 = vrot.lane.b32.xlu1 %v6610_v59, %s9358_s21  ;;  %s9366_s20 = smov 12   ;;  %s6059_s21 = smov 46  }
 0x87d   : > { %1102 = vrot.lane.b32.xlu0 %v6610_v59, %s9359_s26  ;;  %1051 = vrot.lane.b32.xlu1 %v6610_v59, %s9360_s18  ;;  %s9364_s26 = smov 8   ;;  %s6061_s18 = smov 42  }
 0x881   : > { %1108 = vrot.lane.b32.xlu0 %v6610_v59, %s9361_s19  ;;  %1057 = vrot.lane.b32.xlu1 %v6610_v59, %s9363_s15  ;;  %s9367_s19 = smov 4   ;;  %s6063_s15 = smov 38  }
 0x885   : > { %1114 = vrot.lane.b32.xlu0 %v6610_v59, %s9366_s20  ;;  %1063 = vrot.lane.b32.xlu1 %v6610_v59, %s6059_s21  ;;  %s6065_s20 = smov 30  }
 0x889   : > { %1120 = vrot.lane.b32.xlu0 %v6610_v59, %s9364_s26  ;;  %1069 = vrot.lane.b32.xlu1 %v6610_v59, %s6061_s18  ;;  %s6064_s26 = smov 34  }
 0x88d   : > { %1126 = vrot.lane.b32.xlu0 %v6610_v59, %s9367_s19  ;;  %1075 = vrot.lane.b32.xlu1 %v6610_v59, %s6063_s15  ;;  %s6066_s19 = smov 26  }
 0x891   : > { %1133 = vrot.lane.b32.xlu0 %v6722_v61, %s6018_s16  ;;  %1081 = vrot.lane.b32.xlu1 %v6610_v59, %s6064_s26  ;;  %s6067_s16 = smov 22  }
 0x895   : > { %1139 = vrot.lane.b32.xlu0 %v6722_v61, %s6022_s28  ;;  %1087 = vrot.lane.b32.xlu1 %v6610_v59, %s6065_s20  ;;  %s6068_s28 = smov 18  }
 0x897   : > { %v6732_v32 = vpop.permute.xlu0 %970  ;;  %v6734_v8 = vpop.permute.xlu1 %943 }
 0x899   : > { %1145 = vrot.lane.b32.xlu0 %v6722_v61, %s6025_s4  ;;  %1093 = vrot.lane.b32.xlu1 %v6610_v59, %s6066_s19  ;;  %s6069_s4 = smov 14  }
 0x89b   : > { %v6740_v9 = vpop.permute.xlu0 %976  ;;  %v6742_v39 = vpop.permute.xlu1 %946 }
 0x89d   : > { %1151 = vrot.lane.b32.xlu0 %v6722_v61, %s6029_s8  ;;  %1099 = vrot.lane.b32.xlu1 %v6610_v59, %s6067_s16  ;;  %s6070_s8 = smov 10  }
 0x89f   : > { %v6748_v40 = vpop.permute.xlu0 %982  ;;  %v6750_v20 = vpop.permute.xlu1 %949 }
 0x8a0   : > { %v1490_v19 = vcombine.low %v6740_v9, %v6748_v40 }
 0x8a1   : > { %1157 = vrot.lane.b32.xlu0 %v6722_v61, %s6031_s10  ;;  %1105 = vrot.lane.b32.xlu1 %v6610_v59, %s6068_s28  ;;  %s9619_s10 = smov 50  }
 0x8a3   : > { %v6756_v1 = vpop.permute.xlu0 %988  ;;  %v6758_v14 = vpop.permute.xlu1 %952 }
 0x8a5   : > { %1163 = vrot.lane.b32.xlu0 %v6722_v61, %s6033_s14  ;;  %1111 = vrot.lane.b32.xlu1 %v6610_v59, %s6069_s4  ;;  %s6071_s14 = smov 6  }
 0x8a7   : > { %v6764_v56 = vpop.permute.xlu0 %994  ;;  %v6766_v43 = vpop.permute.xlu1 %955 }
 0x8a9   : > { %1169 = vrot.lane.b32.xlu0 %v6722_v61, %s6035_s23  ;;  %1117 = vrot.lane.b32.xlu1 %v6610_v59, %s6070_s8  ;;  %s6072_s23 = smov 2  }
 0x8ab   : > { %v6772_v26 = vpop.permute.xlu0 %1000  ;;  %v6774_v28 = vpop.permute.xlu1 %958 }
 0x8ad   : > { %1175 = vrot.lane.b32.xlu0 %v6722_v61, %s6036_s9  ;;  %1123 = vrot.lane.b32.xlu1 %v6610_v59, %s6071_s14  ;;  %s9618_s9 = smov 88  }
 0x8af   : > { %v6780_v30 = vpop.permute.xlu0 %1006  ;;  %v6782_v34 = vpop.permute.xlu1 %961 }
 0x8b1   : > { %1181 = vrot.lane.b32.xlu0 %v6722_v61, %s6038_s7  ;;  %1129 = vrot.lane.b32.xlu1 %v6610_v59, %s6072_s23  ;;  %s9617_s7 = smov 54  }
 0x8b3   : > { %v6788_v35 = vpop.permute.xlu0 %1012  ;;  %v6790_v17 = vpop.permute.xlu1 %964 }
 0x8b4   : > { %v1458_v18 = vcombine.low %v6790_v17, %v6732_v32 }
 0x8b5   : > { %1187 = vrot.lane.b32.xlu0 %v6722_v61, %s6040_s5  ;;  %1136 = vrot.lane.b32.xlu1 %v6722_v61, %s6020_s24  ;;  %s9606_s24 = smov 108   ;;  %s9615_s5 = smov 58  }
 0x8b7   : > { %v6796_v6 = vpop.permute.xlu0 %1018  ;;  %v6798_v7 = vpop.permute.xlu1 %967 }
 0x8b9   : > { %1193 = vrot.lane.b32.xlu0 %v6722_v61, %s6042_s30  ;;  %1142 = vrot.lane.b32.xlu1 %v6722_v61, %s6023_s29  ;;  %s9613_s30 = smov 62  }
 0x8bb   : > { %v6804_v57 = vpop.permute.xlu0 %1024  ;;  %v6806_v36 = vpop.permute.xlu1 %973 }
 0x8bc   : > { %v1474_v37 = vcombine.low %v6798_v7, %v6806_v36 }
 0x8bd   : > { %1199 = vrot.lane.b32.xlu0 %v6722_v61, %s6043_s11  ;;  %1148 = vrot.lane.b32.xlu1 %v6722_v61, %s6027_s6  ;;  %s9616_s6 = smov 92   ;;  %s9620_s11 = smov 84  }
 0x8bf   : > { %v6812_v38 = vpop.permute.xlu0 %1030  ;;  %v6814_v42 = vpop.permute.xlu1 %979 }
 0x8c1   : > { %1205 = vrot.lane.b32.xlu0 %v6722_v61, %s6045_s22  ;;  %1154 = vrot.lane.b32.xlu1 %v6722_v61, %s6011_s25  ;;  %s9608_s22 = smov 104   ;;  %s9610_s25 = smov 66  }
 0x8c3   : > { %v6820_v44 = vpop.permute.xlu0 %1036  ;;  %v6822_v49 = vpop.permute.xlu1 %985 }
 0x8c4   : > { %9605 = vst [vmem:[#allocation23_spill] sm:$0xff] %v6820_v44  ;;  %v1506_v45 = vcombine.low %v6814_v42, %v6822_v49 }
 0x8c5   : > { %1211 = vrot.lane.b32.xlu0 %v6722_v61, %s6047_s27  ;;  %1160 = vrot.lane.b32.xlu1 %v6722_v61, %s9606_s24  ;;  %s9611_s27 = smov 100   ;;  %s9621_s24 = smov 80  }
 0x8c6   : > { %v1514_v33 = vrot.slane %v1506_v45, %v6123_v11  ;;  %v1466_v45 = vrot.slane %v1458_v18, %v6123_v11 }
 0x8c7   : > { %v6828_v54 = vpop.permute.xlu0 %1042  ;;  %v6830_v50 = vpop.permute.xlu1 %991 }
 0x8c8   : > { %9607 = vst [vmem:[#allocation24_spill] sm:$0xff] %v6828_v54 }
 0x8c9   : > { %1217 = vrot.lane.b32.xlu0 %v6722_v61, %s6049_s17  ;;  %1166 = vrot.lane.b32.xlu1 %v6722_v61, %s9608_s22  ;;  %s9614_s17 = smov 96   ;;  %s9623_s22 = smov 76  }
 0x8cb   : > { %v6836_v27 = vpop.permute.xlu0 %1048  ;;  %v6838_v52 = vpop.permute.xlu1 %997 }
 0x8cc   : > { %9609 = vst [vmem:[#allocation25_spill] sm:$0xff] %v6836_v27 }
 0x8cd   : > { %1223 = vrot.lane.b32.xlu0 %v6722_v61, %s9610_s25  ;;  %1172 = vrot.lane.b32.xlu1 %v6722_v61, %s9611_s27  ;;  %s9654_s25 = smov 127   ;;  %s9661_s27 = smov 24  }
 0x8cf   : > { %v6844_v48 = vpop.permute.xlu0 %1054  ;;  %v6846_v24 = vpop.permute.xlu1 %1003 }
 0x8d0   : > { %9612 = vst [vmem:[#allocation26_spill] sm:$0xff] %v6844_v48 }
 0x8d1   : > { %1229 = vrot.lane.b32.xlu0 %v6722_v61, %s9613_s30  ;;  %1178 = vrot.lane.b32.xlu1 %v6722_v61, %s9614_s17  ;;  %s9664_s30 = smov 20   ;;  %s9666_s17 = smov 16  }
 0x8d3   : > { %v6852_v0 = vpop.permute.xlu0 %1060  ;;  %v6854_v10 = vpop.permute.xlu1 %1009 }
 0x8d5   : > { %1235 = vrot.lane.b32.xlu0 %v6722_v61, %s9615_s5  ;;  %1184 = vrot.lane.b32.xlu1 %v6722_v61, %s9616_s6  ;;  %s9669_s5 = smov 12   ;;  %s9673_s6 = smov 8  }
 0x8d7   : > { %v6860_v4 = vpop.permute.xlu0 %1066  ;;  %v6862_v46 = vpop.permute.xlu1 %1015 }
 0x8d9   : > { %1241 = vrot.lane.b32.xlu0 %v6722_v61, %s9617_s7  ;;  %1190 = vrot.lane.b32.xlu1 %v6722_v61, %s9618_s9  ;;  %s9677_s7 = smov 4  }
 0x8db   : > { %v6868_v21 = vpop.permute.xlu0 %1072  ;;  %v6870_v58 = vpop.permute.xlu1 %1021 }
 0x8dd   : > { %1247 = vrot.lane.b32.xlu0 %v6722_v61, %s9619_s10  ;;  %1196 = vrot.lane.b32.xlu1 %v6722_v61, %s9620_s11 }
 0x8df   : > { %v6876_v63 = vpop.permute.xlu0 %1078  ;;  %v6878_v60 = vpop.permute.xlu1 %1027 }
 0x8e1   : > { %1253 = vrot.lane.b32.xlu0 %v6722_v61, %s6059_s21  ;;  %1202 = vrot.lane.b32.xlu1 %v6722_v61, %s9621_s24  ;;  %s9626_s21 = smov 72  }
 0x8e3   : > { %v6884_v2 = vpop.permute.xlu0 %1084  ;;  %v6886_v13 = vpop.permute.xlu1 %1033 }
 0x8e4   : > { %9622 = vst [vmem:[#allocation27_spill] sm:$0xff] %v6884_v2  ;;  %v1778_v55 = vcombine.low %v6878_v60, %v6886_v13 }
 0x8e5   : > { %1259 = vrot.lane.b32.xlu0 %v6722_v61, %s6061_s18  ;;  %1208 = vrot.lane.b32.xlu1 %v6722_v61, %s9623_s22  ;;  %s9629_s18 = smov 68  }
 0x8e7   : > { %v6892_v5 = vpop.permute.xlu0 %1090  ;;  %v6894_v62 = vpop.permute.xlu1 %1039 }
 0x8e8   : > { %9624 = vst [vmem:[#allocation28_spill] sm:$0xff] %v6892_v5  ;;  %9625 = vst [vmem:[#allocation29_spill] sm:$0xff] %v6894_v62 }
 0x8e9   : > { %1265 = vrot.lane.b32.xlu0 %v6722_v61, %s6063_s15  ;;  %1214 = vrot.lane.b32.xlu1 %v6722_v61, %s9626_s21  ;;  %s9632_s15 = smov 64  }
 0x8eb   : > { %v6900_v3 = vpop.permute.xlu0 %1096  ;;  %v6902_v15 = vpop.permute.xlu1 %1045 }
 0x8ec   : > { %9627 = vst [vmem:[#allocation30_spill] sm:$0xff] %v6900_v3  ;;  %9628 = vst [vmem:[#allocation31_spill] sm:$0xff] %v6902_v15  ;;  %v1498_v3 = vrot.slane %v1490_v19, %v6123_v11 }
 0x8ed   : > { %1271 = vrot.lane.b32.xlu0 %v6722_v61, %s6064_s26  ;;  %1220 = vrot.lane.b32.xlu1 %v6722_v61, %s9629_s18  ;;  %s9635_s26 = smov 60  }
 0x8ee   : > { %v1554_v19 = vcombine.low %v1498_v3, %v1514_v33 }
 0x8ef   : > { %v6908_v31 = vpop.permute.xlu0 %1102  ;;  %v6910_v29 = vpop.permute.xlu1 %1051 }
 0x8f0   : > { %9630 = vst [vmem:[#allocation32_spill] sm:$0xff] %v6908_v31  ;;  %9631 = vst [vmem:[#allocation33_spill] sm:$0xff] %v6910_v29  ;;  %v1482_v31 = vrot.slane %v1474_v37, %v6123_v11  ;;  %v1786_v37 = vrot.slane %v1778_v55, %v6123_v11 }
 0x8f1   : > { %1277 = vrot.lane.b32.xlu0 %v6722_v61, %s6065_s20  ;;  %1226 = vrot.lane.b32.xlu1 %v6722_v61, %s9632_s15  ;;  %s9637_s20 = smov 56  }
 0x8f3   : > { %v6916_v53 = vpop.permute.xlu0 %1108  ;;  %v6918_v23 = vpop.permute.xlu1 %1057 }
 0x8f4   : > { %9633 = vst [vmem:[#allocation34_spill] sm:$0xff] %v6916_v53  ;;  %9634 = vst [vmem:[#allocation35_spill] sm:$0xff] %v6918_v23  ;;  %v1762_v53 = vcombine.low %v6804_v57, %v6812_v38 }
 0x8f5   : > { %1283 = vrot.lane.b32.xlu0 %v6722_v61, %s6066_s19  ;;  %1232 = vrot.lane.b32.xlu1 %v6722_v61, %s9635_s26  ;;  %s9639_s19 = smov 52   ;;  %s6075_s26 = smov 73  }
 0x8f7   : > { %v6924_v51 = vpop.permute.xlu0 %1114  ;;  %v6926_v25 = vpop.permute.xlu1 %1063 }
 0x8f8   : > { %9636 = vst [vmem:[#allocation36_spill] sm:$0xff] %v6924_v51  ;;  %v1746_v51 = vcombine.low %v6862_v46, %v6870_v58 }
 0x8f9   : > { %1289 = vrot.lane.b32.xlu0 %v6722_v61, %s6067_s16  ;;  %1238 = vrot.lane.b32.xlu1 %v6722_v61, %s9637_s20  ;;  %s9641_s16 = smov 48  }
 0x8fa   : > { %v1754_v62 = vrot.slane %v1746_v51, %v6123_v11 }
 0x8fb   : > { %v6932_v47 = vpop.permute.xlu0 %1120  ;;  %v6934_v16 = vpop.permute.xlu1 %1069 }
 0x8fc   : > { %9638 = vst [vmem:[#allocation37_spill] sm:$0xff] %v6932_v47  ;;  %v1522_v47 = vcombine.low %v1466_v45, %v1482_v31 }
 0x8fd   : > { %1295 = vrot.lane.b32.xlu0 %v6722_v61, %s6068_s28  ;;  %1244 = vrot.lane.b32.xlu1 %v6722_v61, %s9639_s19  ;;  %s9643_s28 = smov 44   ;;  %s6077_s19 = smov 65  }
 0x8fe   : > { %v1530_v51 = vrot.slane %v1522_v47, %v6126_v12 }
 0x8ff   : > { %v6942_v22 = vpop.permute.xlu0 %1126  ;;  %v6944_v41 = vpop.permute.xlu1 %1075 }
 0x900   : > { %9640 = vst [vmem:[#allocation38_spill] sm:$0xff] %v6942_v22  ;;  %v1770_v22 = vrot.slane %v1762_v53, %v6123_v11 }
 0x901   : > { %1301 = vrot.lane.b32.xlu0 %v6722_v61, %s6069_s4  ;;  %1250 = vrot.lane.b32.xlu1 %v6722_v61, %s9641_s16  ;;  %s9646_s4 = smov 40  }
 0x902   : > { %v1826_v15 = vcombine.low %v1770_v22, %v1786_v37 }
 0x903   : > { %v6959_v2 = vpop.permute.xlu0 %1133  ;;  %v6961_v5 = vpop.permute.xlu1 %1081 }
 0x904   : > { %9642 = vst [vmem:[#allocation39_spill] sm:$0xff] %v6959_v2  ;;  %v1730_v2 = vcombine.low %v6788_v35, %v6796_v6 }
 0x905   : > { %1307 = vrot.lane.b32.xlu0 %v6722_v61, %s6070_s8  ;;  %1256 = vrot.lane.b32.xlu1 %v6722_v61, %s9643_s28  ;;  %s9649_s8 = smov 36  }
 0x906   : > { %v1738_v18 = vrot.slane %v1730_v2, %v6123_v11 }
 0x907   : > { %v6977_v44 = vpop.permute.xlu0 %1139  ;;  %v6979_v54 = vpop.permute.xlu1 %1087 }
 0x908   : > { %9644 = vst [vmem:[#allocation40_spill] sm:$0xff] %v6977_v44  ;;  %9645 = vst [vmem:[#allocation41_spill] sm:$0xff] %v6979_v54  ;;  %v1562_v44 = vrot.slane %v1554_v19, %v6126_v12  ;;  %v1794_v54 = vcombine.low %v1738_v18, %v1754_v62 }
 0x909   : > { %1313 = vrot.lane.b32.xlu0 %v6722_v61, %s6071_s14  ;;  %1262 = vrot.lane.b32.xlu1 %v6722_v61, %s9646_s4  ;;  %s9653_s14 = smov 32  }
 0x90a   : > { %v7002_v2 = vcombine.low %v1530_v51, %v1562_v44  ;;  %v1802_v19 = vrot.slane %v1794_v54, %v6126_v12  ;;  %v1523_v54 = vcombine.high %v1466_v45, %v1482_v31 }
 0x90b   : > { %v6988_v27 = vpop.permute.xlu0 %1145  ;;  %v6990_v55 = vpop.permute.xlu1 %1093 }
 0x90c   : > { %9647 = vst [vmem:[#allocation42_spill] sm:$0xff] %v6988_v27  ;;  %9648 = vst [vmem:[#allocation43_spill] sm:$0xff] %v6990_v55  ;;  %v1834_v27 = vrot.slane %v1826_v15, %v6126_v12  ;;  %v1555_v15 = vcombine.high %v1498_v3, %v1514_v33  ;;  %v1795_v3 = vcombine.high %v1738_v18, %v1754_v62 }
 0x90d   : > { %1319 = vrot.lane.b32.xlu0 %v6722_v61, %s6072_s23  ;;  %1268 = vrot.lane.b32.xlu1 %v6722_v61, %s9649_s8  ;;  %9652 = vst [vmem:[#allocation46_spill] sm:$0xff] %v7002_v2  ;;  %s9658_s23 = smov 28   ;;  %v1537_v31 = vrot.slane %v1523_v54, %v6126_v12  ;;  %v1322_v62 = vcombine.low %v6610_v59, %v6742_v39  ;;  %s6079_s8 = smov 119  }
 0x90e   : > { %v7014_v47 = vcombine.low %v1802_v19, %v1834_v27  ;;  %v1569_v33 = vrot.slane %v1555_v15, %v6126_v12  ;;  %v1338_v18 = vcombine.low %v6734_v8, %v6750_v20  ;;  %v1491_v15 = vcombine.high %v6740_v9, %v6748_v40 }
 0x90f   : > { %v6998_v53 = vpop.permute.xlu0 %1151  ;;  %v7000_v48 = vpop.permute.xlu1 %1099  ;;  %v1475_v54 = vcombine.high %v6798_v7, %v6806_v36  ;;  %v7082_v9 = vrot.slane %v1322_v62, %v6123_v11  ;;  %v1626_v36 = vcombine.low %v6772_v26, %v6780_v30 }
 0x910   : > { %9650 = vst [vmem:[#allocation44_spill] sm:$0xff] %v6998_v53  ;;  %9651 = vst [vmem:[#allocation45_spill] sm:$0xff] %v7000_v48  ;;  %v7085_v40 = vrot.slane %v1338_v18, %v6123_v11  ;;  %v7104_v62 = vrot.slane %v1491_v15, %v6123_v11  ;;  %v1747_v18 = vcombine.high %v6862_v46, %v6870_v58 }
 0x911   : > { %1274 = vrot.lane.b32.xlu1 %v6722_v61, %s9653_s14  ;;  %3628 = vrot.lane.b32.xlu0 %v7002_v2, %s9654_s25  ;;  %9657 = vst [vmem:[#allocation49_spill] sm:$0xff] %v7014_v47  ;;  %v7024_v2 = vcombine.high %v1530_v51, %v1562_v44  ;;  %v1507_v51 = vcombine.high %v6814_v42, %v6822_v49 }
 0x912   : > { %v1459_v42 = vcombine.high %v6790_v17, %v6732_v32  ;;  %v1642_v49 = vcombine.low %v6846_v24, %v6854_v10  ;;  %v1779_v32 = vcombine.high %v6878_v60, %v6886_v13  ;;  %v7107_v60 = vrot.slane %v1475_v54, %v6123_v11 }
 0x913   : > { %v7010_v55 = vpop.permute.xlu0 %1157  ;;  %v7012_v29 = vpop.permute.xlu1 %1105  ;;  %9660 = vst [vmem:[#allocation51_spill] sm:$0xff] %v7024_v2  ;;  %v7088_v7 = vrot.slane %v1507_v51, %v6123_v11  ;;  %v1763_v13 = vcombine.high %v6804_v57, %v6812_v38  ;;  %v1594_v51 = vcombine.low %v6756_v1, %v6764_v56  ;;  %v1731_v57 = vcombine.high %v6788_v35, %v6796_v6 }
 0x914   : > { %9655 = vst [vmem:[#allocation47_spill] sm:$0xff] %v7010_v55  ;;  %9656 = vst [vmem:[#allocation48_spill] sm:$0xff] %v7012_v29  ;;  %v1827_v55 = vcombine.high %v1770_v22, %v1786_v37  ;;  %v1370_v22 = vcombine.low %v6766_v43, %v6782_v34  ;;  %v7121_v15 = vrot.slane %v1642_v49, %v6123_v11 }
 0x915   : > { %1280 = vrot.lane.b32.xlu1 %v6722_v61, %s9658_s23  ;;  %3632 = vrot.lane.b32.xlu0 %v7014_v47, %s9654_s25  ;;  %v7034_v47 = vcombine.high %v1802_v19, %v1834_v27  ;;  %v7048_v27 = vcombine.low %v1537_v31, %v1569_v33  ;;  %v1354_v19 = vcombine.low %v6758_v14, %v6774_v28 }
 0x916   : > { %v1841_v37 = vrot.slane %v1827_v55, %v6126_v12  ;;  %v1809_v55 = vrot.slane %v1795_v3, %v6126_v12  ;;  %v1570_v38 = vcombine.low %v7104_v62, %v7088_v7  ;;  %v7132_v46 = vrot.slane %v1779_v32, %v6123_v11 }
 0x917   : > { %v7020_v53 = vpop.permute.xlu0 %1163  ;;  %v7022_v48 = vpop.permute.xlu1 %1111  ;;  %9663 = vst [vmem:[#allocation53_spill] sm:$0xff] %v7034_v47  ;;  %9665 = vst [vmem:[#allocation54_spill] sm:$0xff] %v7048_v27  ;;  %v7093_v17 = vrot.slane %v1354_v19, %v6123_v11  ;;  %v7134_v58 = vcombine.high %v1537_v31, %v1569_v33  ;;  %v7139_v49 = vrot.slane %v1626_v36, %v6123_v11 }
 0x918   : > { %9659 = vst [vmem:[#allocation50_spill] sm:$0xff] %v7020_v53  ;;  %v7079_v3 = vcombine.low %v1809_v55, %v1841_v37  ;;  %v7149_v6 = vrot.slane %v1763_v13, %v6123_v11  ;;  %v7152_v33 = vrot.slane %v1747_v18, %v6123_v11  ;;  %v7157_v31 = vrot.slane %v1594_v51, %v6123_v11 }
 0x919   : > { %1286 = vrot.lane.b32.xlu1 %v6722_v61, %s9661_s27  ;;  %3660 = vrot.lane.b32.xlu0 %v7024_v2, %s9654_s25  ;;  %9672 = vst [vmem:[#allocation59_spill] sm:$0xff] %v7134_v58  ;;  %v1690_v32 = vcombine.low %v7139_v49, %v7121_v15  ;;  %v7167_v13 = vrot.slane %v1731_v57, %v6123_v11 }
 0x91a   : > { %9668 = vst [vmem:[#allocation56_spill] sm:$0xff] %v7079_v3  ;;  %v1842_v18 = vcombine.low %v7149_v6, %v7132_v46  ;;  %v7171_v53 = vcombine.high %v1809_v55, %v1841_v37  ;;  %v1578_v51 = vrot.slane %v1570_v38, %v6126_v12 }
 0x91b   : > { %v7030_v29 = vpop.permute.xlu0 %1169  ;;  %v7032_v23 = vpop.permute.xlu1 %1117 }
 0x91c   : > { %9662 = vst [vmem:[#allocation52_spill] sm:$0xff] %v7030_v29  ;;  %9676 = vst [vmem:[#allocation62_spill] sm:$0xff] %v7171_v53 }
 0x91d   : > { %1292 = vrot.lane.b32.xlu1 %v6722_v61, %s9664_s30  ;;  %3664 = vrot.lane.b32.xlu0 %v7034_v47, %s9654_s25  ;;  %v7069_v47 = vrot.slane %v1370_v22, %v6123_v11  ;;  %v1610_v22 = vcombine.low %v6830_v50, %v6838_v52 }
 0x91f   : > { %v7044_v44 = vpop.permute.xlu0 %1175  ;;  %v7046_v45 = vpop.permute.xlu1 %1123  ;;  %v1418_v19 = vcombine.low %v7093_v17, %v7069_v47 }
 0x921   : > { %1298 = vrot.lane.b32.xlu1 %v6722_v61, %s9666_s17  ;;  %3692 = vrot.lane.b32.xlu0 %v7048_v27, %s9654_s25 }
 0x923   : > { %v7075_v2 = vpop.permute.xlu0 %1181  ;;  %v7077_v27 = vpop.permute.xlu1 %1129 }
 0x924   : > { %9667 = vst [vmem:[#allocation55_spill] sm:$0xff] %v7075_v2 }
 0x925   : > { %1304 = vrot.lane.b32.xlu1 %v6722_v61, %s9669_s5  ;;  %3696 = vrot.lane.b32.xlu0 %v7079_v3, %s9654_s25  ;;  %v7118_v3 = vrot.slane %v1459_v42, %v6123_v11  ;;  %v1386_v42 = vcombine.low %v7082_v9, %v7085_v40 }
 0x927   : > { %v7123_v54 = vpop.permute.xlu0 %1187  ;;  %v7125_v2 = vpop.permute.xlu1 %1136  ;;  %v1538_v35 = vcombine.low %v7118_v3, %v7107_v60 }
 0x928   : > { %9670 = vst [vmem:[#allocation57_spill] sm:$0xff] %v7123_v54  ;;  %9671 = vst [vmem:[#allocation58_spill] sm:$0xff] %v7125_v2  ;;  %v7142_v54 = vrot.slane %v1610_v22, %v6123_v11  ;;  %v1426_v2 = vrot.slane %v1418_v19, %v6126_v12  ;;  %v1810_v19 = vcombine.low %v7167_v13, %v7152_v33 }
 0x929   : > { %1310 = vrot.lane.b32.xlu1 %v6722_v61, %s9673_s6  ;;  %3724 = vrot.lane.b32.xlu0 %v7134_v58, %s9654_s25  ;;  %v1546_v57 = vrot.slane %v1538_v35, %v6126_v12 }
 0x92a   : > { %v1658_v58 = vcombine.low %v7157_v31, %v7142_v54  ;;  %v1818_v35 = vrot.slane %v1810_v19, %v6126_v12 }
 0x92b   : > { %v7161_v36 = vpop.permute.xlu0 %1193  ;;  %v7163_v22 = vpop.permute.xlu1 %1142  ;;  %v7191_v29 = vcombine.low %v1546_v57, %v1578_v51 }
 0x92c   : > { %9674 = vst [vmem:[#allocation60_spill] sm:$0xff] %v7161_v36  ;;  %9675 = vst [vmem:[#allocation61_spill] sm:$0xff] %v7163_v22  ;;  %v1394_v36 = vrot.slane %v1386_v42, %v6126_v12  ;;  %v1698_v22 = vrot.slane %v1690_v32, %v6126_v12  ;;  %v1850_v42 = vrot.slane %v1842_v18, %v6126_v12 }
 0x92d   : > { %1316 = vrot.lane.b32.xlu1 %v6722_v61, %s9677_s7  ;;  %3728 = vrot.lane.b32.xlu0 %v7171_v53, %s9654_s25  ;;  %9681 = vst [vmem:[#allocation66_spill] sm:$0xff] %v7191_v29  ;;  %v1666_v61 = vrot.slane %v1658_v58, %v6126_v12  ;;  %v1419_v58 = vcombine.high %v7093_v17, %v7069_v47 }
 0x92e   : > { %v7188_v38 = vcombine.low %v1394_v36, %v1426_v2  ;;  %v7206_v32 = vcombine.low %v1818_v35, %v1850_v42  ;;  %v1539_v47 = vcombine.high %v7118_v3, %v7107_v60  ;;  %v1659_v60 = vcombine.high %v7157_v31, %v7142_v54 }
 0x92f   : > { %v7184_v37 = vpop.permute.xlu0 %1199  ;;  %v7186_v55 = vpop.permute.xlu1 %1148 }
 0x930   : > { %9678 = vst [vmem:[#allocation63_spill] sm:$0xff] %v7184_v37  ;;  %9679 = vst [vmem:[#allocation64_spill] sm:$0xff] %v7186_v55  ;;  %v7204_v55 = vcombine.low %v1666_v61, %v1698_v22 }
 0x931   : > { %9680 = vst [vmem:[#allocation65_spill] sm:$0xff] %v7188_v38  ;;  %3626 = vrot.lane.b32.xlu1 %v7188_v38, %s9654_s25  ;;  %3756 = vrot.lane.b32.xlu0 %v7191_v29, %s9654_s25  ;;  %9684 = vst [vmem:[#allocation69_spill] sm:$0xff] %v7206_v32  ;;  %v7218_v38 = vcombine.high %v1394_v36, %v1426_v2  ;;  %v1571_v29 = vcombine.high %v7104_v62, %v7088_v7 }
 0x932   : > { %9683 = vst [vmem:[#allocation68_spill] sm:$0xff] %v7204_v55  ;;  %v1691_v2 = vcombine.high %v7139_v49, %v7121_v15  ;;  %v7238_v62 = vcombine.high %v1666_v61, %v1698_v22  ;;  %v7243_v36 = vcombine.high %v1818_v35, %v1850_v42  ;;  %v1811_v61 = vcombine.high %v7167_v13, %v7152_v33 }
 0x933   : > { %v7200_v53 = vpop.permute.xlu0 %1205  ;;  %v7202_v37 = vpop.permute.xlu1 %1154  ;;  %9685 = vst [vmem:[#allocation70_spill] sm:$0xff] %v7218_v38  ;;  %v1585_v3 = vrot.slane %v1571_v29, %v6126_v12  ;;  %v1371_v49 = vcombine.high %v6766_v43, %v6782_v34  ;;  %v2050_v22 = vcombine.low %v6944_v41, %v6961_v5  ;;  %v1355_v43 = vcombine.high %v6758_v14, %v6774_v28 }
 0x934   : > { %9682 = vst [vmem:[#allocation67_spill] sm:$0xff] %v7200_v53  ;;  %v7222_v53 = vcombine.high %v1546_v57, %v1578_v51  ;;  %9687 = vst [vmem:[#allocation72_spill] sm:$0xff] %v7238_v62  ;;  %v1705_v31 = vrot.slane %v1691_v2, %v6126_v12  ;;  %v1339_v51 = vcombine.high %v6734_v8, %v6750_v20 }
 0x935   : > { %3630 = vrot.lane.b32.xlu1 %v7204_v55, %s9654_s25  ;;  %3760 = vrot.lane.b32.xlu0 %v7206_v32, %s9654_s25  ;;  %v1387_v55 = vcombine.high %v7082_v9, %v7085_v40  ;;  %v1433_v9 = vrot.slane %v1419_v58, %v6126_v12  ;;  %v1843_v40 = vcombine.high %v7149_v6, %v7132_v46 }
 0x936   : > { %9686 = vst [vmem:[#allocation71_spill] sm:$0xff] %v7222_v53  ;;  %9688 = vst [vmem:[#allocation73_spill] sm:$0xff] %v7243_v36  ;;  %v1553_v46 = vrot.slane %v1539_v47, %v6126_v12  ;;  %v1673_v34 = vrot.slane %v1659_v60, %v6126_v12  ;;  %v1323_v57 = vcombine.high %v6610_v59, %v6742_v39 }
 0x937   : > { %v7214_v18 = vpop.permute.xlu0 %1211  ;;  %v7216_v19 = vpop.permute.xlu1 %1160  ;;  %v1401_v15 = vrot.slane %v1387_v55, %v6126_v12  ;;  %v1857_v13 = vrot.slane %v1843_v40, %v6126_v12  ;;  %v2034_v55 = vcombine.low %v6868_v21, %v6876_v63  ;;  %v2018_v42 = vcombine.low %v6926_v25, %v6934_v16 }
 0x938   : > { %v7267_v33 = vcombine.low %v1553_v46, %v1585_v3  ;;  %v1825_v8 = vrot.slane %v1811_v61, %v6126_v12  ;;  %v7287_v20 = vrot.slane %v1371_v49, %v6123_v11  ;;  %v1643_v14 = vcombine.high %v6846_v24, %v6854_v10 }
 0x939   : > { %3658 = vrot.lane.b32.xlu1 %v7218_v38, %s9654_s25  ;;  %3788 = vrot.lane.b32.xlu0 %v7222_v53, %s9654_s25  ;;  %v7262_v54 = vcombine.low %v1401_v15, %v1433_v9  ;;  %v7295_v39 = vcombine.low %v1673_v34, %v1705_v31  ;;  %v2002_v35 = vcombine.low %v6852_v0, %v6860_v4 }
 0x93a   : > { %9690 = vst [vmem:[#allocation75_spill] sm:$0xff] %v7267_v33  ;;  %v2058_v58 = vrot.slane %v2050_v22, %v6123_v11  ;;  %v7300_v47 = vcombine.low %v1825_v8, %v1857_v13  ;;  %v7303_v2 = vrot.slane %v1339_v51, %v6123_v11  ;;  %v7306_v40 = vrot.slane %v1355_v43, %v6123_v11 }
 0x93b   : > { %v7234_v17 = vpop.permute.xlu0 %1217  ;;  %v7236_v7 = vpop.permute.xlu1 %1166  ;;  %9689 = vst [vmem:[#allocation74_spill] sm:$0xff] %v7262_v54  ;;  %9692 = vst [vmem:[#allocation77_spill] sm:$0xff] %v7295_v39  ;;  %v1627_v24 = vcombine.high %v6772_v26, %v6780_v30  ;;  %v1611_v10 = vcombine.high %v6830_v50, %v6838_v52  ;;  %v7315_v60 = vrot.slane %v1323_v57, %v6123_v11 }
 0x93c   : > { %9693 = vst [vmem:[#allocation78_spill] sm:$0xff] %v7300_v47  ;;  %v2042_v61 = vrot.slane %v2034_v55, %v6123_v11  ;;  %v2026_v49 = vrot.slane %v2018_v42, %v6123_v11  ;;  %v1595_v22 = vcombine.high %v6756_v1, %v6764_v56  ;;  %v1434_v26 = vcombine.low %v7306_v40, %v7287_v20 }
 0x93d   : > { %3662 = vrot.lane.b32.xlu1 %v7238_v62, %s9654_s25  ;;  %3792 = vrot.lane.b32.xlu0 %v7243_v36, %s9654_s25  ;;  %v7326_v30 = vrot.slane %v1643_v14, %v6123_v11  ;;  %v7332_v51 = vcombine.high %v1401_v15, %v1433_v9  ;;  %v2010_v43 = vrot.slane %v2002_v35, %v6123_v11 }
 0x93e   : > { %v2098_v57 = vcombine.low %v2042_v61, %v2058_v58  ;;  %v7335_v55 = vcombine.high %v1553_v46, %v1585_v3  ;;  %v1402_v1 = vcombine.low %v7315_v60, %v7303_v2  ;;  %v7340_v56 = vrot.slane %v1627_v24, %v6123_v11 }
 0x93f   : > { %v7258_v29 = vpop.permute.xlu0 %1223  ;;  %v7260_v6 = vpop.permute.xlu1 %1172  ;;  %9695 = vst [vmem:[#allocation80_spill] sm:$0xff] %v7332_v51  ;;  %v7343_v42 = vrot.slane %v1611_v10, %v6123_v11  ;;  %v2066_v14 = vcombine.low %v2010_v43, %v2026_v49  ;;  %v7350_v9 = vrot.slane %v1595_v22, %v6123_v11  ;;  %v7358_v35 = vcombine.high %v1673_v34, %v1705_v31 }
 0x940   : > { %9696 = vst [vmem:[#allocation81_spill] sm:$0xff] %v7335_v55  ;;  %v1706_v3 = vcombine.low %v7340_v56, %v7326_v30  ;;  %v1442_v24 = vrot.slane %v1434_v26, %v6126_v12  ;;  %v7361_v10 = vcombine.high %v1825_v8, %v1857_v13  ;;  %v1410_v22 = vrot.slane %v1402_v1, %v6126_v12 }
 0x941   : > { %3690 = vrot.lane.b32.xlu1 %v7262_v54, %s9654_s25  ;;  %3820 = vrot.lane.b32.xlu0 %v7267_v33, %s9654_s25  ;;  %9698 = vst [vmem:[#allocation83_spill] sm:$0xff] %v7358_v35  ;;  %v1674_v36 = vcombine.low %v7350_v9, %v7343_v42  ;;  %v2074_v31 = vrot.slane %v2066_v14, %v6126_v12  ;;  %v9720_v33 = vld [vmem:[#allocation23_spill] sm:$0xff] }
 0x942   : > { %9699 = vst [vmem:[#allocation84_spill] sm:$0xff] %v7361_v10  ;;  %v7376_v13 = vcombine.low %v1410_v22, %v1442_v24  ;;  %v1714_v8 = vrot.slane %v1706_v3, %v6126_v12  ;;  %v2099_v32 = vcombine.high %v2042_v61, %v2058_v58  ;;  %v2035_v14 = vcombine.high %v6868_v21, %v6876_v63 }
 0x943   : > { %v7291_v28 = vpop.permute.xlu0 %1229  ;;  %v7293_v59 = vpop.permute.xlu1 %1178  ;;  %v1682_v1 = vrot.slane %v1674_v36, %v6126_v12  ;;  %v2003_v58 = vcombine.high %v6852_v0, %v6860_v4  ;;  %v1435_v0 = vcombine.high %v7306_v40, %v7287_v20  ;;  %v1707_v20 = vcombine.high %v7340_v56, %v7326_v30 }
 0x944   : > { %9691 = vst [vmem:[#allocation76_spill] sm:$0xff] %v7291_v28  ;;  %9701 = vst [vmem:[#allocation86_spill] sm:$0xff] %v7376_v13  ;;  %v2113_v21 = vrot.slane %v2099_v32, %v6126_v12  ;;  %v7417_v32 = vcombine.high %v1410_v22, %v1442_v24 }
 0x945   : > { %3694 = vrot.lane.b32.xlu1 %v7295_v39, %s9654_s25  ;;  %3824 = vrot.lane.b32.xlu0 %v7300_v47, %s9654_s25  ;;  %v2106_v47 = vrot.slane %v2098_v57, %v6126_v12  ;;  %v2051_v57 = vcombine.high %v6944_v41, %v6961_v5  ;;  %v2067_v39 = vcombine.high %v2010_v43, %v2026_v49 }
 0x946   : > { %v7396_v41 = vcombine.low %v1682_v1, %v1714_v8  ;;  %9705 = vst [vmem:[#allocation90_spill] sm:$0xff] %v7417_v32  ;;  %v2017_v49 = vrot.slane %v2003_v58, %v6123_v11  ;;  %v7434_v22 = vcombine.high %v1682_v1, %v1714_v8  ;;  %v9709_v8 = vld [vmem:[#allocation35_spill] sm:$0xff]  ;;  %v9710_v1 = vld [vmem:[#allocation33_spill] sm:$0xff] }
 0x947   : > { %v7328_v50 = vpop.permute.xlu0 %1235  ;;  %v7330_v52 = vpop.permute.xlu1 %1184  ;;  %v2065_v36 = vrot.slane %v2051_v57, %v6123_v11  ;;  %v7401_v61 = vcombine.high %v2074_v31, %v2106_v47  ;;  %v2081_v63 = vrot.slane %v2067_v39, %v6126_v12  ;;  %v1449_v57 = vrot.slane %v1435_v0, %v6126_v12 }
 0x948   : > { %9694 = vst [vmem:[#allocation79_spill] sm:$0xff] %v7328_v50  ;;  %9703 = vst [vmem:[#allocation88_spill] sm:$0xff] %v7396_v41  ;;  %v1914_v58 = vcombine.low %v9710_v1, %v9709_v8 }
 0x949   : > { %3722 = vrot.lane.b32.xlu1 %v7332_v51, %s9654_s25  ;;  %3852 = vrot.lane.b32.xlu0 %v7335_v55, %s9654_s25  ;;  %9704 = vst [vmem:[#allocation89_spill] sm:$0xff] %v7401_v61  ;;  %9707 = vst [vmem:[#allocation92_spill] sm:$0xff] %v7434_v22  ;;  %v9719_v55 = vld [vmem:[#allocation24_spill] sm:$0xff] }
 0x94a   : > { %v1866_v53 = vcombine.low %v9720_v33, %v9719_v55 }
 0x94b   : > { %v7354_v15 = vpop.permute.xlu0 %1241  ;;  %v7356_v46 = vpop.permute.xlu1 %1190 }
 0x94c   : > { %9697 = vst [vmem:[#allocation82_spill] sm:$0xff] %v7354_v15 }
 0x94d   : > { %3726 = vrot.lane.b32.xlu1 %v7358_v35, %s9654_s25  ;;  %3856 = vrot.lane.b32.xlu0 %v7361_v10, %s9654_s25  ;;  %v7381_v35 = vcombine.low %v2074_v31, %v2106_v47  ;;  %v2019_v10 = vcombine.high %v6926_v25, %v6934_v16  ;;  %v2049_v16 = vrot.slane %v2035_v14, %v6123_v11 }
 0x94e   : > { %v7420_v31 = vcombine.low %v2081_v63, %v2113_v21  ;;  %v7437_v14 = vcombine.high %v2081_v63, %v2113_v21 }
 0x94f   : > { %v7372_v34 = vpop.permute.xlu0 %1247  ;;  %v7374_v26 = vpop.permute.xlu1 %1196  ;;  %9702 = vst [vmem:[#allocation87_spill] sm:$0xff] %v7381_v35  ;;  %v2033_v25 = vrot.slane %v2019_v10, %v6123_v11  ;;  %v2114_v43 = vcombine.low %v2049_v16, %v2065_v36  ;;  %v1403_v10 = vcombine.high %v7315_v60, %v7303_v2  ;;  %v1675_v60 = vcombine.high %v7350_v9, %v7343_v42 }
 0x950   : > { %9700 = vst [vmem:[#allocation85_spill] sm:$0xff] %v7372_v34  ;;  %9706 = vst [vmem:[#allocation91_spill] sm:$0xff] %v7420_v31  ;;  %v1721_v42 = vrot.slane %v1707_v20, %v6126_v12  ;;  %v2115_v9 = vcombine.high %v2049_v16, %v2065_v36  ;;  %v9718_v20 = vld [vmem:[#allocation37_spill] sm:$0xff]  ;;  %v2290_v16 = vcombine.low %v7022_v48, %v7032_v23 }
 0x951   : > { %3754 = vrot.lane.b32.xlu1 %v7376_v13, %s9654_s25  ;;  %3636 = vrot.lane.b32.xlu0 %v7381_v35, %s9654_s25  ;;  %v2082_v39 = vcombine.low %v2017_v49, %v2033_v25  ;;  %9708 = vst [vmem:[#allocation93_spill] sm:$0xff] %v7437_v14  ;;  %v2122_v2 = vrot.slane %v2114_v43, %v6126_v12  ;;  %v9717_v35 = vld [vmem:[#allocation38_spill] sm:$0xff] }
 0x952   : > { %v1417_v30 = vrot.slane %v1403_v10, %v6126_v12  ;;  %v2322_v43 = vcombine.low %v7046_v45, %v7077_v27  ;;  %v1689_v38 = vrot.slane %v1675_v60, %v6126_v12  ;;  %v2306_v36 = vcombine.low %v9718_v20, %v9717_v35 }
 0x953   : > { %v7392_v3 = vpop.permute.xlu0 %1253  ;;  %v7394_v5 = vpop.permute.xlu1 %1202  ;;  %v2090_v56 = vrot.slane %v2082_v39, %v6126_v12 }
 0x954   : > { %v7454_v0 = vcombine.low %v1417_v30, %v1449_v57  ;;  %v7481_v60 = vcombine.low %v1689_v38, %v1721_v42  ;;  %v2330_v54 = vrot.slane %v2322_v43, %v6123_v11 }
 0x955   : > { %3758 = vrot.lane.b32.xlu1 %v7396_v41, %s9654_s25  ;;  %3668 = vrot.lane.b32.xlu0 %v7401_v61, %s9654_s25  ;;  %v7459_v10 = vcombine.low %v2090_v56, %v2122_v2  ;;  %v9714_v61 = vld [vmem:[#allocation25_spill] sm:$0xff]  ;;  %v7486_v28 = vcombine.high %v2090_v56, %v2122_v2  ;;  %v1874_v2 = vrot.slane %v1866_v53, %v6123_v11 }
 0x956   : > { %9711 = vst [vmem:[#allocation35_spill] sm:$0xff] %v7454_v0  ;;  %v9716_v41 = vld [vmem:[#allocation29_spill] sm:$0xff] }
 0x957   : > { %v7413_v4 = vpop.permute.xlu0 %1259  ;;  %v7415_v47 = vpop.permute.xlu1 %1208  ;;  %9712 = vst [vmem:[#allocation33_spill] sm:$0xff] %v7459_v10  ;;  %9726 = vst [vmem:[#allocation29_spill] sm:$0xff] %v7486_v28 }
 0x959   : > { %3786 = vrot.lane.b32.xlu1 %v7417_v32, %s9654_s25  ;;  %3700 = vrot.lane.b32.xlu0 %v7420_v31, %s9654_s25  ;;  %v2083_v31 = vcombine.high %v2017_v49, %v2033_v25  ;;  %v1922_v32 = vrot.slane %v1914_v58, %v6123_v11  ;;  %v9724_v25 = vld [vmem:[#allocation36_spill] sm:$0xff]  ;;  %v9725_v49 = vld [vmem:[#allocation34_spill] sm:$0xff]  ;;  %v2314_v58 = vrot.slane %v2306_v36, %v6123_v11 }
 0x95a   : > { %v2274_v51 = vcombine.low %v9725_v49, %v9724_v25 }
 0x95b   : > { %v7430_v40 = vpop.permute.xlu0 %1265  ;;  %v7432_v24 = vpop.permute.xlu1 %1214  ;;  %v2097_v43 = vrot.slane %v2083_v31, %v6126_v12 }
 0x95d   : > { %3790 = vrot.lane.b32.xlu1 %v7434_v22, %s9654_s25  ;;  %3732 = vrot.lane.b32.xlu0 %v7437_v14, %s9654_s25  ;;  %v9713_v14 = vld [vmem:[#allocation26_spill] sm:$0xff]  ;;  %v9715_v22 = vld [vmem:[#allocation31_spill] sm:$0xff] }
 0x95e   : > { %v1898_v39 = vcombine.low %v9714_v61, %v9713_v14  ;;  %v1882_v62 = vcombine.low %v9716_v41, %v9715_v22  ;;  %9723 = vst [vmem:[#allocation31_spill] sm:$0xff] %v7481_v60 }
 0x95f   : > { %v7450_v21 = vpop.permute.xlu0 %1271  ;;  %v7452_v63 = vpop.permute.xlu1 %1220 }
 0x960   : > { %v1906_v50 = vrot.slane %v1898_v39, %v6123_v11  ;;  %v1890_v15 = vrot.slane %v1882_v62, %v6123_v11  ;;  %v7503_v62 = vcombine.high %v1417_v30, %v1449_v57 }
 0x961   : > { %3818 = vrot.lane.b32.xlu1 %v7454_v0, %s9654_s25  ;;  %3764 = vrot.lane.b32.xlu0 %v7459_v10, %s9654_s25  ;;  %v2129_v10 = vrot.slane %v2115_v9, %v6126_v12 }
 0x962   : > { %v1962_v56 = vcombine.low %v1906_v50, %v1922_v32  ;;  %9729 = vst [vmem:[#allocation24_spill] sm:$0xff] %v7503_v62 }
 0x963   : > { %v7477_v13 = vpop.permute.xlu0 %1277  ;;  %v7479_v0 = vpop.permute.xlu1 %1226  ;;  %v7506_v36 = vcombine.low %v2097_v43, %v2129_v10 }
 0x964   : > { %9721 = vst [vmem:[#allocation26_spill] sm:$0xff] %v7477_v13  ;;  %9722 = vst [vmem:[#allocation25_spill] sm:$0xff] %v7479_v0  ;;  %v2298_v13 = vrot.slane %v2290_v16, %v6123_v11  ;;  %v2370_v0 = vcombine.low %v2314_v58, %v2330_v54  ;;  %v1930_v16 = vcombine.low %v1874_v2, %v1890_v15 }
 0x965   : > { %3822 = vrot.lane.b32.xlu1 %v7481_v60, %s9654_s25  ;;  %3796 = vrot.lane.b32.xlu0 %v7486_v28, %s9654_s25  ;;  %v2282_v60 = vrot.slane %v2274_v51, %v6123_v11  ;;  %9730 = vst [vmem:[#allocation23_spill] sm:$0xff] %v7506_v36  ;;  %v1970_v57 = vrot.slane %v1962_v56, %v6126_v12 }
 0x966   : > { %v7519_v51 = vcombine.high %v2097_v43, %v2129_v10  ;;  %v2378_v30 = vrot.slane %v2370_v0, %v6126_v12  ;;  %v2323_v0 = vcombine.high %v7046_v45, %v7077_v27  ;;  %v2371_v56 = vcombine.high %v2314_v58, %v2330_v54 }
 0x967   : > { %v7499_v9 = vpop.permute.xlu0 %1283  ;;  %v7501_v39 = vpop.permute.xlu1 %1232  ;;  %v2338_v28 = vcombine.low %v2282_v60, %v2298_v13  ;;  %v2339_v45 = vcombine.high %v2282_v60, %v2298_v13  ;;  %v1867_v27 = vcombine.high %v9720_v33, %v9719_v55 }
 0x968   : > { %9727 = vst [vmem:[#allocation38_spill] sm:$0xff] %v7499_v9  ;;  %9728 = vst [vmem:[#allocation37_spill] sm:$0xff] %v7501_v39  ;;  %v7516_v9 = vcombine.high %v1689_v38, %v1721_v42  ;;  %v1915_v38 = vcombine.high %v9710_v1, %v9709_v8  ;;  %v1963_v42 = vcombine.high %v1906_v50, %v1922_v32 }
 0x969   : > { %3850 = vrot.lane.b32.xlu1 %v7503_v62, %s9654_s25  ;;  %3828 = vrot.lane.b32.xlu0 %v7506_v36, %s9654_s25  ;;  %9733 = vst [vmem:[#allocation94_spill] sm:$0xff] %v7519_v51  ;;  %v1938_v62 = vrot.slane %v1930_v16, %v6126_v12  ;;  %v2346_v36 = vrot.slane %v2338_v28, %v6126_v12 }
 0x96a   : > { %9732 = vst [vmem:[#allocation34_spill] sm:$0xff] %v7516_v9  ;;  %v1883_v28 = vcombine.high %v9716_v41, %v9715_v22  ;;  %v1931_v8 = vcombine.high %v1874_v2, %v1890_v15  ;;  %v2307_v50 = vcombine.high %v9718_v20, %v9717_v35  ;;  %v2291_v32 = vcombine.high %v7022_v48, %v7032_v23 }
 0x96b   : > { %v7512_v53 = vpop.permute.xlu0 %1289  ;;  %v7514_v31 = vpop.permute.xlu1 %1238  ;;  %v7534_v43 = vcombine.low %v1938_v62, %v1970_v57  ;;  %v7538_v16 = vcombine.low %v2346_v36, %v2378_v30  ;;  %v1929_v54 = vrot.slane %v1915_v38, %v6123_v11  ;;  %v1977_v35 = vrot.slane %v1963_v42, %v6126_v12 }
 0x96c   : > { %9731 = vst [vmem:[#allocation36_spill] sm:$0xff] %v7512_v53  ;;  %v2275_v23 = vcombine.high %v9725_v49, %v9724_v25  ;;  %v2337_v48 = vrot.slane %v2323_v0, %v6123_v11  ;;  %v7565_v13 = vcombine.high %v2346_v36, %v2378_v30  ;;  %v2385_v22 = vrot.slane %v2371_v56, %v6126_v12 }
 0x96d   : > { %3854 = vrot.lane.b32.xlu1 %v7516_v9, %s9654_s25  ;;  %3860 = vrot.lane.b32.xlu0 %v7519_v51, %s9654_s25  ;;  %9735 = vst [vmem:[#allocation96_spill] sm:$0xff] %v7534_v43  ;;  %9736 = vst [vmem:[#allocation97_spill] sm:$0xff] %v7538_v16  ;;  %v1899_v51 = vcombine.high %v9714_v61, %v9713_v14  ;;  %v7559_v61 = vcombine.high %v1938_v62, %v1970_v57 }
 0x96e   : > { %9739 = vst [vmem:[#allocation100_spill] sm:$0xff] %v7565_v13  ;;  %v1897_v55 = vrot.slane %v1883_v28, %v6123_v11  ;;  %v1945_v14 = vrot.slane %v1931_v8, %v6126_v12  ;;  %v2321_v1 = vrot.slane %v2307_v50, %v6123_v11  ;;  %v2305_v20 = vrot.slane %v2291_v32, %v6123_v11 }
 0x96f   : > { %v7530_v53 = vpop.permute.xlu0 %1295  ;;  %v7532_v10 = vpop.permute.xlu1 %1244  ;;  %9738 = vst [vmem:[#allocation99_spill] sm:$0xff] %v7559_v61  ;;  %v1913_v33 = vrot.slane %v1899_v51, %v6123_v11  ;;  %v2353_v60 = vrot.slane %v2339_v45, %v6126_v12  ;;  %v1881_v25 = vrot.slane %v1867_v27, %v6123_v11  ;;  %v2289_v36 = vrot.slane %v2275_v23, %v6123_v11  ;;  %v9746_v23 = vld [vmem:[#allocation48_spill] sm:$0xff] }
 0x970   : > { %9734 = vst [vmem:[#allocation95_spill] sm:$0xff] %v7530_v53  ;;  %v7583_v62 = vcombine.low %v1945_v14, %v1977_v35  ;;  %v2386_v57 = vcombine.low %v2321_v1, %v2337_v48  ;;  %v7596_v56 = vcombine.high %v1945_v14, %v1977_v35  ;;  %v9747_v35 = vld [vmem:[#allocation45_spill] sm:$0xff] }
 0x971   : > { %3634 = vrot.lane.b32.xlu1 %v7534_v43, %s9654_s25  ;;  %3640 = vrot.lane.b32.xlu0 %v7538_v16, %s9654_s25  ;;  %v1978_v49 = vcombine.low %v1913_v33, %v1929_v54  ;;  %v7586_v51 = vcombine.low %v2353_v60, %v2385_v22  ;;  %v1946_v30 = vcombine.low %v1881_v25, %v1897_v55  ;;  %v9755_v16 = vld [vmem:[#allocation52_spill] sm:$0xff] }
 0x972   : > { %9741 = vst [vmem:[#allocation102_spill] sm:$0xff] %v7583_v62  ;;  %v2354_v38 = vcombine.low %v2289_v36, %v2305_v20  ;;  %9744 = vst [vmem:[#allocation105_spill] sm:$0xff] %v7596_v56  ;;  %v7599_v8 = vcombine.high %v2353_v60, %v2385_v22  ;;  %v2394_v50 = vrot.slane %v2386_v57, %v6126_v12 }
 0x973   : > { %v7555_v41 = vpop.permute.xlu0 %1301  ;;  %v7557_v15 = vpop.permute.xlu1 %1250  ;;  %9742 = vst [vmem:[#allocation103_spill] sm:$0xff] %v7586_v51  ;;  %v1986_v28 = vrot.slane %v1978_v49, %v6126_v12  ;;  %v1954_v32 = vrot.slane %v1946_v30, %v6126_v12  ;;  %v1979_v27 = vcombine.high %v1913_v33, %v1929_v54  ;;  %v2186_v14 = vcombine.low %v9747_v35, %v9746_v23  ;;  %v9753_v54 = vld [vmem:[#allocation43_spill] sm:$0xff]  ;;  %v9754_v33 = vld [vmem:[#allocation41_spill] sm:$0xff] }
 0x974   : > { %9737 = vst [vmem:[#allocation98_spill] sm:$0xff] %v7555_v41  ;;  %9745 = vst [vmem:[#allocation106_spill] sm:$0xff] %v7599_v8  ;;  %v2362_v45 = vrot.slane %v2354_v38, %v6126_v12  ;;  %v2387_v49 = vcombine.high %v2321_v1, %v2337_v48  ;;  %v2578_v57 = vcombine.low %v7236_v7, %v7260_v6  ;;  %v9757_v1 = vld [vmem:[#allocation27_spill] sm:$0xff] }
 0x975   : > { %3666 = vrot.lane.b32.xlu1 %v7559_v61, %s9654_s25  ;;  %3672 = vrot.lane.b32.xlu0 %v7565_v13, %s9654_s25  ;;  %v7614_v60 = vcombine.low %v1954_v32, %v1986_v28  ;;  %v9752_v61 = vld [vmem:[#allocation30_spill] sm:$0xff]  ;;  %v2154_v9 = vcombine.low %v9754_v33, %v9753_v54  ;;  %v2546_v48 = vcombine.low %v7202_v37, %v7216_v19 }
 0x976   : > { %v7618_v30 = vcombine.low %v2362_v45, %v2394_v50  ;;  %v2194_v43 = vrot.slane %v2186_v14, %v6123_v11  ;;  %v7645_v39 = vcombine.high %v2362_v45, %v2394_v50 }
 0x977   : > { %v7579_v58 = vpop.permute.xlu0 %1307  ;;  %v7581_v2 = vpop.permute.xlu1 %1256  ;;  %9749 = vst [vmem:[#allocation45_spill] sm:$0xff] %v7614_v60  ;;  %v2162_v14 = vrot.slane %v2154_v9, %v6123_v11 }
 0x978   : > { %9740 = vst [vmem:[#allocation101_spill] sm:$0xff] %v7579_v58  ;;  %9750 = vst [vmem:[#allocation107_spill] sm:$0xff] %v7618_v30  ;;  %v9762_v58 = vld [vmem:[#allocation47_spill] sm:$0xff] }
 0x979   : > { %3698 = vrot.lane.b32.xlu1 %v7583_v62, %s9654_s25  ;;  %3704 = vrot.lane.b32.xlu0 %v7586_v51, %s9654_s25  ;;  %v2355_v51 = vcombine.high %v2289_v36, %v2305_v20  ;;  %v2594_v62 = vcombine.low %v9755_v16, %v7044_v44  ;;  %v1993_v20 = vrot.slane %v1979_v27, %v6126_v12  ;;  %v9761_v36 = vld [vmem:[#allocation50_spill] sm:$0xff] }
 0x97a   : > { %9763 = vst [vmem:[#allocation41_spill] sm:$0xff] %v7645_v39  ;;  %v2554_v27 = vrot.slane %v2546_v48, %v6123_v11 }
 0x97b   : > { %v7592_v42 = vpop.permute.xlu0 %1313  ;;  %v7594_v0 = vpop.permute.xlu1 %1262  ;;  %v2369_v50 = vrot.slane %v2355_v51, %v6126_v12 }
 0x97c   : > { %9743 = vst [vmem:[#allocation104_spill] sm:$0xff] %v7592_v42  ;;  %v2562_v42 = vcombine.low %v9762_v58, %v9761_v36 }
 0x97d   : > { %3730 = vrot.lane.b32.xlu1 %v7596_v56, %s9654_s25  ;;  %3736 = vrot.lane.b32.xlu0 %v7599_v8, %s9654_s25  ;;  %v1947_v56 = vcombine.high %v1881_v25, %v1897_v55  ;;  %v9751_v8 = vld [vmem:[#allocation32_spill] sm:$0xff] }
 0x97e   : > { %v2170_v38 = vcombine.low %v9752_v61, %v9751_v8  ;;  %v9756_v55 = vld [vmem:[#allocation28_spill] sm:$0xff] }
 0x97f   : > { %v7610_v13 = vpop.permute.xlu0 %1319  ;;  %v7612_v22 = vpop.permute.xlu1 %1268  ;;  %v2138_v25 = vcombine.low %v9757_v1, %v9756_v55 }
 0x980   : > { %9748 = vst [vmem:[#allocation48_spill] sm:$0xff] %v7610_v13  ;;  %v2586_v13 = vrot.slane %v2578_v57, %v6123_v11  ;;  %v2178_v34 = vrot.slane %v2170_v38, %v6123_v11 }
 0x981   : > { %3762 = vrot.lane.b32.xlu1 %v7614_v60, %s9654_s25  ;;  %3768 = vrot.lane.b32.xlu0 %v7618_v30, %s9654_s25  ;;  %v7639_v60 = vcombine.high %v1954_v32, %v1986_v28  ;;  %v2401_v30 = vrot.slane %v2387_v49, %v6126_v12  ;;  %v1961_v28 = vrot.slane %v1947_v56, %v6126_v12 }
 0x982   : > { %v2602_v32 = vrot.slane %v2594_v62, %v6123_v11  ;;  %v2146_v45 = vrot.slane %v2138_v25, %v6123_v11  ;;  %v2234_v49 = vcombine.low %v2178_v34, %v2194_v43  ;;  %v2570_v56 = vrot.slane %v2562_v42, %v6123_v11 }
 0x983   : > { %v7635_v53 = vpop.permute.xlu0 %3628  ;;  %v7637_v41 = vpop.permute.xlu1 %1274  ;;  %9760 = vst [vmem:[#allocation43_spill] sm:$0xff] %v7639_v60  ;;  %v7663_v38 = vcombine.low %v1961_v28, %v1993_v20  ;;  %v7666_v62 = vcombine.low %v2369_v50, %v2401_v30  ;;  %v7679_v42 = vcombine.high %v2369_v50, %v2401_v30 }
 0x984   : > { %9758 = vst [vmem:[#allocation32_spill] sm:$0xff] %v7635_v53  ;;  %9759 = vst [vmem:[#allocation30_spill] sm:$0xff] %v7637_v41  ;;  %v2202_v48 = vcombine.low %v2146_v45, %v2162_v14  ;;  %v7676_v53 = vcombine.high %v1961_v28, %v1993_v20  ;;  %v2187_v20 = vcombine.high %v9747_v35, %v9746_v23 }
 0x985   : > { %3794 = vrot.lane.b32.xlu1 %v7639_v60, %s9654_s25  ;;  %3800 = vrot.lane.b32.xlu0 %v7645_v39, %s9654_s25  ;;  %9765 = vst [vmem:[#allocation28_spill] sm:$0xff] %v7663_v38  ;;  %v2642_v60 = vcombine.low %v2586_v13, %v2602_v32  ;;  %9766 = vst [vmem:[#allocation27_spill] sm:$0xff] %v7666_v62  ;;  %v2610_v39 = vcombine.low %v2554_v27, %v2570_v56 }
 0x986   : > { %9768 = vst [vmem:[#allocation47_spill] sm:$0xff] %v7676_v53  ;;  %9769 = vst [vmem:[#allocation108_spill] sm:$0xff] %v7679_v42  ;;  %v2235_v28 = vcombine.high %v2178_v34, %v2194_v43  ;;  %v2203_v23 = vcombine.high %v2146_v45, %v2162_v14  ;;  %v2595_v34 = vcombine.high %v9755_v16, %v7044_v44 }
 0x987   : > { %v7659_v57 = vpop.permute.xlu0 %3632  ;;  %v7661_v9 = vpop.permute.xlu1 %1280  ;;  %v2650_v41 = vrot.slane %v2642_v60, %v6126_v12  ;;  %v2579_v60 = vcombine.high %v7236_v7, %v7260_v6  ;;  %v2547_v43 = vcombine.high %v7202_v37, %v7216_v19  ;;  %v2611_v7 = vcombine.high %v2554_v27, %v2570_v56 }
 0x988   : > { %9764 = vst [vmem:[#allocation52_spill] sm:$0xff] %v7659_v57  ;;  %v2242_v57 = vrot.slane %v2234_v49, %v6126_v12  ;;  %v2643_v49 = vcombine.high %v2586_v13, %v2602_v32  ;;  %v2139_v6 = vcombine.high %v9757_v1, %v9756_v55  ;;  %v2249_v44 = vrot.slane %v2235_v28, %v6126_v12 }
 0x989   : > { %3826 = vrot.lane.b32.xlu1 %v7663_v38, %s9654_s25  ;;  %3832 = vrot.lane.b32.xlu0 %v7666_v62, %s9654_s25  ;;  %v2210_v38 = vrot.slane %v2202_v48, %v6126_v12  ;;  %v2618_v62 = vrot.slane %v2610_v39, %v6126_v12  ;;  %v2155_v39 = vcombine.high %v9754_v33, %v9753_v54 }
 0x98a   : > { %v2563_v37 = vcombine.high %v9762_v58, %v9761_v36  ;;  %v2593_v19 = vrot.slane %v2579_v60, %v6123_v11  ;;  %v2657_v54 = vrot.slane %v2643_v49, %v6126_v12  ;;  %v2217_v1 = vrot.slane %v2203_v23, %v6126_v12 }
 0x98b   : > { %v7672_v51 = vpop.permute.xlu0 %3660  ;;  %v7674_v25 = vpop.permute.xlu1 %1286  ;;  %v7694_v50 = vcombine.low %v2210_v38, %v2242_v57  ;;  %v7698_v48 = vcombine.low %v2618_v62, %v2650_v41  ;;  %v7719_v35 = vcombine.high %v2210_v38, %v2242_v57  ;;  %v7725_v16 = vcombine.high %v2618_v62, %v2650_v41 }
 0x98c   : > { %9767 = vst [vmem:[#allocation50_spill] sm:$0xff] %v7672_v51  ;;  %v2169_v55 = vrot.slane %v2155_v39, %v6123_v11  ;;  %v2609_v14 = vrot.slane %v2595_v34, %v6123_v11  ;;  %v2561_v32 = vrot.slane %v2547_v43, %v6123_v11  ;;  %v2625_v41 = vrot.slane %v2611_v7, %v6126_v12 }
 0x98d   : > { %3858 = vrot.lane.b32.xlu1 %v7676_v53, %s9654_s25  ;;  %3864 = vrot.lane.b32.xlu0 %v7679_v42, %s9654_s25  ;;  %9771 = vst [vmem:[#allocation110_spill] sm:$0xff] %v7694_v50  ;;  %9772 = vst [vmem:[#allocation111_spill] sm:$0xff] %v7698_v48  ;;  %v2171_v42 = vcombine.high %v9752_v61, %v9751_v8  ;;  %v2201_v61 = vrot.slane %v2187_v20, %v6123_v11 }
 0x98e   : > { %9774 = vst [vmem:[#allocation113_spill] sm:$0xff] %v7719_v35  ;;  %9775 = vst [vmem:[#allocation114_spill] sm:$0xff] %v7725_v16  ;;  %v2153_v58 = vrot.slane %v2139_v6, %v6123_v11  ;;  %v7743_v57 = vcombine.low %v2217_v1, %v2249_v44  ;;  %v2577_v38 = vrot.slane %v2563_v37, %v6123_v11  ;;  %v9783_v37 = vld [vmem:[#allocation61_spill] sm:$0xff] }
 0x98f   : > { %v7690_v51 = vpop.permute.xlu0 %3664  ;;  %v7692_v30 = vpop.permute.xlu1 %1292  ;;  %v2185_v33 = vrot.slane %v2171_v42, %v6123_v11  ;;  %v2658_v56 = vcombine.low %v2593_v19, %v2609_v14  ;;  %v7746_v62 = vcombine.low %v2625_v41, %v2657_v54  ;;  %v7754_v60 = vcombine.high %v2217_v1, %v2249_v44  ;;  %v9782_v44 = vld [vmem:[#allocation64_spill] sm:$0xff] }
 0x990   : > { %9770 = vst [vmem:[#allocation109_spill] sm:$0xff] %v7690_v51  ;;  %9777 = vst [vmem:[#allocation116_spill] sm:$0xff] %v7743_v57  ;;  %v2218_v42 = vcombine.low %v2153_v58, %v2169_v55  ;;  %v2626_v20 = vcombine.low %v2561_v32, %v2577_v38  ;;  %v7759_v23 = vcombine.high %v2625_v41, %v2657_v54 }
 0x991   : > { %3638 = vrot.lane.b32.xlu1 %v7694_v50, %s9654_s25  ;;  %3644 = vrot.lane.b32.xlu0 %v7698_v48, %s9654_s25  ;;  %v2250_v36 = vcombine.low %v2185_v33, %v2201_v61  ;;  %9778 = vst [vmem:[#allocation117_spill] sm:$0xff] %v7746_v62  ;;  %9779 = vst [vmem:[#allocation118_spill] sm:$0xff] %v7754_v60  ;;  %v2666_v34 = vrot.slane %v2658_v56, %v6126_v12 }
 0x992   : > { %9781 = vst [vmem:[#allocation120_spill] sm:$0xff] %v7759_v23  ;;  %v2226_v43 = vrot.slane %v2218_v42, %v6126_v12  ;;  %v2634_v7 = vrot.slane %v2626_v20, %v6126_v12  ;;  %v2251_v6 = vcombine.high %v2185_v33, %v2201_v61  ;;  %v2442_v1 = vcombine.low %v9783_v37, %v9782_v44  ;;  %v9789_v61 = vld [vmem:[#allocation58_spill] sm:$0xff] }
 0x993   : > { %v7715_v13 = vpop.permute.xlu0 %3692  ;;  %v7717_v8 = vpop.permute.xlu1 %1298  ;;  %v2258_v49 = vrot.slane %v2250_v36, %v6126_v12  ;;  %v2659_v41 = vcombine.high %v2593_v19, %v2609_v14  ;;  %v2850_v56 = vcombine.low %v7432_v24, %v7452_v63  ;;  %v9790_v33 = vld [vmem:[#allocation22_spill] sm:$0xff]  ;;  %v2866_v19 = vcombine.low %v7234_v17, %v7258_v29 }
 0x994   : > { %9773 = vst [vmem:[#allocation112_spill] sm:$0xff] %v7715_v13  ;;  %v7778_v42 = vcombine.low %v2634_v7, %v2666_v34  ;;  %v2410_v53 = vcombine.low %v9790_v33, %v9789_v61  ;;  %v2818_v14 = vcombine.low %v7394_v5, %v7415_v47 }
 0x995   : > { %3670 = vrot.lane.b32.xlu1 %v7719_v35, %s9654_s25  ;;  %3676 = vrot.lane.b32.xlu0 %v7725_v16, %s9654_s25  ;;  %v7772_v54 = vcombine.low %v2226_v43, %v2258_v49  ;;  %v9788_v35 = vld [vmem:[#allocation42_spill] sm:$0xff]  ;;  %v2858_v50 = vrot.slane %v2850_v56, %v6123_v11 }
 0x996   : > { %9786 = vst [vmem:[#allocation121_spill] sm:$0xff] %v7778_v42 }
 0x997   : > { %v7739_v27 = vpop.permute.xlu0 %3696  ;;  %v7741_v45 = vpop.permute.xlu1 %1304  ;;  %9784 = vst [vmem:[#allocation64_spill] sm:$0xff] %v7772_v54 }
 0x998   : > { %9776 = vst [vmem:[#allocation115_spill] sm:$0xff] %v7739_v27  ;;  %v7797_v27 = vcombine.high %v2226_v43, %v2258_v49  ;;  %v2874_v43 = vrot.slane %v2866_v19, %v6123_v11 }
 0x999   : > { %3702 = vrot.lane.b32.xlu1 %v7743_v57, %s9654_s25  ;;  %3708 = vrot.lane.b32.xlu0 %v7746_v62, %s9654_s25  ;;  %v2627_v62 = vcombine.high %v2561_v32, %v2577_v38  ;;  %v2265_v32 = vrot.slane %v2251_v6, %v6126_v12  ;;  %v9795_v38 = vld [vmem:[#allocation67_spill] sm:$0xff]  ;;  %v2826_v6 = vrot.slane %v2818_v14, %v6123_v11 }
 0x99a   : > { %9794 = vst [vmem:[#allocation42_spill] sm:$0xff] %v7797_v27 }
 0x99b   : > { %v7752_v28 = vpop.permute.xlu1 %1310  ;;  %v7757_v39 = vpop.permute.xlu0 %3724 }
 0x99c   : > { %9780 = vst [vmem:[#allocation119_spill] sm:$0xff] %v7757_v39  ;;  %v7805_v39 = vcombine.high %v2634_v7, %v2666_v34  ;;  %v2641_v34 = vrot.slane %v2627_v62, %v6126_v12 }
 0x99d   : > { %3734 = vrot.lane.b32.xlu1 %v7754_v60, %s9654_s25  ;;  %3740 = vrot.lane.b32.xlu0 %v7759_v23, %s9654_s25  ;;  %v2219_v60 = vcombine.high %v2153_v58, %v2169_v55  ;;  %v9787_v23 = vld [vmem:[#allocation44_spill] sm:$0xff]  ;;  %v9792_v58 = vld [vmem:[#allocation39_spill] sm:$0xff] }
 0x99e   : > { %v2458_v20 = vcombine.low %v9788_v35, %v9787_v23  ;;  %v9791_v55 = vld [vmem:[#allocation40_spill] sm:$0xff]  ;;  %9797 = vst [vmem:[#allocation22_spill] sm:$0xff] %v7805_v39 }
 0x99f   : > { %v7770_v36 = vpop.permute.xlu1 %1316  ;;  %v7776_v16 = vpop.permute.xlu0 %3728  ;;  %v2426_v48 = vcombine.low %v9792_v58, %v9791_v55  ;;  %v2233_v49 = vrot.slane %v2219_v60, %v6126_v12 }
 0x9a0   : > { %9785 = vst [vmem:[#allocation61_spill] sm:$0xff] %v7776_v16  ;;  %v2450_v16 = vrot.slane %v2442_v1, %v6123_v11  ;;  %v2466_v13 = vrot.slane %v2458_v20, %v6123_v11  ;;  %v2418_v1 = vrot.slane %v2410_v53, %v6123_v11 }
 0x9a1   : > { %3766 = vrot.lane.b32.xlu1 %v7772_v54, %s9654_s25  ;;  %3772 = vrot.lane.b32.xlu0 %v7778_v42, %s9654_s25  ;;  %v2834_v54 = vcombine.low %v9795_v38, %v7214_v18  ;;  %v2673_v42 = vrot.slane %v2659_v41, %v6126_v12  ;;  %v2434_v7 = vrot.slane %v2426_v48, %v6123_v11 }
 0x9a2   : > { %v2506_v41 = vcombine.low %v2450_v16, %v2466_v13  ;;  %v7821_v53 = vcombine.low %v2233_v49, %v2265_v32  ;;  %v7834_v62 = vcombine.high %v2233_v49, %v2265_v32  ;;  %v2443_v32 = vcombine.high %v9783_v37, %v9782_v44 }
 0x9a3   : > { %v7795_v57 = vpop.permute.xlu1 %3626  ;;  %v7803_v51 = vpop.permute.xlu0 %3756  ;;  %v2842_v20 = vrot.slane %v2834_v54, %v6123_v11  ;;  %v7826_v19 = vcombine.low %v2641_v34, %v2673_v42  ;;  %v2474_v14 = vcombine.low %v2418_v1, %v2434_v7  ;;  %v2507_v49 = vcombine.high %v2450_v16, %v2466_v13 }
 0x9a4   : > { %9793 = vst [vmem:[#allocation44_spill] sm:$0xff] %v7795_v57  ;;  %9796 = vst [vmem:[#allocation58_spill] sm:$0xff] %v7803_v51  ;;  %v2514_v57 = vrot.slane %v2506_v41, %v6126_v12  ;;  %v7839_v51 = vcombine.high %v2641_v34, %v2673_v42  ;;  %v2915_v34 = vcombine.high %v2858_v50, %v2874_v43 }
 0x9a5   : > { %3798 = vrot.lane.b32.xlu1 %v7797_v27, %s9654_s25  ;;  %3804 = vrot.lane.b32.xlu0 %v7805_v39, %s9654_s25  ;;  %9798 = vst [vmem:[#allocation40_spill] sm:$0xff] %v7821_v53  ;;  %v2914_v27 = vcombine.low %v2858_v50, %v2874_v43  ;;  %9800 = vst [vmem:[#allocation67_spill] sm:$0xff] %v7826_v19  ;;  %v2882_v39 = vcombine.low %v2826_v6, %v2842_v20 }
 0x9a6   : > { %9801 = vst [vmem:[#allocation122_spill] sm:$0xff] %v7834_v62  ;;  %9802 = vst [vmem:[#allocation123_spill] sm:$0xff] %v7839_v51  ;;  %v2475_v44 = vcombine.high %v2418_v1, %v2434_v7  ;;  %v2867_v13 = vcombine.high %v7234_v17, %v7258_v29  ;;  %v2427_v50 = vcombine.high %v9792_v58, %v9791_v55 }
 0x9a7   : > { %v7819_v56 = vpop.permute.xlu1 %3630  ;;  %v7824_v60 = vpop.permute.xlu0 %3760  ;;  %v2521_v37 = vrot.slane %v2507_v49, %v6126_v12  ;;  %v2835_v17 = vcombine.high %v9795_v38, %v7214_v18 }
 0x9a8   : > { %9799 = vst [vmem:[#allocation39_spill] sm:$0xff] %v7824_v60  ;;  %v2922_v60 = vrot.slane %v2914_v27, %v6126_v12  ;;  %v2851_v27 = vcombine.high %v7432_v24, %v7452_v63  ;;  %v2819_v24 = vcombine.high %v7394_v5, %v7415_v47  ;;  %v2883_v63 = vcombine.high %v2826_v6, %v2842_v20 }
 0x9a9   : > { %3830 = vrot.lane.b32.xlu1 %v7821_v53, %s9654_s25  ;;  %3836 = vrot.lane.b32.xlu0 %v7826_v19, %s9654_s25  ;;  %v2482_v53 = vrot.slane %v2474_v14, %v6126_v12  ;;  %v2890_v19 = vrot.slane %v2882_v39, %v6126_v12  ;;  %v2411_v39 = vcombine.high %v9790_v33, %v9789_v61 }
 0x9aa   : > { %v2865_v29 = vrot.slane %v2851_v27, %v6123_v11  ;;  %v2929_v61 = vrot.slane %v2915_v34, %v6126_v12  ;;  %v2881_v58 = vrot.slane %v2867_v13, %v6123_v11  ;;  %v2833_v18 = vrot.slane %v2819_v24, %v6123_v11 }
 0x9ab   : > { %v7832_v48 = vpop.permute.xlu1 %3658  ;;  %v7837_v54 = vpop.permute.xlu0 %3788  ;;  %v7852_v42 = vcombine.low %v2482_v53, %v2514_v57  ;;  %v7858_v14 = vcombine.low %v2890_v19, %v2922_v60  ;;  %v7885_v47 = vcombine.high %v2890_v19, %v2922_v60  ;;  %v2425_v55 = vrot.slane %v2411_v39, %v6123_v11 }
 0x9ac   : > { %v2897_v38 = vrot.slane %v2883_v63, %v6126_v12  ;;  %v2441_v1 = vrot.slane %v2427_v50, %v6123_v11  ;;  %v2849_v7 = vrot.slane %v2835_v17, %v6123_v11 }
 0x9ad   : > { %3862 = vrot.lane.b32.xlu1 %v7834_v62, %s9654_s25  ;;  %3868 = vrot.lane.b32.xlu0 %v7839_v51, %s9654_s25  ;;  %9803 = vst [vmem:[#allocation124_spill] sm:$0xff] %v7852_v42  ;;  %9805 = vst [vmem:[#allocation126_spill] sm:$0xff] %v7858_v14  ;;  %v2459_v51 = vcombine.high %v9788_v35, %v9787_v23  ;;  %v2457_v35 = vrot.slane %v2443_v32, %v6123_v11 }
 0x9ae   : > { %v7877_v23 = vcombine.high %v2482_v53, %v2514_v57  ;;  %9807 = vst [vmem:[#allocation128_spill] sm:$0xff] %v7885_v47  ;;  %v2489_v57 = vrot.slane %v2475_v44, %v6126_v12  ;;  %v2930_v53 = vcombine.low %v2865_v29, %v2881_v58  ;;  %v7906_v60 = vcombine.low %v2897_v38, %v2929_v61 }
 0x9af   : > { %v7850_v41 = vpop.permute.xlu1 %3662  ;;  %v7856_v62 = vpop.permute.xlu0 %3792  ;;  %v2473_v33 = vrot.slane %v2459_v51, %v6123_v11  ;;  %v2490_v19 = vcombine.low %v2425_v55, %v2441_v1  ;;  %v2898_v32 = vcombine.low %v2833_v18, %v2849_v7  ;;  %v7919_v44 = vcombine.high %v2897_v38, %v2929_v61 }
 0x9b0   : > { %9804 = vst [vmem:[#allocation125_spill] sm:$0xff] %v7856_v62  ;;  %9806 = vst [vmem:[#allocation127_spill] sm:$0xff] %v7877_v23  ;;  %v7901_v6 = vcombine.low %v2489_v57, %v2521_v37  ;;  %v7914_v27 = vcombine.high %v2489_v57, %v2521_v37  ;;  %v2938_v13 = vrot.slane %v2930_v53, %v6126_v12 }
 0x9b1   : > { %3642 = vrot.lane.b32.xlu1 %v7852_v42, %s9654_s25  ;;  %3648 = vrot.lane.b32.xlu0 %v7858_v14, %s9654_s25  ;;  %v2522_v43 = vcombine.low %v2457_v35, %v2473_v33  ;;  %9810 = vst [vmem:[#allocation131_spill] sm:$0xff] %v7906_v60  ;;  %9812 = vst [vmem:[#allocation133_spill] sm:$0xff] %v7919_v44  ;;  %v2498_v24 = vrot.slane %v2490_v19, %v6126_v12 }
 0x9b2   : > { %9808 = vst [vmem:[#allocation129_spill] sm:$0xff] %v7901_v6  ;;  %9811 = vst [vmem:[#allocation132_spill] sm:$0xff] %v7914_v27  ;;  %v2906_v63 = vrot.slane %v2898_v32, %v6126_v12  ;;  %v2523_v50 = vcombine.high %v2457_v35, %v2473_v33  ;;  %v2714_v37 = vcombine.low %v7356_v46, %v7374_v26 }
 0x9b3   : > { %v7875_v16 = vpop.permute.xlu1 %3690  ;;  %v7883_v5 = vpop.permute.xlu0 %3820  ;;  %v2530_v34 = vrot.slane %v2522_v43, %v6126_v12  ;;  %v2931_v57 = vcombine.high %v2865_v29, %v2881_v58  ;;  %v3122_v38 = vcombine.low %v7594_v0, %v7612_v22  ;;  %v2491_v19 = vcombine.high %v2425_v55, %v2441_v1  ;;  %v9819_v55 = vld [vmem:[#allocation57_spill] sm:$0xff]  ;;  %v9820_v1 = vld [vmem:[#allocation55_spill] sm:$0xff] }
 0x9b4   : > { %v7938_v53 = vcombine.low %v2906_v63, %v2938_v13  ;;  %v2682_v35 = vcombine.low %v7293_v59, %v7330_v52  ;;  %v2899_v33 = vcombine.high %v2833_v18, %v2849_v7  ;;  %v3138_v29 = vcombine.low %v7430_v40, %v7450_v21 }
 0x9b5   : > { %3674 = vrot.lane.b32.xlu1 %v7877_v23, %s9654_s25  ;;  %3680 = vrot.lane.b32.xlu0 %v7885_v47, %s9654_s25  ;;  %v7932_v61 = vcombine.low %v2498_v24, %v2530_v34  ;;  %v9818_v47 = vld [vmem:[#allocation60_spill] sm:$0xff]  ;;  %v3090_v58 = vcombine.low %v7557_v15, %v7581_v2  ;;  %v2722_v23 = vrot.slane %v2714_v37, %v6123_v11 }
 0x9b6   : > { %9816 = vst [vmem:[#allocation137_spill] sm:$0xff] %v7938_v53  ;;  %v7957_v14 = vcombine.high %v2498_v24, %v2530_v34  ;;  %v2537_v18 = vrot.slane %v2523_v50, %v6126_v12  ;;  %v3106_v7 = vcombine.low %v7392_v3, %v7413_v4  ;;  %v2690_v37 = vrot.slane %v2682_v35, %v6123_v11 }
 0x9b7   : > { %v7899_v51 = vpop.permute.xlu1 %3694  ;;  %v7904_v20 = vpop.permute.xlu0 %3824  ;;  %9814 = vst [vmem:[#allocation135_spill] sm:$0xff] %v7932_v61  ;;  %v2505_v34 = vrot.slane %v2491_v19, %v6126_v12  ;;  %v3146_v24 = vrot.slane %v3138_v29, %v6123_v11  ;;  %v3098_v50 = vrot.slane %v3090_v58, %v6123_v11 }
 0x9b8   : > { %9809 = vst [vmem:[#allocation130_spill] sm:$0xff] %v7904_v20  ;;  %v3114_v35 = vrot.slane %v3106_v7, %v6123_v11 }
 0x9b9   : > { %3706 = vrot.lane.b32.xlu1 %v7901_v6, %s9654_s25  ;;  %3712 = vrot.lane.b32.xlu0 %v7906_v60, %s9654_s25  ;;  %v7965_v6 = vcombine.high %v2906_v63, %v2938_v13  ;;  %v2913_v13 = vrot.slane %v2899_v33, %v6126_v12  ;;  %v7994_v33 = vcombine.high %v2505_v34, %v2537_v18 }
 0x9bb   : > { %v7912_v49 = vpop.permute.xlu1 %3722  ;;  %v7917_v39 = vpop.permute.xlu0 %3852  ;;  %9822 = vst [vmem:[#allocation60_spill] sm:$0xff] %v7965_v6  ;;  %9827 = vst [vmem:[#allocation140_spill] sm:$0xff] %v7994_v33 }
 0x9bd   : > { %3738 = vrot.lane.b32.xlu1 %v7914_v27, %s9654_s25  ;;  %3744 = vrot.lane.b32.xlu0 %v7919_v44, %s9654_s25  ;;  %v9817_v44 = vld [vmem:[#allocation63_spill] sm:$0xff]  ;;  %v2698_v27 = vcombine.low %v9820_v1, %v9819_v55 }
 0x9be   : > { %v2730_v32 = vcombine.low %v9818_v47, %v9817_v44  ;;  %9821 = vst [vmem:[#allocation63_spill] sm:$0xff] %v7957_v14 }
 0x9bf   : > { %v7930_v17 = vpop.permute.xlu1 %3726  ;;  %v7936_v43 = vpop.permute.xlu0 %3856  ;;  %v2706_v63 = vrot.slane %v2698_v27, %v6123_v11 }
 0x9c0   : > { %9813 = vst [vmem:[#allocation134_spill] sm:$0xff] %v7930_v17  ;;  %9815 = vst [vmem:[#allocation136_spill] sm:$0xff] %v7936_v43  ;;  %v2738_v20 = vrot.slane %v2730_v32, %v6123_v11  ;;  %v7981_v32 = vcombine.low %v2505_v34, %v2537_v18  ;;  %v2715_v18 = vcombine.high %v7356_v46, %v7374_v26 }
 0x9c1   : > { %3770 = vrot.lane.b32.xlu1 %v7932_v61, %s9654_s25  ;;  %3776 = vrot.lane.b32.xlu0 %v7938_v53, %s9654_s25  ;;  %v3130_v61 = vrot.slane %v3122_v38, %v6123_v11  ;;  %v2945_v53 = vrot.slane %v2931_v57, %v6126_v12  ;;  %v2746_v58 = vcombine.low %v2690_v37, %v2706_v63 }
 0x9c2   : > { %v2778_v57 = vcombine.low %v2722_v23, %v2738_v20  ;;  %9824 = vst [vmem:[#allocation55_spill] sm:$0xff] %v7981_v32  ;;  %v2779_v34 = vcombine.high %v2722_v23, %v2738_v20  ;;  %v2747_v46 = vcombine.high %v2690_v37, %v2706_v63  ;;  %v3139_v26 = vcombine.high %v7430_v40, %v7450_v21 }
 0x9c3   : > { %v7955_v60 = vpop.permute.xlu1 %3754  ;;  %v7963_v43 = vpop.permute.xlu0 %3636  ;;  %v7986_v29 = vcombine.low %v2913_v13, %v2945_v53  ;;  %v7999_v62 = vcombine.high %v2913_v13, %v2945_v53  ;;  %v3187_v13 = vcombine.high %v3130_v61, %v3146_v24  ;;  %v2699_v23 = vcombine.high %v9820_v1, %v9819_v55 }
 0x9c4   : > { %v2786_v42 = vrot.slane %v2778_v57, %v6126_v12  ;;  %v2793_v20 = vrot.slane %v2779_v34, %v6126_v12  ;;  %v3107_v40 = vcombine.high %v7392_v3, %v7413_v4  ;;  %v3153_v1 = vrot.slane %v3139_v26, %v6123_v11 }
 0x9c5   : > { %3802 = vrot.lane.b32.xlu1 %v7957_v14, %s9654_s25  ;;  %3808 = vrot.lane.b32.xlu0 %v7965_v6, %s9654_s25  ;;  %v3186_v14 = vcombine.low %v3130_v61, %v3146_v24  ;;  %9826 = vst [vmem:[#allocation139_spill] sm:$0xff] %v7986_v29  ;;  %v3154_v6 = vcombine.low %v3098_v50, %v3114_v35  ;;  %9828 = vst [vmem:[#allocation141_spill] sm:$0xff] %v7999_v62 }
 0x9c6   : > { %v2713_v37 = vrot.slane %v2699_v23, %v6123_v11  ;;  %v3121_v63 = vrot.slane %v3107_v40, %v6123_v11 }
 0x9c7   : > { %v7979_v38 = vpop.permute.xlu1 %3758  ;;  %v7984_v19 = vpop.permute.xlu0 %3668 }
 0x9c8   : > { %9823 = vst [vmem:[#allocation57_spill] sm:$0xff] %v7979_v38  ;;  %9825 = vst [vmem:[#allocation138_spill] sm:$0xff] %v7984_v19  ;;  %v3194_v19 = vrot.slane %v3186_v14, %v6126_v12  ;;  %v3123_v14 = vcombine.high %v7594_v0, %v7612_v22  ;;  %v3091_v0 = vcombine.high %v7557_v15, %v7581_v2 }
 0x9c9   : > { %3834 = vrot.lane.b32.xlu1 %v7981_v32, %s9654_s25  ;;  %3840 = vrot.lane.b32.xlu0 %v7986_v29, %s9654_s25  ;;  %v2754_v32 = vrot.slane %v2746_v58, %v6126_v12  ;;  %v3162_v29 = vrot.slane %v3154_v6, %v6126_v12  ;;  %v2683_v6 = vcombine.high %v7293_v59, %v7330_v52 }
 0x9ca   : > { %v3155_v22 = vcombine.high %v3098_v50, %v3114_v35  ;;  %v3137_v21 = vrot.slane %v3123_v14, %v6123_v11  ;;  %v3105_v3 = vrot.slane %v3091_v0, %v6123_v11 }
 0x9cb   : > { %v7992_v27 = vpop.permute.xlu1 %3786  ;;  %v7997_v7 = vpop.permute.xlu0 %3700  ;;  %v8012_v53 = vcombine.low %v2754_v32, %v2786_v42  ;;  %v8018_v58 = vcombine.low %v3162_v29, %v3194_v19  ;;  %v8037_v52 = vcombine.high %v2754_v32, %v2786_v42  ;;  %v8045_v2 = vcombine.high %v3162_v29, %v3194_v19 }
 0x9cc   : > { %v2697_v55 = vrot.slane %v2683_v6, %v6123_v11  ;;  %v2761_v42 = vrot.slane %v2747_v46, %v6126_v12  ;;  %v3169_v4 = vrot.slane %v3155_v22, %v6126_v12  ;;  %v3202_v32 = vcombine.low %v3137_v21, %v3153_v1 }
 0x9cd   : > { %3866 = vrot.lane.b32.xlu1 %v7994_v33, %s9654_s25  ;;  %3872 = vrot.lane.b32.xlu0 %v7999_v62, %s9654_s25  ;;  %9830 = vst [vmem:[#allocation143_spill] sm:$0xff] %v8012_v53  ;;  %9832 = vst [vmem:[#allocation145_spill] sm:$0xff] %v8018_v58  ;;  %v2731_v62 = vcombine.high %v9818_v47, %v9817_v44  ;;  %v2729_v47 = vrot.slane %v2715_v18, %v6123_v11 }
 0x9ce   : > { %9833 = vst [vmem:[#allocation146_spill] sm:$0xff] %v8037_v52  ;;  %9834 = vst [vmem:[#allocation147_spill] sm:$0xff] %v8045_v2  ;;  %v3201_v44 = vrot.slane %v3187_v13, %v6126_v12  ;;  %v8061_v50 = vcombine.low %v2761_v42, %v2793_v20  ;;  %v2762_v29 = vcombine.low %v2697_v55, %v2713_v37 }
 0x9cf   : > { %v8010_v57 = vpop.permute.xlu1 %3790  ;;  %v8016_v33 = vpop.permute.xlu0 %3732  ;;  %v2745_v61 = vrot.slane %v2731_v62, %v6123_v11  ;;  %v3170_v18 = vcombine.low %v3105_v3, %v3121_v63  ;;  %v8074_v14 = vcombine.high %v2761_v42, %v2793_v20  ;;  %v3210_v26 = vrot.slane %v3202_v32, %v6126_v12 }
 0x9d0   : > { %9829 = vst [vmem:[#allocation142_spill] sm:$0xff] %v8010_v57  ;;  %9831 = vst [vmem:[#allocation144_spill] sm:$0xff] %v8016_v33  ;;  %v8066_v19 = vcombine.low %v3169_v4, %v3201_v44  ;;  %v8079_v46 = vcombine.high %v3169_v4, %v3201_v44  ;;  %v2770_v0 = vrot.slane %v2762_v29, %v6126_v12 }
 0x9d1   : > { %3646 = vrot.lane.b32.xlu1 %v8012_v53, %s9654_s25  ;;  %3652 = vrot.lane.b32.xlu0 %v8018_v58, %s9654_s25  ;;  %v2794_v24 = vcombine.low %v2729_v47, %v2745_v61  ;;  %9836 = vst [vmem:[#allocation149_spill] sm:$0xff] %v8061_v50  ;;  %9839 = vst [vmem:[#allocation152_spill] sm:$0xff] %v8074_v14  ;;  %v3178_v22 = vrot.slane %v3170_v18, %v6126_v12 }
 0x9d2   : > { %9838 = vst [vmem:[#allocation151_spill] sm:$0xff] %v8066_v19  ;;  %9840 = vst [vmem:[#allocation153_spill] sm:$0xff] %v8079_v46  ;;  %v2795_v23 = vcombine.high %v2729_v47, %v2745_v61  ;;  %v2986_v20 = vcombine.low %v7514_v31, %v7532_v10  ;;  %v3203_v42 = vcombine.high %v3137_v21, %v3153_v1  ;;  %v9847_v47 = vld [vmem:[#allocation37_spill] sm:$0xff]  ;;  %v9850_v21 = vld [vmem:[#allocation104_spill] sm:$0xff] }
 0x9d3   : > { %v8035_v59 = vpop.permute.xlu1 %3818  ;;  %v8043_v15 = vpop.permute.xlu0 %3764  ;;  %v2802_v13 = vrot.slane %v2794_v24, %v6126_v12  ;;  %v3394_v4 = vcombine.low %v7752_v28, %v7770_v36  ;;  %v8098_v32 = vcombine.low %v3178_v22, %v3210_v26  ;;  %v2763_v29 = vcombine.high %v2697_v55, %v2713_v37  ;;  %v9848_v61 = vld [vmem:[#allocation25_spill] sm:$0xff]  ;;  %v9851_v55 = vld [vmem:[#allocation79_spill] sm:$0xff]  ;;  %v9852_v37 = vld [vmem:[#allocation76_spill] sm:$0xff] }
 0x9d4   : > { %v3362_v58 = vcombine.low %v7717_v8, %v7741_v45  ;;  %v8125_v57 = vcombine.high %v3178_v22, %v3210_v26 }
 0x9d5   : > { %3678 = vrot.lane.b32.xlu1 %v8037_v52, %s9654_s25  ;;  %3684 = vrot.lane.b32.xlu0 %v8045_v2, %s9654_s25  ;;  %v8092_v44 = vcombine.low %v2770_v0, %v2802_v13  ;;  %9844 = vst [vmem:[#allocation157_spill] sm:$0xff] %v8098_v32  ;;  %v9846_v2 = vld [vmem:[#allocation82_spill] sm:$0xff]  ;;  %v3171_v52 = vcombine.high %v3105_v3, %v3121_v63  ;;  %v9854_v63 = vld [vmem:[#allocation101_spill] sm:$0xff] }
 0x9d6   : > { %v8117_v53 = vcombine.high %v2770_v0, %v2802_v13  ;;  %v2809_v3 = vrot.slane %v2795_v23, %v6126_v12  ;;  %9856 = vst [vmem:[#allocation82_spill] sm:$0xff] %v8125_v57  ;;  %v2777_v13 = vrot.slane %v2763_v29, %v6126_v12  ;;  %v3370_v23 = vrot.slane %v3362_v58, %v6123_v11 }
 0x9d7   : > { %v8059_v62 = vpop.permute.xlu1 %3822  ;;  %v8064_v35 = vpop.permute.xlu0 %3796  ;;  %9842 = vst [vmem:[#allocation155_spill] sm:$0xff] %v8092_v44  ;;  %v3185_v26 = vrot.slane %v3171_v52, %v6126_v12 }
 0x9d8   : > { %9835 = vst [vmem:[#allocation148_spill] sm:$0xff] %v8059_v62  ;;  %9837 = vst [vmem:[#allocation150_spill] sm:$0xff] %v8064_v35 }
 0x9d9   : > { %3710 = vrot.lane.b32.xlu1 %v8061_v50, %s9654_s25  ;;  %3716 = vrot.lane.b32.xlu0 %v8066_v19, %s9654_s25  ;;  %v9849_v19 = vld [vmem:[#allocation48_spill] sm:$0xff]  ;;  %v2994_v50 = vrot.slane %v2986_v20, %v6123_v11 }
 0x9da   : > { %v3410_v1 = vcombine.low %v9850_v21, %v9849_v19 }
 0x9db   : > { %v8072_v34 = vpop.permute.xlu1 %3850  ;;  %v8077_v6 = vpop.permute.xlu0 %3828 }
 0x9dc   : > { %v3418_v0 = vrot.slane %v3410_v1, %v6123_v11 }
 0x9dd   : > { %3742 = vrot.lane.b32.xlu1 %v8074_v14, %s9654_s25  ;;  %3748 = vrot.lane.b32.xlu0 %v8079_v46, %s9654_s25  ;;  %v9845_v46 = vld [vmem:[#allocation85_spill] sm:$0xff]  ;;  %v2954_v14 = vcombine.low %v9848_v61, %v9847_v47 }
 0x9de   : > { %v3002_v18 = vcombine.low %v9846_v2, %v9845_v46  ;;  %9853 = vst [vmem:[#allocation85_spill] sm:$0xff] %v8117_v53 }
 0x9df   : > { %v8090_v40 = vpop.permute.xlu1 %3854  ;;  %v8096_v24 = vpop.permute.xlu0 %3860  ;;  %v2962_v20 = vrot.slane %v2954_v14, %v6123_v11  ;;  %v8141_v14 = vcombine.low %v2777_v13, %v2809_v3 }
 0x9e0   : > { %9841 = vst [vmem:[#allocation154_spill] sm:$0xff] %v8090_v40  ;;  %9843 = vst [vmem:[#allocation156_spill] sm:$0xff] %v8096_v24  ;;  %v2970_v24 = vcombine.low %v9852_v37, %v9851_v55  ;;  %v3402_v40 = vrot.slane %v3394_v4, %v6123_v11  ;;  %v3010_v38 = vrot.slane %v3002_v18, %v6123_v11 }
 0x9e1   : > { %3774 = vrot.lane.b32.xlu1 %v8092_v44, %s9654_s25  ;;  %3780 = vrot.lane.b32.xlu0 %v8098_v32, %s9654_s25  ;;  %v9855_v44 = vld [vmem:[#allocation98_spill] sm:$0xff]  ;;  %v3217_v32 = vrot.slane %v3203_v42, %v6126_v12  ;;  %9858 = vst [vmem:[#allocation25_spill] sm:$0xff] %v8141_v14 }
 0x9e2   : > { %v3378_v33 = vcombine.low %v9855_v44, %v9854_v63  ;;  %v2978_v22 = vrot.slane %v2970_v24, %v6123_v11  ;;  %v3050_v42 = vcombine.low %v2994_v50, %v3010_v38  ;;  %v8154_v24 = vcombine.high %v2777_v13, %v2809_v3 }
 0x9e3   : > { %v8115_v35 = vpop.permute.xlu1 %3634  ;;  %v8123_v62 = vpop.permute.xlu0 %3640  ;;  %v8146_v1 = vcombine.low %v3185_v26, %v3217_v32  ;;  %v8159_v17 = vcombine.high %v3185_v26, %v3217_v32  ;;  %v2987_v3 = vcombine.high %v7514_v31, %v7532_v10  ;;  %v3051_v13 = vcombine.high %v2994_v50, %v3010_v38 }
 0x9e4   : > { %v3386_v18 = vrot.slane %v3378_v33, %v6123_v11  ;;  %v3018_v58 = vcombine.low %v2962_v20, %v2978_v22  ;;  %9861 = vst [vmem:[#allocation79_spill] sm:$0xff] %v8154_v24  ;;  %v3459_v26 = vcombine.high %v3402_v40, %v3418_v0  ;;  %v3019_v31 = vcombine.high %v2962_v20, %v2978_v22 }
 0x9e5   : > { %3806 = vrot.lane.b32.xlu1 %v8117_v53, %s9654_s25  ;;  %3812 = vrot.lane.b32.xlu0 %v8125_v57, %s9654_s25  ;;  %v3458_v53 = vcombine.low %v3402_v40, %v3418_v0  ;;  %9860 = vst [vmem:[#allocation104_spill] sm:$0xff] %v8146_v1  ;;  %9862 = vst [vmem:[#allocation76_spill] sm:$0xff] %v8159_v17  ;;  %v3411_v10 = vcombine.high %v9850_v21, %v9849_v19 }
 0x9e6   : > { %v3426_v57 = vcombine.low %v3370_v23, %v3386_v18  ;;  %v2971_v38 = vcombine.high %v9852_v37, %v9851_v55  ;;  %v3065_v40 = vrot.slane %v3051_v13, %v6126_v12  ;;  %v3379_v19 = vcombine.high %v9855_v44, %v9854_v63 }
 0x9e7   : > { %v8139_v4 = vpop.permute.xlu1 %3666  ;;  %v8144_v29 = vpop.permute.xlu0 %3672  ;;  %v3033_v37 = vrot.slane %v3019_v31, %v6126_v12  ;;  %v3425_v20 = vrot.slane %v3411_v10, %v6123_v11 }
 0x9e8   : > { %9857 = vst [vmem:[#allocation37_spill] sm:$0xff] %v8139_v4  ;;  %9859 = vst [vmem:[#allocation48_spill] sm:$0xff] %v8144_v29  ;;  %v3058_v4 = vrot.slane %v3050_v42, %v6126_v12  ;;  %v3466_v29 = vrot.slane %v3458_v53, %v6126_v12  ;;  %v3395_v53 = vcombine.high %v7752_v28, %v7770_v36 }
 0x9e9   : > { %3838 = vrot.lane.b32.xlu1 %v8141_v14, %s9654_s25  ;;  %3844 = vrot.lane.b32.xlu0 %v8146_v1, %s9654_s25  ;;  %v3026_v14 = vrot.slane %v3018_v58, %v6126_v12  ;;  %v3434_v1 = vrot.slane %v3426_v57, %v6126_v12  ;;  %v2955_v57 = vcombine.high %v9848_v61, %v9847_v47 }
 0x9ea   : > { %v3363_v28 = vcombine.high %v7717_v8, %v7741_v45  ;;  %v3427_v36 = vcombine.high %v3370_v23, %v3386_v18  ;;  %v3409_v8 = vrot.slane %v3395_v53, %v6123_v11  ;;  %v3473_v61 = vrot.slane %v3459_v26, %v6126_v12 }
 0x9eb   : > { %v8152_v52 = vpop.permute.xlu1 %3698  ;;  %v8157_v33 = vpop.permute.xlu0 %3704  ;;  %v8172_v32 = vcombine.low %v3026_v14, %v3058_v4  ;;  %v8178_v58 = vcombine.low %v3434_v1, %v3466_v29  ;;  %v8205_v47 = vcombine.high %v3434_v1, %v3466_v29  ;;  %v2969_v55 = vrot.slane %v2955_v57, %v6123_v11 }
 0x9ec   : > { %v3377_v44 = vrot.slane %v3363_v28, %v6123_v11  ;;  %v3441_v63 = vrot.slane %v3427_v36, %v6126_v12  ;;  %v2985_v0 = vrot.slane %v2971_v38, %v6123_v11  ;;  %v8221_v22 = vcombine.low %v3033_v37, %v3065_v40 }
 0x9ed   : > { %3870 = vrot.lane.b32.xlu1 %v8154_v24, %s9654_s25  ;;  %3876 = vrot.lane.b32.xlu0 %v8159_v17, %s9654_s25  ;;  %9863 = vst [vmem:[#allocation101_spill] sm:$0xff] %v8178_v58  ;;  %v3003_v17 = vcombine.high %v9846_v2, %v9845_v46  ;;  %v3001_v2 = vrot.slane %v2987_v3, %v6123_v11  ;;  %9865 = vst [vmem:[#allocation158_spill] sm:$0xff] %v8205_v47 }
 0x9ee   : > { %v8197_v46 = vcombine.high %v3026_v14, %v3058_v4  ;;  %9866 = vst [vmem:[#allocation159_spill] sm:$0xff] %v8221_v22  ;;  %v3393_v4 = vrot.slane %v3379_v19, %v6123_v11  ;;  %v3474_v14 = vcombine.low %v3409_v8, %v3425_v20  ;;  %v8226_v29 = vcombine.low %v3441_v63, %v3473_v61 }
 0x9ef   : > { %v8170_v42 = vpop.permute.xlu1 %3730  ;;  %v8176_v24 = vpop.permute.xlu0 %3736  ;;  %v3017_v21 = vrot.slane %v3003_v17, %v6123_v11  ;;  %v3034_v1 = vcombine.low %v2969_v55, %v2985_v0  ;;  %v8234_v53 = vcombine.high %v3033_v37, %v3065_v40  ;;  %v8239_v31 = vcombine.high %v3441_v63, %v3473_v61 }
 0x9f0   : > { %9864 = vst [vmem:[#allocation98_spill] sm:$0xff] %v8197_v46  ;;  %9868 = vst [vmem:[#allocation161_spill] sm:$0xff] %v8226_v29  ;;  %v3442_v3 = vcombine.low %v3377_v44, %v3393_v4  ;;  %v3482_v10 = vrot.slane %v3474_v14, %v6126_v12  ;;  %v3258_v40 = vcombine.low %v7674_v25, %v7692_v30 }
 0x9f1   : > { %3650 = vrot.lane.b32.xlu1 %v8172_v32, %s9654_s25  ;;  %3656 = vrot.lane.b32.xlu0 %v8178_v58, %s9654_s25  ;;  %v3066_v23 = vcombine.low %v3001_v2, %v3017_v21  ;;  %9869 = vst [vmem:[#allocation162_spill] sm:$0xff] %v8234_v53  ;;  %9870 = vst [vmem:[#allocation163_spill] sm:$0xff] %v8239_v31  ;;  %v3042_v28 = vrot.slane %v3034_v1, %v6126_v12  ;;  %v9874_v1 = vld [vmem:[#allocation95_spill] sm:$0xff] }
 0x9f2   : > { %v3450_v36 = vrot.slane %v3442_v3, %v6126_v12  ;;  %v3067_v38 = vcombine.high %v3001_v2, %v3017_v21  ;;  %v3475_v37 = vcombine.high %v3409_v8, %v3425_v20  ;;  %v3035_v14 = vcombine.high %v2969_v55, %v2985_v0  ;;  %v9877_v21 = vld [vmem:[#allocation38_spill] sm:$0xff] }
 0x9f3   : > { %v8195_v50 = vpop.permute.xlu1 %3762  ;;  %v8203_v45 = vpop.permute.xlu0 %3768  ;;  %v3074_v26 = vrot.slane %v3066_v23, %v6126_v12  ;;  %v3443_v2 = vcombine.high %v3377_v44, %v3393_v4  ;;  %v9878_v8 = vld [vmem:[#allocation26_spill] sm:$0xff] }
 0x9f4   : > { %v8256_v23 = vcombine.low %v3450_v36, %v3482_v10  ;;  %v3242_v20 = vcombine.low %v9878_v8, %v9877_v21  ;;  %v3081_v0 = vrot.slane %v3067_v38, %v6126_v12  ;;  %v3489_v44 = vrot.slane %v3475_v37, %v6126_v12 }
 0x9f5   : > { %3682 = vrot.lane.b32.xlu1 %v8197_v46, %s9654_s25  ;;  %3688 = vrot.lane.b32.xlu0 %v8205_v47, %s9654_s25  ;;  %v8252_v61 = vcombine.low %v3042_v28, %v3074_v26  ;;  %v9875_v47 = vld [vmem:[#allocation36_spill] sm:$0xff]  ;;  %v3266_v46 = vrot.slane %v3258_v40, %v6123_v11  ;;  %v8271_v55 = vcombine.high %v3042_v28, %v3074_v26 }
 0x9f6   : > { %9873 = vst [vmem:[#allocation166_spill] sm:$0xff] %v8256_v23  ;;  %v3049_v40 = vrot.slane %v3035_v14, %v6126_v12  ;;  %v3457_v26 = vrot.slane %v3443_v2, %v6126_v12  ;;  %v3250_v28 = vrot.slane %v3242_v20, %v6123_v11 }
 0x9f7   : > { %v8219_v17 = vpop.permute.xlu1 %3794  ;;  %v8224_v18 = vpop.permute.xlu0 %3800  ;;  %9871 = vst [vmem:[#allocation164_spill] sm:$0xff] %v8252_v61  ;;  %9879 = vst [vmem:[#allocation95_spill] sm:$0xff] %v8271_v55 }
 0x9f8   : > { %9867 = vst [vmem:[#allocation160_spill] sm:$0xff] %v8224_v18  ;;  %v8290_v38 = vcombine.low %v3049_v40, %v3081_v0  ;;  %v8294_v37 = vcombine.low %v3457_v26, %v3489_v44  ;;  %v8302_v2 = vcombine.high %v3049_v40, %v3081_v0  ;;  %v3259_v0 = vcombine.high %v7674_v25, %v7692_v30  ;;  %v9890_v25 = vld [vmem:[#allocation112_spill] sm:$0xff]  ;;  %v9891_v30 = vld [vmem:[#allocation54_spill] sm:$0xff] }
 0x9f9   : > { %3714 = vrot.lane.b32.xlu1 %v8221_v22, %s9654_s25  ;;  %3720 = vrot.lane.b32.xlu0 %v8226_v29, %s9654_s25  ;;  %v9887_v22 = vld [vmem:[#allocation52_spill] sm:$0xff] }
 0x9fa   : > { %9883 = vst [vmem:[#allocation26_spill] sm:$0xff] %v8294_v37  ;;  %9884 = vst [vmem:[#allocation167_spill] sm:$0xff] %v8302_v2 }
 0x9fb   : > { %v8232_v13 = vpop.permute.xlu1 %3826  ;;  %v8237_v57 = vpop.permute.xlu0 %3832 }
 0x9fd   : > { %3746 = vrot.lane.b32.xlu1 %v8234_v53, %s9654_s25  ;;  %3752 = vrot.lane.b32.xlu0 %v8239_v31, %s9654_s25  ;;  %v3274_v53 = vcombine.low %v9875_v47, %v9874_v1  ;;  %v9876_v31 = vld [vmem:[#allocation30_spill] sm:$0xff] }
 0x9fe   : > { %v3226_v3 = vcombine.low %v9876_v31, %v7661_v9  ;;  %9881 = vst [vmem:[#allocation30_spill] sm:$0xff] %v8290_v38 }
 0x9ff   : > { %v8250_v19 = vpop.permute.xlu1 %3858  ;;  %v8254_v63 = vpop.permute.xlu0 %3864  ;;  %v3282_v4 = vrot.slane %v3274_v53, %v6123_v11 }
 0xa00   : > { %9872 = vst [vmem:[#allocation165_spill] sm:$0xff] %v8254_v63  ;;  %v8276_v63 = vcombine.high %v3450_v36, %v3482_v10 }
 0xa01   : > { %3778 = vrot.lane.b32.xlu1 %v8252_v61, %s9654_s25  ;;  %3784 = vrot.lane.b32.xlu0 %v8256_v23, %s9654_s25  ;;  %v3234_v23 = vrot.slane %v3226_v3, %v6123_v11  ;;  %v3322_v10 = vcombine.low %v3266_v46, %v3282_v4  ;;  %v3323_v40 = vcombine.high %v3266_v46, %v3282_v4 }
 0xa02   : > { %9880 = vst [vmem:[#allocation36_spill] sm:$0xff] %v8276_v63  ;;  %v4043_v46 = vmax.f32 %v9891_v30, %v9890_v25 }
 0xa03   : > { %v8269_v29 = vpop.permute.xlu1 %3638  ;;  %v8274_v58 = vpop.permute.xlu0 %3644  ;;  %v3290_v3 = vcombine.low %v3234_v23, %v3250_v28  ;;  %v3330_v20 = vrot.slane %v3322_v10, %v6126_v12 }
 0xa05   : > { %3810 = vrot.lane.b32.xlu1 %v8271_v55, %s9654_s25  ;;  %3816 = vrot.lane.b32.xlu0 %v8276_v63, %s9654_s25  ;;  %v9885_v63 = vld [vmem:[#allocation68_spill] sm:$0xff] }
 0xa06   : > { %v4012_v55 = vmax.f32 %v9885_v63, %v7819_v56 }
 0xa07   : > { %v8288_v36 = vpop.permute.xlu1 %3670  ;;  %v8292_v53 = vpop.permute.xlu0 %3676 }
 0xa08   : > { %9882 = vst [vmem:[#allocation38_spill] sm:$0xff] %v8292_v53  ;;  %v8309_v53 = vcombine.high %v3457_v26, %v3489_v44  ;;  %v9889_v26 = vld [vmem:[#allocation74_spill] sm:$0xff] }
 0xa09   : > { %3842 = vrot.lane.b32.xlu1 %v8290_v38, %s9654_s25  ;;  %3848 = vrot.lane.b32.xlu0 %v8294_v37, %s9654_s25  ;;  %v3298_v38 = vrot.slane %v3290_v3, %v6126_v12  ;;  %v9888_v37 = vld [vmem:[#allocation49_spill] sm:$0xff]  ;;  %v4042_v10 = vmax.f32 %v9889_v26, %v7875_v16  ;;  %v3291_v3 = vcombine.high %v3234_v23, %v3250_v28 }
 0xa0a   : > { %9886 = vst [vmem:[#allocation68_spill] sm:$0xff] %v8309_v53  ;;  %v4013_v18 = vmax.f32 %v9888_v37, %v9887_v22  ;;  %v3275_v22 = vcombine.high %v9875_v47, %v9874_v1  ;;  %v3227_v37 = vcombine.high %v9876_v31, %v7661_v9  ;;  %v3273_v16 = vrot.slane %v3259_v0, %v6123_v11  ;;  %v9892_v31 = vld [vmem:[#allocation80_spill] sm:$0xff] }
 0xa0b   : > { %v8300_v14 = vpop.permute.xlu1 %3702  ;;  %v8307_v61 = vpop.permute.xlu0 %3708  ;;  %v8322_v63 = vcombine.low %v3298_v38, %v3330_v20  ;;  %v8341_v4 = vcombine.high %v3298_v38, %v3330_v20  ;;  %v3337_v47 = vrot.slane %v3323_v40, %v6126_v12  ;;  %v4154_v9 = vmax.f32 %v4042_v10, %v4043_v46  ;;  %v9894_v38 = vld [vmem:[#allocation59_spill] sm:$0xff]  ;;  %v9897_v46 = vld [vmem:[#allocation66_spill] sm:$0xff] }
 0xa0c   : > { %v4139_v44 = vmax.f32 %v4012_v55, %v4013_v18  ;;  %v3243_v18 = vcombine.high %v9878_v8, %v9877_v21  ;;  %v4058_v23 = vmax.f32 %v9892_v31, %v7912_v49  ;;  %v3289_v28 = vrot.slane %v3275_v22, %v6123_v11  ;;  %v9893_v8 = vld [vmem:[#allocation119_spill] sm:$0xff]  ;;  %v9895_v22 = vld [vmem:[#allocation86_spill] sm:$0xff] }
 0xa0d   : > { %3874 = vrot.lane.b32.xlu1 %v8302_v2, %s9654_s25  ;;  %3880 = vrot.lane.b32.xlu0 %v8309_v53, %s9654_s25  ;;  %v3305_v21 = vrot.slane %v3291_v3, %v6126_v12  ;;  %v4059_v20 = vmax.f32 %v9894_v38, %v9893_v8  ;;  %v9896_v3 = vld [vmem:[#allocation58_spill] sm:$0xff]  ;;  %v9916_v53 = vld [vmem:[#allocation33_spill] sm:$0xff] }
 0xa0e   : > { %v3257_v0 = vrot.slane %v3243_v18, %v6123_v11  ;;  %v3338_v40 = vcombine.low %v3273_v16, %v3289_v28  ;;  %v9898_v38 = vld [vmem:[#allocation90_spill] sm:$0xff] }
 0xa0f   : > { %v8320_v56 = vpop.permute.xlu1 %3734  ;;  %v8326_v2 = vpop.permute.xlu0 %3740  ;;  %v8358_v49 = vcombine.low %v3305_v21, %v3337_v47  ;;  %v4162_v10 = vmax.f32 %v4058_v23, %v4059_v20  ;;  %v8370_v31 = vcombine.high %v3305_v21, %v3337_v47 }
 0xa10   : > { %v3346_v8 = vrot.slane %v3338_v40, %v6126_v12 }
 0xa11   : > { %3654 = vrot.lane.b32.xlu1 %v8322_v63, %s9654_s25  ;;  %4270 = vperm.xlu0 %5947, %v4139_v44   ;;  %v3241_v44 = vrot.slane %v3227_v37, %v6123_v11  ;;  %v4074_v37 = vmax.f32 %v9895_v22, %v7955_v60  ;;  %v4090_v60 = vmax.f32 %v9898_v38, %v7992_v27 }
 0xa13   : > { %v8339_v55 = vpop.permute.xlu1 %3766  ;;  %v8346_v1 = vpop.permute.xlu0 %3772  ;;  %v3306_v30 = vcombine.low %v3241_v44, %v3257_v0  ;;  %v3307_v38 = vcombine.high %v3241_v44, %v3257_v0 }
 0xa15   : > { %3686 = vrot.lane.b32.xlu1 %v8341_v4, %s9654_s25  ;;  %4315 = vperm.xlu0 %5947, %v4154_v9   ;;  %v4075_v9 = vmax.f32 %v9897_v46, %v9896_v3  ;;  %v3314_v22 = vrot.slane %v3306_v30, %v6126_v12  ;;  %v9899_v3 = vld [vmem:[#allocation71_spill] sm:$0xff]  ;;  %v3339_v46 = vcombine.high %v3273_v16, %v3289_v28 }
 0xa16   : > { %v9901_v30 = vld [vmem:[#allocation75_spill] sm:$0xff]  ;;  %v3321_v44 = vrot.slane %v3307_v38, %v6126_v12 }
 0xa17   : > { %v8356_v26 = vpop.permute.xlu1 %3798  ;;  %v8362_v25 = vpop.permute.xlu0 %3804  ;;  %v4170_v23 = vmax.f32 %v4074_v37, %v4075_v9  ;;  %v8384_v21 = vcombine.low %v3314_v22, %v3346_v8  ;;  %v9900_v37 = vld [vmem:[#allocation35_spill] sm:$0xff]  ;;  %v4107_v11 = vmax.f32 %v9901_v30, %v7883_v5  ;;  %v8396_v16 = vcombine.high %v3314_v22, %v3346_v8  ;;  %v9903_v5 = vld [vmem:[#allocation81_spill] sm:$0xff] }
 0xa18   : > { %v4106_v27 = vmax.f32 %v9900_v37, %v8035_v59  ;;  %v3353_v28 = vrot.slane %v3339_v46, %v6126_v12  ;;  %v4123_v0 = vmax.f32 %v9903_v5, %v7917_v39  ;;  %v9907_v39 = vld [vmem:[#allocation65_spill] sm:$0xff] }
 0xa19   : > { %3718 = vrot.lane.b32.xlu1 %v8358_v49, %s9654_s25  ;;  %4339 = vperm.xlu0 %5947, %v4162_v10   ;;  %v4091_v10 = vmax.f32 %v9899_v3, %v7837_v54 }
 0xa1a   : > { %v8410_v8 = vcombine.low %v3321_v44, %v3353_v28 }
 0xa1b   : > { %v8368_v18 = vpop.permute.xlu1 %3830  ;;  %v8375_v20 = vpop.permute.xlu0 %3836  ;;  %v4178_v40 = vmax.f32 %v4090_v60, %v4091_v10  ;;  %v9902_v60 = vld [vmem:[#allocation24_spill] sm:$0xff] }
 0xa1c   : > { %v4122_v59 = vmax.f32 %v9902_v60, %v8072_v34 }
 0xa1d   : > { %3750 = vrot.lane.b32.xlu1 %v8370_v31, %s9654_s25  ;;  %4363 = vperm.xlu0 %5947, %v4170_v23   ;;  %v4186_v23 = vmax.f32 %v4106_v27, %v4107_v11  ;;  %v9904_v11 = vld [vmem:[#allocation96_spill] sm:$0xff] }
 0xa1e   : > { %v4194_v22 = vmax.f32 %v4122_v59, %v4123_v0  ;;  %v4014_v46 = vmax.f32 %v9904_v11, %v8115_v35  ;;  %v9906_v27 = vld [vmem:[#allocation44_spill] sm:$0xff]  ;;  %v9908_v59 = vld [vmem:[#allocation102_spill] sm:$0xff] }
 0xa1f   : > { %v8382_v47 = vpop.permute.xlu1 %3862  ;;  %v8388_v9 = vpop.permute.xlu0 %3868  ;;  %v4010_v38 = vmax.f32 %v9907_v39, %v9906_v27  ;;  %v4046_v35 = vmax.f32 %v9908_v59, %v8152_v52  ;;  %v9909_v0 = vld [vmem:[#allocation32_spill] sm:$0xff]  ;;  %v9910_v11 = vld [vmem:[#allocation46_spill] sm:$0xff]  ;;  %v9913_v52 = vld [vmem:[#allocation45_spill] sm:$0xff] }
 0xa20   : > { %v4011_v12 = vmax.f32 %v9910_v11, %v9909_v0  ;;  %v4078_v27 = vmax.f32 %v9913_v52, %v8195_v50  ;;  %v9914_v59 = vld [vmem:[#allocation50_spill] sm:$0xff]  ;;  %v9915_v0 = vld [vmem:[#allocation51_spill] sm:$0xff]  ;;  %v9920_v52 = vld [vmem:[#allocation53_spill] sm:$0xff] }
 0xa21   : > { %3782 = vrot.lane.b32.xlu1 %v8384_v21, %s9654_s25  ;;  %4387 = vperm.xlu0 %5947, %v4178_v40   ;;  %v9905_v40 = vld [vmem:[#allocation87_spill] sm:$0xff]  ;;  %v4027_v11 = vmax.f32 %v9915_v0, %v9914_v59  ;;  %v9923_v0 = vld [vmem:[#allocation110_spill] sm:$0xff] }
 0xa22   : > { %v4015_v37 = vmax.f32 %v9905_v40, %v7963_v43  ;;  %v9911_v43 = vld [vmem:[#allocation91_spill] sm:$0xff]  ;;  %v4138_v40 = vmax.f32 %v4010_v38, %v4011_v12  ;;  %v9917_v38 = vld [vmem:[#allocation72_spill] sm:$0xff] }
 0xa23   : > { %v8394_v54 = vpop.permute.xlu1 %3642  ;;  %v8401_v3 = vpop.permute.xlu0 %3648 }
 0xa24   : > { %v4140_v60 = vmax.f32 %v4014_v46, %v4015_v37 }
 0xa25   : > { %3814 = vrot.lane.b32.xlu1 %v8396_v16, %s9654_s25  ;;  %4411 = vperm.xlu0 %5947, %v4186_v23   ;;  %v8424_v23 = vcombine.high %v3321_v44, %v3353_v28  ;;  %v9912_v28 = vld [vmem:[#allocation70_spill] sm:$0xff] }
 0xa26   : > { %v4026_v44 = vmax.f32 %v9912_v28, %v7832_v48  ;;  %v4028_v48 = vmax.f32 %v9917_v38, %v7850_v41  ;;  %v9919_v28 = vld [vmem:[#allocation109_spill] sm:$0xff]  ;;  %v9925_v38 = vld [vmem:[#allocation56_spill] sm:$0xff] }
 0xa27   : > { %v8408_v10 = vpop.permute.xlu1 %3674  ;;  %v8414_v34 = vpop.permute.xlu0 %3680  ;;  %v4029_v59 = vmax.f32 %v9920_v52, %v9919_v28  ;;  %v9928_v28 = vld [vmem:[#allocation83_spill] sm:$0xff] }
 0xa28   : > { %v4146_v12 = vmax.f32 %v4026_v44, %v4027_v11  ;;  %v9922_v44 = vld [vmem:[#allocation77_spill] sm:$0xff] }
 0xa29   : > { %3846 = vrot.lane.b32.xlu1 %v8410_v8, %s9654_s25  ;;  %4435 = vperm.xlu0 %5947, %v4194_v22   ;;  %v4047_v22 = vmax.f32 %v9911_v43, %v7997_v7  ;;  %v4079_v7 = vmax.f32 %v9916_v53, %v8043_v15  ;;  %v9918_v43 = vld [vmem:[#allocation28_spill] sm:$0xff]  ;;  %v4147_v53 = vmax.f32 %v4028_v48, %v4029_v59 }
 0xa2a   : > { %v4110_v50 = vmax.f32 %v9918_v43, %v8232_v13  ;;  %v4044_v41 = vmax.f32 %v9922_v44, %v7899_v51  ;;  %v4016_v13 = vmax.f32 %v9923_v0, %v8269_v29  ;;  %v9929_v59 = vld [vmem:[#allocation116_spill] sm:$0xff]  ;;  %v9931_v44 = vld [vmem:[#allocation62_spill] sm:$0xff] }
 0xa2b   : > { %v8422_v30 = vpop.permute.xlu1 %3706  ;;  %v8428_v5 = vpop.permute.xlu0 %3712  ;;  %v4156_v37 = vmax.f32 %v4046_v35, %v4047_v22  ;;  %v4172_v35 = vmax.f32 %v4078_v27, %v4079_v7  ;;  %v9924_v7 = vld [vmem:[#allocation115_spill] sm:$0xff]  ;;  %v4048_v29 = vmax.f32 %v9929_v59, %v8300_v14 }
 0xa2c   : > { %v4045_v43 = vmax.f32 %v9925_v38, %v9924_v7  ;;  %v9934_v7 = vld [vmem:[#allocation88_spill] sm:$0xff] }
 0xa2d   : > { %3878 = vrot.lane.b32.xlu1 %v8424_v23, %s9654_s25  ;;  %4273 = vperm.xlu0 %5947, %v4140_v60  }
 0xa2e   : > { %v4155_v48 = vmax.f32 %v4044_v41, %v4045_v43 }
 0xa2f   : > { %v8438_v46 = vpop.permute.xlu1 %3738  ;;  %v8442_v39 = vpop.permute.xlu0 %3744 }
 0xa31   : > { %4267 = vperm.xlu1 %5946, %v4138_v40   ;;  %4321 = vperm.xlu0 %5947, %v4156_v37   ;;  %v9921_v40 = vld [vmem:[#allocation23_spill] sm:$0xff] }
 0xa32   : > { %v4111_v15 = vmax.f32 %v9921_v40, %v8077_v6 }
 0xa33   : > { %v8450_v60 = vpop.permute.xlu1 %3770  ;;  %v8454_v22 = vpop.permute.xlu0 %3776 }
 0xa34   : > { %v4188_v27 = vmax.f32 %v4110_v50, %v4111_v15  ;;  %v9930_v15 = vld [vmem:[#allocation61_spill] sm:$0xff] }
 0xa35   : > { %4291 = vperm.xlu1 %5946, %v4146_v12   ;;  %4369 = vperm.xlu0 %5947, %v4172_v35   ;;  %v9926_v12 = vld [vmem:[#allocation97_spill] sm:$0xff]  ;;  %v9927_v35 = vld [vmem:[#allocation134_spill] sm:$0xff]  ;;  %v4061_v0 = vmax.f32 %v9931_v44, %v9930_v15  ;;  %v9940_v15 = vld [vmem:[#allocation92_spill] sm:$0xff] }
 0xa36   : > { %v4017_v6 = vmax.f32 %v9926_v12, %v8123_v62  ;;  %v4060_v51 = vmax.f32 %v9928_v28, %v9927_v35  ;;  %v9935_v12 = vld [vmem:[#allocation64_spill] sm:$0xff]  ;;  %v9936_v35 = vld [vmem:[#allocation39_spill] sm:$0xff]  ;;  %v9937_v28 = vld [vmem:[#allocation69_spill] sm:$0xff] }
 0xa37   : > { %v8462_v37 = vpop.permute.xlu1 %3802  ;;  %v8466_v11 = vpop.permute.xlu0 %3808  ;;  %v4080_v14 = vmax.f32 %v9935_v12, %v8339_v55  ;;  %v4077_v59 = vmax.f32 %v9937_v28, %v9936_v35 }
 0xa38   : > { %v4141_v50 = vmax.f32 %v4016_v13, %v4017_v6  ;;  %v4163_v41 = vmax.f32 %v4060_v51, %v4061_v0 }
 0xa39   : > { %4294 = vperm.xlu1 %5946, %v4147_v53   ;;  %4417 = vperm.xlu0 %5947, %v4188_v27   ;;  %v9932_v53 = vld [vmem:[#allocation103_spill] sm:$0xff]  ;;  %v9933_v27 = vld [vmem:[#allocation57_spill] sm:$0xff] }
 0xa3a   : > { %v4049_v62 = vmax.f32 %v9932_v53, %v8157_v33  ;;  %v4076_v38 = vmax.f32 %v9934_v7, %v9933_v27  ;;  %v9942_v27 = vld [vmem:[#allocation125_spill] sm:$0xff] }
 0xa3b   : > { %v8474_v52 = vpop.permute.xlu1 %3834  ;;  %v8478_v40 = vpop.permute.xlu0 %3840  ;;  %v9943_v7 = vld [vmem:[#allocation73_spill] sm:$0xff] }
 0xa3c   : > { %v4157_v13 = vmax.f32 %v4048_v29, %v4049_v62  ;;  %v4171_v51 = vmax.f32 %v4076_v38, %v4077_v59  ;;  %v9941_v29 = vld [vmem:[#allocation40_spill] sm:$0xff]  ;;  %v4093_v12 = vmax.f32 %v9943_v7, %v9942_v27  ;;  %v9952_v27 = vld [vmem:[#allocation34_spill] sm:$0xff] }
 0xa3d   : > { %4318 = vperm.xlu1 %5946, %v4155_v48   ;;  %4276 = vperm.xlu0 %5947, %v4141_v50   ;;  %v9938_v48 = vld [vmem:[#allocation107_spill] sm:$0xff]  ;;  %v9939_v50 = vld [vmem:[#allocation142_spill] sm:$0xff]  ;;  %v4112_v62 = vmax.f32 %v9941_v29, %v8368_v18  ;;  %v9945_v38 = vld [vmem:[#allocation148_spill] sm:$0xff] }
 0xa3e   : > { %v4081_v33 = vmax.f32 %v9938_v48, %v8203_v45  ;;  %v4092_v44 = vmax.f32 %v9940_v15, %v9939_v50  ;;  %v9947_v48 = vld [vmem:[#allocation124_spill] sm:$0xff]  ;;  %v9948_v50 = vld [vmem:[#allocation130_spill] sm:$0xff] }
 0xa3f   : > { %v8486_v43 = vpop.permute.xlu1 %3866  ;;  %v8490_v6 = vpop.permute.xlu0 %3872  ;;  %v4018_v18 = vmax.f32 %v9947_v48, %v8394_v54  ;;  %v9949_v15 = vld [vmem:[#allocation78_spill] sm:$0xff] }
 0xa40   : > { %v4173_v53 = vmax.f32 %v4080_v14, %v4081_v33  ;;  %v4179_v45 = vmax.f32 %v4092_v44, %v4093_v12  ;;  %v4109_v29 = vmax.f32 %v9949_v15, %v9948_v50 }
 0xa41   : > { %4342 = vperm.xlu1 %5946, %v4163_v41   ;;  %4324 = vperm.xlu0 %5947, %v4157_v13   ;;  %v9944_v41 = vld [vmem:[#allocation27_spill] sm:$0xff] }
 0xa42   : > { %v4113_v35 = vmax.f32 %v9944_v41, %v8237_v57  ;;  %v9946_v13 = vld [vmem:[#allocation31_spill] sm:$0xff] }
 0xa43   : > { %v3647_v0 = vpop.permute.xlu1 %3646  ;;  %v8500_v55 = vpop.permute.xlu0 %3652  ;;  %v4108_v28 = vmax.f32 %v9946_v13, %v9945_v38  ;;  %v9954_v38 = vld [vmem:[#allocation136_spill] sm:$0xff] }
 0xa44   : > { %v4189_v14 = vmax.f32 %v4112_v62, %v4113_v35  ;;  %v9953_v62 = vld [vmem:[#allocation129_spill] sm:$0xff]  ;;  %v9955_v13 = vld [vmem:[#allocation84_spill] sm:$0xff] }
 0xa45   : > { %4366 = vperm.xlu1 %5946, %v4171_v51   ;;  %4372 = vperm.xlu0 %5947, %v4173_v53   ;;  %v9950_v51 = vld [vmem:[#allocation111_spill] sm:$0xff]  ;;  %v4187_v44 = vmax.f32 %v4108_v28, %v4109_v29  ;;  %v9951_v53 = vld [vmem:[#allocation154_spill] sm:$0xff]  ;;  %v4050_v35 = vmax.f32 %v9953_v62, %v8422_v30  ;;  %v4125_v48 = vmax.f32 %v9955_v13, %v9954_v38  ;;  %v9957_v28 = vld [vmem:[#allocation37_spill] sm:$0xff] }
 0xa46   : > { %v4019_v57 = vmax.f32 %v9950_v51, %v8274_v58  ;;  %v4124_v7 = vmax.f32 %v9952_v27, %v9951_v53  ;;  %v9959_v51 = vld [vmem:[#allocation135_spill] sm:$0xff]  ;;  %v9960_v53 = vld [vmem:[#allocation138_spill] sm:$0xff]  ;;  %v9961_v27 = vld [vmem:[#allocation89_spill] sm:$0xff] }
 0xa47   : > { %v8508_v59 = vpop.permute.xlu1 %3678  ;;  %v8512_v33 = vpop.permute.xlu0 %3684  ;;  %v4082_v30 = vmax.f32 %v9959_v51, %v8450_v60  ;;  %v4031_v62 = vmax.f32 %v9961_v27, %v9960_v53  ;;  %v9969_v53 = vld [vmem:[#allocation143_spill] sm:$0xff] }
 0xa48   : > { %v4142_v41 = vmax.f32 %v4018_v18, %v4019_v57  ;;  %v4195_v58 = vmax.f32 %v4124_v7, %v4125_v48  ;;  %v4020_v27 = vmax.f32 %v9969_v53, %v3647_v0  ;;  %v9975_v0 = vld [vmem:[#allocation156_spill] sm:$0xff]  ;;  %v9979_v53 = vld [vmem:[#allocation155_spill] sm:$0xff] }
 0xa49   : > { %4390 = vperm.xlu1 %5946, %v4179_v45   ;;  %4420 = vperm.xlu0 %5947, %v4189_v14   ;;  %v9956_v45 = vld [vmem:[#allocation117_spill] sm:$0xff]  ;;  %v9958_v14 = vld [vmem:[#allocation99_spill] sm:$0xff] }
 0xa4a   : > { %v4051_v50 = vmax.f32 %v9956_v45, %v8307_v61  ;;  %v4030_v15 = vmax.f32 %v9958_v14, %v9957_v28  ;;  %v9966_v28 = vld [vmem:[#allocation93_spill] sm:$0xff] }
 0xa4b   : > { %v3711_v12 = vpop.permute.xlu1 %3710  ;;  %v8522_v54 = vpop.permute.xlu0 %3716 }
 0xa4c   : > { %v4158_v18 = vmax.f32 %v4050_v35, %v4051_v50  ;;  %v4148_v7 = vmax.f32 %v4030_v15, %v4031_v62  ;;  %v9964_v35 = vld [vmem:[#allocation55_spill] sm:$0xff]  ;;  %v9965_v50 = vld [vmem:[#allocation144_spill] sm:$0xff]  ;;  %v9970_v62 = vld [vmem:[#allocation150_spill] sm:$0xff] }
 0xa4d   : > { %4414 = vperm.xlu1 %5946, %v4187_v44   ;;  %4279 = vperm.xlu0 %5947, %v4142_v41   ;;  %v9962_v44 = vld [vmem:[#allocation121_spill] sm:$0xff]  ;;  %v4114_v45 = vmax.f32 %v9964_v35, %v8474_v52  ;;  %v4063_v14 = vmax.f32 %v9966_v28, %v9965_v50  ;;  %v9968_v15 = vld [vmem:[#allocation43_spill] sm:$0xff] }
 0xa4e   : > { %v4083_v61 = vmax.f32 %v9962_v44, %v8346_v1  ;;  %v9963_v41 = vld [vmem:[#allocation105_spill] sm:$0xff] }
 0xa4f   : > { %v8530_v29 = vpop.permute.xlu1 %3742  ;;  %v8534_v57 = vpop.permute.xlu0 %3748  ;;  %v4062_v38 = vmax.f32 %v9963_v41, %v8170_v42  ;;  %v9971_v44 = vld [vmem:[#allocation29_spill] sm:$0xff] }
 0xa50   : > { %v4174_v48 = vmax.f32 %v4082_v30, %v4083_v61  ;;  %v4095_v61 = vmax.f32 %v9971_v44, %v9970_v62  ;;  %v9974_v50 = vld [vmem:[#allocation149_spill] sm:$0xff]  ;;  %v9980_v62 = vld [vmem:[#allocation48_spill] sm:$0xff] }
 0xa51   : > { %4438 = vperm.xlu1 %5946, %v4195_v58   ;;  %4327 = vperm.xlu0 %5947, %v4158_v18   ;;  %v9967_v58 = vld [vmem:[#allocation67_spill] sm:$0xff]  ;;  %v4164_v1 = vmax.f32 %v4062_v38, %v4063_v14  ;;  %v4094_v18 = vmax.f32 %v9968_v15, %v8219_v17  ;;  %v9976_v14 = vld [vmem:[#allocation94_spill] sm:$0xff]  ;;  %v9978_v15 = vld [vmem:[#allocation113_spill] sm:$0xff] }
 0xa52   : > { %v4115_v51 = vmax.f32 %v9967_v58, %v8375_v20  ;;  %v9973_v38 = vld [vmem:[#allocation47_spill] sm:$0xff]  ;;  %v4127_v58 = vmax.f32 %v9976_v14, %v9975_v0  ;;  %v9981_v44 = vld [vmem:[#allocation100_spill] sm:$0xff] }
 0xa53   : > { %v3775_v13 = vpop.permute.xlu1 %3774  ;;  %v8544_v60 = vpop.permute.xlu0 %3780  ;;  %v4180_v20 = vmax.f32 %v4094_v18, %v4095_v61  ;;  %v4032_v18 = vmax.f32 %v9978_v15, %v8288_v36  ;;  %v4033_v61 = vmax.f32 %v9981_v44, %v9980_v62  ;;  %v9986_v14 = vld [vmem:[#allocation139_spill] sm:$0xff]  ;;  %v9991_v62 = vld [vmem:[#allocation122_spill] sm:$0xff] }
 0xa54   : > { %v4190_v30 = vmax.f32 %v4114_v45, %v4115_v51  ;;  %v4052_v45 = vmax.f32 %v9974_v50, %v3711_v12  ;;  %v9977_v51 = vld [vmem:[#allocation131_spill] sm:$0xff]  ;;  %v4128_v44 = vmax.f32 %v9991_v62, %v8382_v47  ;;  %v9997_v47 = vld [vmem:[#allocation38_spill] sm:$0xff] }
 0xa55   : > { %4297 = vperm.xlu1 %5946, %v4148_v7   ;;  %4375 = vperm.xlu0 %5947, %v4174_v48   ;;  %v9972_v7 = vld [vmem:[#allocation126_spill] sm:$0xff]  ;;  %v4126_v48 = vmax.f32 %v9973_v38, %v8250_v19  ;;  %v10003_v62 = vld [vmem:[#allocation63_spill] sm:$0xff] }
 0xa56   : > { %v4021_v41 = vmax.f32 %v9972_v7, %v8401_v3  ;;  %v9982_v7 = vld [vmem:[#allocation137_spill] sm:$0xff] }
 0xa57   : > { %v8552_v42 = vpop.permute.xlu1 %3806  ;;  %v8555_v52 = vpop.permute.xlu0 %3812  ;;  %v4196_v3 = vmax.f32 %v4126_v48, %v4127_v58  ;;  %v4117_v58 = vmax.f32 %v9986_v14, %v8478_v40  ;;  %v9998_v14 = vld [vmem:[#allocation114_spill] sm:$0xff] }
 0xa58   : > { %v4143_v35 = vmax.f32 %v4020_v27, %v4021_v41  ;;  %v4084_v27 = vmax.f32 %v9979_v53, %v3775_v13  ;;  %v4085_v41 = vmax.f32 %v9982_v7, %v8454_v22  ;;  %v9985_v13 = vld [vmem:[#allocation106_spill] sm:$0xff] }
 0xa59   : > { %4345 = vperm.xlu1 %5946, %v4164_v1   ;;  %4423 = vperm.xlu0 %5947, %v4190_v30   ;;  %v4053_v1 = vmax.f32 %v9977_v51, %v8428_v5  ;;  %v4149_v5 = vmax.f32 %v4032_v18, %v4033_v61  ;;  %v4065_v0 = vmax.f32 %v9985_v13, %v8176_v24  ;;  %v9987_v51 = vld [vmem:[#allocation42_spill] sm:$0xff]  ;;  %v9989_v18 = vld [vmem:[#allocation41_spill] sm:$0xff]  ;;  %v9992_v61 = vld [vmem:[#allocation151_spill] sm:$0xff] }
 0xa5a   : > { %v4175_v48 = vmax.f32 %v4084_v27, %v4085_v41  ;;  %v9990_v24 = vld [vmem:[#allocation145_spill] sm:$0xff]  ;;  %v4055_v7 = vmax.f32 %v9992_v61, %v8522_v54 }
 0xa5b   : > { %v3839_v17 = vpop.permute.xlu1 %3838  ;;  %v8564_v28 = vpop.permute.xlu0 %3844  ;;  %v4159_v19 = vmax.f32 %v4052_v45, %v4053_v1  ;;  %v4096_v1 = vmax.f32 %v9987_v51, %v8356_v26  ;;  %v4023_v27 = vmax.f32 %v9990_v24, %v8500_v55  ;;  %v9996_v55 = vld [vmem:[#allocation127_spill] sm:$0xff] }
 0xa5d   : > { %4393 = vperm.xlu1 %5946, %v4180_v20   ;;  %4282 = vperm.xlu0 %5947, %v4143_v35   ;;  %v9983_v20 = vld [vmem:[#allocation118_spill] sm:$0xff]  ;;  %v9984_v35 = vld [vmem:[#allocation25_spill] sm:$0xff] }
 0xa5e   : > { %v4064_v38 = vmax.f32 %v9983_v20, %v8320_v56  ;;  %v4116_v50 = vmax.f32 %v9984_v35, %v3839_v17  ;;  %v9988_v17 = vld [vmem:[#allocation160_spill] sm:$0xff]  ;;  %v9994_v20 = vld [vmem:[#allocation165_spill] sm:$0xff] }
 0xa5f   : > { %v8572_v30 = vpop.permute.xlu1 %3870  ;;  %v8575_v12 = vpop.permute.xlu0 %3876 }
 0xa60   : > { %v4165_v22 = vmax.f32 %v4064_v38, %v4065_v0  ;;  %v4191_v56 = vmax.f32 %v4116_v50, %v4117_v58  ;;  %v9995_v38 = vld [vmem:[#allocation108_spill] sm:$0xff]  ;;  %v4034_v50 = vmax.f32 %v9996_v55, %v8408_v10  ;;  %v4035_v58 = vmax.f32 %v9998_v14, %v9997_v47 }
 0xa61   : > { %4441 = vperm.xlu1 %5946, %v4196_v3   ;;  %4330 = vperm.xlu0 %5947, %v4159_v19   ;;  %v4097_v19 = vmax.f32 %v9989_v18, %v9988_v17  ;;  %v10001_v17 = vld [vmem:[#allocation164_spill] sm:$0xff] }
 0xa62   : > { %v4150_v54 = vmax.f32 %v4034_v50, %v4035_v58  ;;  %v10002_v10 = vld [vmem:[#allocation120_spill] sm:$0xff] }
 0xa63   : > { %v3651_v36 = vpop.permute.xlu1 %3650  ;;  %v8584_v45 = vpop.permute.xlu0 %3656  ;;  %v4181_v40 = vmax.f32 %v4096_v1, %v4097_v19  ;;  %v4067_v19 = vmax.f32 %v10002_v10, %v8326_v2 }
 0xa64   : > { %v4022_v15 = vmax.f32 %v8172_v32, %v3651_v36  ;;  %v9993_v32 = vld [vmem:[#allocation159_spill] sm:$0xff]  ;;  %v4129_v36 = vmax.f32 %v9995_v38, %v9994_v20  ;;  %v10007_v38 = vld [vmem:[#allocation30_spill] sm:$0xff] }
 0xa65   : > { %4300 = vperm.xlu1 %5946, %v4149_v5   ;;  %4378 = vperm.xlu0 %5947, %v4175_v48  }
 0xa66   : > { %v4144_v41 = vmax.f32 %v4022_v15, %v4023_v27  ;;  %v4197_v35 = vmax.f32 %v4128_v44, %v4129_v36  ;;  %v4098_v44 = vmax.f32 %v10003_v62, %v8462_v37  ;;  %v10008_v37 = vld [vmem:[#allocation123_spill] sm:$0xff] }
 0xa67   : > { %v8592_v3 = vpop.permute.xlu1 %3682  ;;  %v8597_v53 = vpop.permute.xlu0 %3688 }
 0xa69   : > { %4348 = vperm.xlu1 %5946, %v4165_v22   ;;  %4426 = vperm.xlu0 %5947, %v4191_v56   ;;  %v9999_v22 = vld [vmem:[#allocation132_spill] sm:$0xff]  ;;  %v10000_v56 = vld [vmem:[#allocation157_spill] sm:$0xff] }
 0xa6a   : > { %v4066_v51 = vmax.f32 %v9999_v22, %v8438_v46  ;;  %v4087_v15 = vmax.f32 %v10000_v56, %v8544_v60  ;;  %v10004_v46 = vld [vmem:[#allocation22_spill] sm:$0xff] }
 0xa6b   : > { %v3715_v26 = vpop.permute.xlu1 %3714  ;;  %v3721_v13 = vpop.permute.xlu0 %3720  ;;  %v4099_v61 = vmax.f32 %v10004_v46, %v8362_v25  ;;  %v10009_v25 = vld [vmem:[#allocation146_spill] sm:$0xff]  ;;  %v10017_v46 = vld [vmem:[#allocation161_spill] sm:$0xff] }
 0xa6c   : > { %v4054_v5 = vmax.f32 %v9993_v32, %v3715_v26  ;;  %v4036_v50 = vmax.f32 %v10009_v25, %v8508_v59  ;;  %v10013_v59 = vld [vmem:[#allocation133_spill] sm:$0xff] }
 0xa6d   : > { %4396 = vperm.xlu1 %5946, %v4181_v40   ;;  %4285 = vperm.xlu0 %5947, %v4144_v41   ;;  %v4166_v40 = vmax.f32 %v4066_v51, %v4067_v19  ;;  %v4182_v60 = vmax.f32 %v4098_v44, %v4099_v61  ;;  %v10023_v25 = vld [vmem:[#allocation153_spill] sm:$0xff] }
 0xa6e   : > { %v4160_v48 = vmax.f32 %v4054_v5, %v4055_v7  ;;  %v10005_v7 = vld [vmem:[#allocation140_spill] sm:$0xff] }
 0xa6f   : > { %v8610_v0 = vpop.permute.xlu1 %3746  ;;  %v8621_v24 = vpop.permute.xlu0 %3752  ;;  %v4130_v41 = vmax.f32 %v10005_v7, %v8486_v43  ;;  %v10006_v5 = vld [vmem:[#allocation104_spill] sm:$0xff] }
 0xa70   : > { %v4119_v20 = vmax.f32 %v10006_v5, %v8564_v28  ;;  %v10010_v43 = vld [vmem:[#allocation128_spill] sm:$0xff]  ;;  %v10019_v5 = vld [vmem:[#allocation98_spill] sm:$0xff] }
 0xa71   : > { %4444 = vperm.xlu1 %5946, %v4197_v35   ;;  %4333 = vperm.xlu0 %5947, %v4160_v48   ;;  %v4131_v48 = vmax.f32 %v10008_v37, %v8388_v9  ;;  %v4037_v14 = vmax.f32 %v10010_v43, %v8414_v34  ;;  %v10012_v9 = vld [vmem:[#allocation101_spill] sm:$0xff] }
 0xa72   : > { %v10014_v34 = vld [vmem:[#allocation85_spill] sm:$0xff] }
 0xa73   : > { %v3779_v1 = vpop.permute.xlu1 %3778  ;;  %v3785_v2 = vpop.permute.xlu0 %3784  ;;  %v4198_v55 = vmax.f32 %v4130_v41, %v4131_v48  ;;  %v4151_v28 = vmax.f32 %v4036_v50, %v4037_v14  ;;  %v4100_v10 = vmax.f32 %v10014_v34, %v8552_v42  ;;  %v10022_v48 = vld [vmem:[#allocation166_spill] sm:$0xff]  ;;  %v10024_v14 = vld [vmem:[#allocation95_spill] sm:$0xff] }
 0xa74   : > { %v4086_v18 = vmax.f32 %v10001_v17, %v3779_v1  ;;  %v4025_v1 = vmax.f32 %v10012_v9, %v8584_v45  ;;  %v10016_v45 = vld [vmem:[#allocation79_spill] sm:$0xff] }
 0xa75   : > { %4303 = vperm.xlu1 %5946, %v4150_v54   ;;  %v10011_v54 = vld [vmem:[#allocation152_spill] sm:$0xff] }
 0xa76   : > { %v4176_v27 = vmax.f32 %v4086_v18, %v4087_v15  ;;  %v4068_v22 = vmax.f32 %v10011_v54, %v8530_v29  ;;  %v4069_v15 = vmax.f32 %v10013_v59, %v8442_v39  ;;  %v10015_v29 = vld [vmem:[#allocation60_spill] sm:$0xff]  ;;  %v4057_v39 = vmax.f32 %v10017_v46, %v3721_v13 }
 0xa77   : > { %v8625_v26 = vpop.permute.xlu1 %3810  ;;  %v8640_v58 = vpop.permute.xlu0 %3816 }
 0xa78   : > { %4381 = vperm.xlu0 %5947, %v4176_v27   ;;  %v4167_v18 = vmax.f32 %v4068_v22, %v4069_v15  ;;  %v10028_v15 = vld [vmem:[#allocation76_spill] sm:$0xff] }
 0xa79   : > { %4351 = vperm.xlu1 %5946, %v4166_v40   ;;  %v4101_v40 = vmax.f32 %v10015_v29, %v8466_v11  ;;  %v4038_v11 = vmax.f32 %v10019_v5, %v8592_v3  ;;  %v4071_v3 = vmax.f32 %v10023_v25, %v8534_v57 }
 0xa7b   : > { %v3843_v32 = vpop.permute.xlu1 %3842  ;;  %v3849_v19 = vpop.permute.xlu0 %3848  ;;  %v4183_v62 = vmax.f32 %v4100_v10, %v4101_v40  ;;  %v10029_v10 = vld [vmem:[#allocation158_spill] sm:$0xff]  ;;  %v10030_v40 = vld [vmem:[#allocation163_spill] sm:$0xff] }
 0xa7c   : > { %v4118_v36 = vmax.f32 %v10007_v38, %v3843_v32  ;;  %v10020_v38 = vld [vmem:[#allocation147_spill] sm:$0xff]  ;;  %v4041_v29 = vmax.f32 %v10029_v10, %v8597_v53 }
 0xa7d   : > { %4399 = vperm.xlu1 %5946, %v4182_v60   ;;  %v10018_v60 = vld [vmem:[#allocation141_spill] sm:$0xff] }
 0xa7e   : > { %v4192_v35 = vmax.f32 %v4118_v36, %v4119_v20  ;;  %v4133_v7 = vmax.f32 %v10018_v60, %v8490_v6 }
 0xa7f   : > { %v3875_v47 = vpop.permute.xlu1 %3874  ;;  %v3881_v42 = vpop.permute.xlu0 %3880 }
 0xa80   : > { %4429 = vperm.xlu0 %5947, %v4192_v35   ;;  %v4089_v35 = vmax.f32 %v10022_v48, %v3785_v2  ;;  %v10026_v2 = vld [vmem:[#allocation167_spill] sm:$0xff] }
 0xa81   : > { %4447 = vperm.xlu1 %5946, %v4198_v55   ;;  %v4134_v9 = vmax.f32 %v10026_v2, %v3875_v47 }
 0xa83   : > { %v3655_v51 = vpop.permute.xlu1 %3654 }
 0xa84   : > { %v4024_v56 = vmax.f32 %v8322_v63, %v3655_v51  ;;  %v4132_v63 = vmax.f32 %v10016_v45, %v8572_v30  ;;  %v4039_v30 = vmax.f32 %v10020_v38, %v8512_v33 }
 0xa85   : > { %4306 = vperm.xlu1 %5946, %v4151_v28   ;;  %v4102_v28 = vmax.f32 %v10024_v14, %v8625_v26 }
 0xa86   : > { %v4145_v17 = vmax.f32 %v4024_v56, %v4025_v1  ;;  %v4199_v32 = vmax.f32 %v4132_v63, %v4133_v7  ;;  %v4152_v13 = vmax.f32 %v4038_v11, %v4039_v30  ;;  %v10027_v1 = vld [vmem:[#allocation26_spill] sm:$0xff] }
 0xa87   : > { %v3687_v27 = vpop.permute.xlu1 %3686  ;;  %v4121_v56 = vmax.f32 %v10027_v1, %v3849_v19 }
 0xa88   : > { %4288 = vperm.xlu0 %5947, %v4145_v17   ;;  %v4135_v17 = vmax.f32 %v10028_v15, %v8575_v12  ;;  %v4073_v12 = vmax.f32 %v10030_v40, %v8621_v24 }
 0xa89   : > { %4354 = vperm.xlu1 %5946, %v4167_v18  }
 0xa8a   : > { %v4200_v34 = vmax.f32 %v4134_v9, %v4135_v17 }
 0xa8b   : > { %v3719_v44 = vpop.permute.xlu1 %3718 }
 0xa8c   : > { %v4056_v61 = vmax.f32 %v8358_v49, %v3719_v44  ;;  %v10021_v49 = vld [vmem:[#allocation162_spill] sm:$0xff] }
 0xa8d   : > { %4402 = vperm.xlu1 %5946, %v4183_v62   ;;  %v4070_v37 = vmax.f32 %v10021_v49, %v8610_v0  ;;  %v10025_v0 = vld [vmem:[#allocation82_spill] sm:$0xff] }
 0xa8e   : > { %v4161_v41 = vmax.f32 %v4056_v61, %v4057_v39  ;;  %v4103_v22 = vmax.f32 %v10025_v0, %v8555_v52  ;;  %v4040_v52 = vmax.f32 %v8341_v4, %v3687_v27  ;;  %v10031_v27 = vld [vmem:[#allocation36_spill] sm:$0xff] }
 0xa8f   : > { %v3751_v20 = vpop.permute.xlu1 %3750  ;;  %v4168_v33 = vmax.f32 %v4070_v37, %v4071_v3  ;;  %v4105_v44 = vmax.f32 %v10031_v27, %v8640_v58 }
 0xa90   : > { %4336 = vperm.xlu0 %5947, %v4161_v41   ;;  %v8663_v36 = vpop.permute.xlu0 %4270  ;;  %v4153_v19 = vmax.f32 %v4040_v52, %v4041_v29 }
 0xa91   : > { %4450 = vperm.xlu1 %5946, %v4199_v32  }
 0xa93   : > { %v3783_v6 = vpop.permute.xlu1 %3782 }
 0xa94   : > { %v4088_v55 = vmax.f32 %v8384_v21, %v3783_v6  ;;  %v8671_v50 = vpop.permute.xlu0 %4315  ;;  %v4184_v21 = vmax.f32 %v4102_v28, %v4103_v22 }
 0xa95   : > { %4309 = vperm.xlu1 %5946, %v4152_v13  }
 0xa96   : > { %v4177_v43 = vmax.f32 %v4088_v55, %v4089_v35 }
 0xa97   : > { %v3815_v54 = vpop.permute.xlu1 %3814 }
 0xa98   : > { %4384 = vperm.xlu0 %5947, %v4177_v43   ;;  %v8677_v51 = vpop.permute.xlu0 %4339  ;;  %v4104_v63 = vmax.f32 %v8396_v16, %v3815_v54 }
 0xa99   : > { %4357 = vperm.xlu1 %5946, %v4168_v33  }
 0xa9a   : > { %v4185_v46 = vmax.f32 %v4104_v63, %v4105_v44 }
 0xa9b   : > { %v3847_v57 = vpop.permute.xlu1 %3846 }
 0xa9c   : > { %v4120_v59 = vmax.f32 %v8410_v8, %v3847_v57  ;;  %v8684_v26 = vpop.permute.xlu0 %4363  ;;  %v4072_v8 = vmax.f32 %v8370_v31, %v3751_v20  ;;  %v10032_v31 = vld [vmem:[#allocation68_spill] sm:$0xff] }
 0xa9d   : > { %4405 = vperm.xlu1 %5946, %v4184_v21   ;;  %v4137_v61 = vmax.f32 %v10032_v31, %v3881_v42 }
 0xa9e   : > { %v4193_v18 = vmax.f32 %v4120_v59, %v4121_v56  ;;  %v4169_v45 = vmax.f32 %v4072_v8, %v4073_v12 }
 0xa9f   : > { %v3879_v4 = vpop.permute.xlu1 %3878 }
 0xaa0   : > { %4432 = vperm.xlu0 %5947, %v4193_v18   ;;  %v8689_v47 = vpop.permute.xlu0 %4387  ;;  %v4136_v39 = vmax.f32 %v8424_v23, %v3879_v4 }
 0xaa1   : > { %4453 = vperm.xlu1 %5946, %v4200_v34  }
 0xaa2   : > { %v4201_v24 = vmax.f32 %v4136_v39, %v4137_v61 }
 0xaa4   : > { %v8694_v62 = vpop.permute.xlu0 %4411 }
 0xaa5   : > { %4312 = vperm.xlu1 %5946, %v4153_v19   ;;  %v10033_v19 = vld [vmem:[#allocation21_spill] sm:$0xff] }
 0xaa6   : > { %v4465_v40 = vrot.slane %v8663_v36, %v10033_v19  ;;  %v4525_v63 = vrot.slane %v8671_v50, %v10033_v19  ;;  %v4557_v4 = vrot.slane %v8677_v51, %v10033_v19  ;;  %v4589_v36 = vrot.slane %v8684_v26, %v10033_v19 }
 0xaa7   : > { %v4621_v39 = vrot.slane %v8689_v47, %v10033_v19  ;;  %v4653_v51 = vrot.slane %v8694_v62, %v10033_v19 }
 0xaa8   : > { %v8699_v53 = vpop.permute.xlu0 %4435 }
 0xaa9   : > { %4360 = vperm.xlu1 %5946, %v4169_v45   ;;  %v4685_v61 = vrot.slane %v8699_v53, %v10033_v19 }
 0xaac   : > { %v8703_v60 = vpop.permute.xlu0 %4273 }
 0xaad   : > { %4408 = vperm.xlu1 %5946, %v4185_v46  }
 0xab0   : > { %v4268_v7 = vpop.permute.xlu1 %4267  ;;  %v8705_v41 = vpop.permute.xlu0 %4321 }
 0xab1   : > { %4456 = vperm.xlu1 %5946, %v4201_v24   ;;  %v4461_v8 = vrot.slane %v4268_v7, %v10033_v19  ;;  %v4469_v24 = vrot.slane %v8703_v60, %v10033_v19  ;;  %v4533_v47 = vrot.slane %v8705_v41, %v10033_v19 }
 0xab3   : > { %v4714_v31 = vsel %vm883_vm8, %v4465_v40, %v4461_v8 }
 0xab4   : > { %v8707_v16 = vpop.permute.xlu1 %4291  ;;  %v8709_v32 = vpop.permute.xlu0 %4369  ;;  %v4715_v53 = vsel %vm900_vm6, %v4469_v24, %v4714_v31 }
 0xab5   : > { %v4493_v7 = vrot.slane %v8707_v16, %v10033_v19  ;;  %v4597_v62 = vrot.slane %v8709_v32, %v10033_v19 }
 0xab8   : > { %v8711_v58 = vpop.permute.xlu1 %4294  ;;  %v8713_v5 = vpop.permute.xlu0 %4417 }
 0xab9   : > { %v4497_v50 = vrot.slane %v8711_v58, %v10033_v19  ;;  %v4661_v16 = vrot.slane %v8713_v5, %v10033_v19 }
 0xabc   : > { %v4319_v11 = vpop.permute.xlu1 %4318  ;;  %v8717_v42 = vpop.permute.xlu0 %4276 }
 0xabd   : > { %v4529_v12 = vrot.slane %v4319_v11, %v10033_v19  ;;  %v4473_v26 = vrot.slane %v8717_v42, %v10033_v19 }
 0xabf   : > { %v4728_v58 = vsel %vm883_vm8, %v4529_v12, %v4525_v63 }
 0xac0   : > { %v8715_v23 = vpop.permute.xlu1 %4342  ;;  %v8719_v38 = vpop.permute.xlu0 %4324  ;;  %v4729_v40 = vsel %vm900_vm6, %v4533_v47, %v4728_v58 }
 0xac1   : > { %v4561_v60 = vrot.slane %v8715_v23, %v10033_v19  ;;  %v4537_v32 = vrot.slane %v8719_v38, %v10033_v19  ;;  %v4716_v23 = vsel %vm902_vm13, %v4473_v26, %v4715_v53 }
 0xac4   : > { %v4367_v20 = vpop.permute.xlu1 %4366  ;;  %v8723_v49 = vpop.permute.xlu0 %4372 }
 0xac5   : > { %v4593_v45 = vrot.slane %v4367_v20, %v10033_v19  ;;  %v4601_v5 = vrot.slane %v8723_v49, %v10033_v19 }
 0xac7   : > { %v4742_v11 = vsel %vm883_vm8, %v4593_v45, %v4589_v36 }
 0xac8   : > { %v8721_v30 = vpop.permute.xlu1 %4390  ;;  %v8727_v6 = vpop.permute.xlu0 %4420  ;;  %v4743_v12 = vsel %vm900_vm6, %v4597_v62, %v4742_v11 }
 0xac9   : > { %v4625_v8 = vrot.slane %v8721_v30, %v10033_v19  ;;  %v4665_v36 = vrot.slane %v8727_v6, %v10033_v19 }
 0xacc   : > { %v4415_v13 = vpop.permute.xlu1 %4414  ;;  %v8733_v55 = vpop.permute.xlu0 %4279 }
 0xacd   : > { %v4657_v27 = vrot.slane %v4415_v13, %v10033_v19  ;;  %v4721_v13 = vsel %vm883_vm8, %v4497_v50, %v4493_v7  ;;  %v4477_v45 = vrot.slane %v8733_v55, %v10033_v19 }
 0xacf   : > { %v4756_v42 = vsel %vm883_vm8, %v4657_v27, %v4653_v51  ;;  %v4735_v27 = vsel %vm883_vm8, %v4561_v60, %v4557_v4  ;;  %v4744_v51 = vsel %vm902_vm13, %v4601_v5, %v4743_v12  ;;  %v4717_v6 = vsel %vm904_vm14, %v4477_v45, %v4716_v23 }
 0xad0   : > { %v8725_v37 = vpop.permute.xlu1 %4438  ;;  %v8737_v3 = vpop.permute.xlu0 %4327  ;;  %v4757_v63 = vsel %vm900_vm6, %v4661_v16, %v4756_v42 }
 0xad1   : > { %v4541_v38 = vrot.slane %v8737_v3, %v10033_v19  ;;  %v4689_v30 = vrot.slane %v8725_v37, %v10033_v19  ;;  %v4730_v3 = vsel %vm902_vm13, %v4537_v32, %v4729_v40  ;;  %v4749_v37 = vsel %vm883_vm8, %v4625_v8, %v4621_v39 }
 0xad3   : > { %v4731_v26 = vsel %vm904_vm14, %v4541_v38, %v4730_v3  ;;  %v4763_v47 = vsel %vm883_vm8, %v4689_v30, %v4685_v61 }
 0xad4   : > { %v8729_v48 = vpop.permute.xlu1 %4297  ;;  %v8743_v14 = vpop.permute.xlu0 %4375 }
 0xad5   : > { %v4605_v55 = vrot.slane %v8743_v14, %v10033_v19  ;;  %v4501_v49 = vrot.slane %v8729_v48, %v10033_v19  ;;  %v4758_v48 = vsel %vm902_vm13, %v4665_v36, %v4757_v63 }
 0xad7   : > { %v4745_v7 = vsel %vm904_vm14, %v4605_v55, %v4744_v51  ;;  %v4722_v58 = vsel %vm900_vm6, %v4501_v49, %v4721_v13 }
 0xad8   : > { %v8731_v35 = vpop.permute.xlu1 %4345  ;;  %v8747_v54 = vpop.permute.xlu0 %4423 }
 0xad9   : > { %v4565_v4 = vrot.slane %v8731_v35, %v10033_v19  ;;  %v4669_v14 = vrot.slane %v8747_v54, %v10033_v19 }
 0xadb   : > { %v4736_v61 = vsel %vm900_vm6, %v4565_v4, %v4735_v27  ;;  %v4759_v60 = vsel %vm904_vm14, %v4669_v14, %v4758_v48 }
 0xadc   : > { %v8735_v25 = vpop.permute.xlu1 %4393  ;;  %v8753_v21 = vpop.permute.xlu0 %4282 }
 0xadd   : > { %v4629_v24 = vrot.slane %v8735_v25, %v10033_v19  ;;  %v4481_v39 = vrot.slane %v8753_v21, %v10033_v19 }
 0xadf   : > { %v4718_v16 = vsel %vm906_vm4, %v4481_v39, %v4717_v6 }
 0xae0   : > { %v8739_v43 = vpop.permute.xlu1 %4441  ;;  %v8757_v9 = vpop.permute.xlu0 %4330 }
 0xae1   : > { %v4693_v35 = vrot.slane %v8739_v43, %v10033_v19  ;;  %v4545_v54 = vrot.slane %v8757_v9, %v10033_v19  ;;  %v4750_v9 = vsel %vm900_vm6, %v4629_v24, %v4749_v37 }
 0xae3   : > { %v4732_v13 = vsel %vm906_vm4, %v4545_v54, %v4731_v26 }
 0xae4   : > { %v8741_v33 = vpop.permute.xlu1 %4300  ;;  %v8763_v56 = vpop.permute.xlu0 %4378 }
 0xae5   : > { %v4505_v25 = vrot.slane %v8741_v33, %v10033_v19  ;;  %v4609_v21 = vrot.slane %v8763_v56, %v10033_v19  ;;  %v4764_v56 = vsel %vm900_vm6, %v4693_v35, %v4763_v47 }
 0xae7   : > { %v4723_v32 = vsel %vm902_vm13, %v4505_v25, %v4722_v58  ;;  %v4746_v40 = vsel %vm906_vm4, %v4609_v21, %v4745_v7 }
 0xae8   : > { %v8745_v28 = vpop.permute.xlu1 %4348  ;;  %v8767_v15 = vpop.permute.xlu0 %4426 }
 0xae9   : > { %v4673_v43 = vrot.slane %v8767_v15, %v10033_v19  ;;  %v4569_v53 = vrot.slane %v8745_v28, %v10033_v19 }
 0xaeb   : > { %v4760_v12 = vsel %vm906_vm4, %v4673_v43, %v4759_v60 }
 0xaec   : > { %v8749_v0 = vpop.permute.xlu1 %4396  ;;  %v8773_v34 = vpop.permute.xlu0 %4285 }
 0xaed   : > { %v4485_v33 = vrot.slane %v8773_v34, %v10033_v19  ;;  %v4633_v42 = vrot.slane %v8749_v0, %v10033_v19 }
 0xaef   : > { %v4719_v45 = vsel %vm908_vm9, %v4485_v33, %v4718_v16  ;;  %v4751_v5 = vsel %vm902_vm13, %v4633_v42, %v4750_v9 }
 0xaf0   : > { %v8751_v22 = vpop.permute.xlu1 %4444  ;;  %v8777_v10 = vpop.permute.xlu0 %4333 }
 0xaf1   : > { %v4549_v15 = vrot.slane %v8777_v10, %v10033_v19  ;;  %v4697_v28 = vrot.slane %v8751_v22, %v10033_v19  ;;  %v4737_v10 = vsel %vm902_vm13, %v4569_v53, %v4736_v61 }
 0xaf3   : > { %v4733_v63 = vsel %vm908_vm9, %v4549_v15, %v4732_v13  ;;  %v4765_v38 = vsel %vm902_vm13, %v4697_v28, %v4764_v56  ;;  %v10034_v56 = vld [vmem:[#allocation2_spill] sm:$0xff] }
 0xaf4   : > { %v8755_v2 = vpop.permute.xlu1 %4303 }
 0xaf5   : > { %v4509_v34 = vrot.slane %v8755_v2, %v10033_v19 }
 0xaf7   : > { %v8791_v44 = vpop.permute.xlu0 %4381  ;;  %v4724_v27 = vsel %vm904_vm14, %v4509_v34, %v4723_v32 }
 0xaf8   : > { %v8759_v57 = vpop.permute.xlu1 %4351  ;;  %v4613_v3 = vrot.slane %v8791_v44, %v10033_v19 }
 0xaf9   : > { %v4573_v0 = vrot.slane %v8759_v57, %v10033_v19 }
 0xafa   : > { %v4747_v60 = vsel %vm908_vm9, %v4613_v3, %v4746_v40 }
 0xafb   : > { %v4738_v36 = vsel %vm904_vm14, %v4573_v0, %v4737_v10 }
 0xafc   : > { %v8761_v1 = vpop.permute.xlu1 %4399 }
 0xafd   : > { %v4637_v30 = vrot.slane %v8761_v1, %v10033_v19 }
 0xaff   : > { %v8822_v20 = vpop.permute.xlu0 %4429  ;;  %v4752_v48 = vsel %vm904_vm14, %v4637_v30, %v4751_v5 }
 0xb00   : > { %v8765_v59 = vpop.permute.xlu1 %4447  ;;  %v4677_v37 = vrot.slane %v8822_v20, %v10033_v19 }
 0xb01   : > { %v4701_v51 = vrot.slane %v8765_v59, %v10033_v19 }
 0xb02   : > { %v4761_v35 = vsel %vm908_vm9, %v4677_v37, %v4760_v12 }
 0xb03   : > { %v4766_v25 = vsel %vm904_vm14, %v4701_v51, %v4765_v38 }
 0xb04   : > { %v8769_v17 = vpop.permute.xlu1 %4306 }
 0xb05   : > { %v4513_v2 = vrot.slane %v8769_v17, %v10033_v19 }
 0xb07   : > { %v8852_v31 = vpop.permute.xlu0 %4288  ;;  %v4725_v4 = vsel %vm906_vm4, %v4513_v2, %v4724_v27 }
 0xb08   : > { %v8771_v18 = vpop.permute.xlu1 %4354  ;;  %v4489_v6 = vrot.slane %v8852_v31, %v10033_v19 }
 0xb09   : > { %v4577_v22 = vrot.slane %v8771_v18, %v10033_v19 }
 0xb0b   : > { %v4739_v1 = vsel %vm906_vm4, %v4577_v22, %v4738_v36 }
 0xb0c   : > { %v8775_v52 = vpop.permute.xlu1 %4402 }
 0xb0d   : > { %v4641_v26 = vrot.slane %v8775_v52, %v10033_v19 }
 0xb0f   : > { %v4337_v11 = vpop.permute.xlu0 %4336  ;;  %v4753_v9 = vsel %vm906_vm4, %v4641_v26, %v4752_v48 }
 0xb10   : > { %v8779_v29 = vpop.permute.xlu1 %4450  ;;  %v4553_v55 = vrot.slane %v4337_v11, %v10033_v19  ;;  %v4720_v11 = vsel %vm910_vm5, %v4489_v6, %v4719_v45 }
 0xb11   : > { %v4705_v47 = vrot.slane %v8779_v29, %v10033_v19 }
 0xb12   : > { %v4734_v59 = vsel %vm910_vm5, %v4553_v55, %v4733_v63  ;;  %v10035_v55 = vld [vmem:[#allocation3_spill] sm:$0xff] }
 0xb13   : > { %v4778_v29 = vcombine.low %v4720_v11, %v4734_v59  ;;  %v4779_v21 = vcombine.high %v4720_v11, %v4734_v59  ;;  %v4767_v33 = vsel %vm906_vm4, %v4705_v47, %v4766_v25  ;;  %v439_v59 = vld [vmem:[%s9321_s1 + $0x10] sm:$0xff]  ;;  %v10036_v47 = vld [vmem:[#allocation13_spill] sm:$0xff] }
 0xb14   : > { %v8793_v46 = vpop.permute.xlu1 %4309  ;;  %5741 = vmatprep.mubr.msk.f32.mxu0 %vm9567_vm7, %v439_v59  ;;  %v10043_v25 = vld [vmem:[#allocation5_spill] sm:$0xff] }
 0xb15   : > { %v4517_v18 = vrot.slane %v8793_v46, %v10033_v19  ;;  %v4786_v0 = vrot.slane %v4778_v29, %v10034_v56  ;;  %v10044_v11 = vld [vmem:[#allocation17_spill] sm:$0xff] }
 0xb16   : > { %v10047_v29 = vld [vmem:[#allocation9_spill] sm:$0xff] }
 0xb17   : > { %v4385_v8 = vpop.permute.xlu0 %4384  ;;  %v4726_v44 = vsel %vm908_vm9, %v4517_v18, %v4725_v4 }
 0xb18   : > { %v8824_v41 = vpop.permute.xlu1 %4357  ;;  %v4617_v7 = vrot.slane %v4385_v8, %v10033_v19  ;;  %v4793_v8 = vrot.slane %v4779_v21, %v10034_v56  ;;  %v10048_v21 = vld [vmem:[#allocation19_spill] sm:$0xff] }
 0xb19   : > { %v4581_v57 = vrot.slane %v8824_v41, %v10033_v19 }
 0xb1a   : > { %v4748_v16 = vsel %vm910_vm5, %v4617_v7, %v4747_v60  ;;  %v10040_v7 = vld [vmem:[#allocation15_spill] sm:$0xff] }
 0xb1b   : > { %v4740_v14 = vsel %vm908_vm9, %v4581_v57, %v4739_v1 }
 0xb1c   : > { %v8854_v50 = vpop.permute.xlu1 %4405 }
 0xb1d   : > { %v4645_v52 = vrot.slane %v8854_v50, %v10033_v19 }
 0xb1f   : > { %v4433_v17 = vpop.permute.xlu0 %4432  ;;  %v4754_v28 = vsel %vm908_vm9, %v4645_v52, %v4753_v9  ;;  %v10045_v52 = vld [vmem:[#allocation10_spill] sm:$0xff] }
 0xb20   : > { %v8879_v62 = vpop.permute.xlu1 %4453  ;;  %v4681_v20 = vrot.slane %v4433_v17, %v10033_v19 }
 0xb21   : > { %v4709_v61 = vrot.slane %v8879_v62, %v10033_v19 }
 0xb22   : > { %v4762_v43 = vsel %vm910_vm5, %v4681_v20, %v4761_v35  ;;  %v10039_v35 = vld [vmem:[#allocation7_spill] sm:$0xff] }
 0xb23   : > { %v4810_v13 = vcombine.low %v4748_v16, %v4762_v43  ;;  %v4811_v32 = vcombine.high %v4748_v16, %v4762_v43  ;;  %v4768_v34 = vsel %vm908_vm9, %v4709_v61, %v4767_v33  ;;  %v10046_v61 = vld [vmem:[#allocation18_spill] sm:$0xff]  ;;  %v10049_v43 = vld [vmem:[#allocation11_spill] sm:$0xff] }
 0xb24   : > { %v4313_v23 = vpop.permute.xlu1 %4312 }
 0xb25   : > { %v4521_v49 = vrot.slane %v4313_v23, %v10033_v19  ;;  %v4825_v2 = vrot.slane %v4811_v32, %v10034_v56 }
 0xb27   : > { %v4727_v31 = vsel %vm910_vm5, %v4521_v49, %v4726_v44 }
 0xb28   : > { %v4361_v41 = vpop.permute.xlu1 %4360 }
 0xb29   : > { %v4585_v46 = vrot.slane %v4361_v41, %v10033_v19 }
 0xb2b   : > { %v4741_v24 = vsel %vm910_vm5, %v4585_v46, %v4740_v14 }
 0xb2c   : > { %v4409_v39 = vpop.permute.xlu1 %4408  ;;  %v4794_v58 = vcombine.low %v4727_v31, %v4741_v24  ;;  %v4795_v54 = vcombine.high %v4727_v31, %v4741_v24  ;;  %v10037_v31 = vld [vmem:[#allocation6_spill] sm:$0xff] }
 0xb2d   : > { %v4649_v53 = vrot.slane %v4409_v39, %v10033_v19  ;;  %v10038_v39 = vld [vmem:[#allocation14_spill] sm:$0xff] }
 0xb2e   : > { %v4802_v50 = vrot.slane %v4794_v58, %v10034_v56  ;;  %v4809_v15 = vrot.slane %v4795_v54, %v10034_v56  ;;  %v10041_v58 = vld [vmem:[#allocation8_spill] sm:$0xff] }
 0xb2f   : > { %v4755_v23 = vsel %vm910_vm5, %v4649_v53, %v4754_v28  ;;  %v10042_v54 = vld [vmem:[#allocation16_spill] sm:$0xff] }
 0xb30   : > { %v4457_v42 = vpop.permute.xlu1 %4456  ;;  %v4842_v22 = vcombine.low %v4786_v0, %v4802_v50  ;;  %v4843_v45 = vcombine.high %v4786_v0, %v4802_v50  ;;  %v4858_v5 = vcombine.low %v4793_v8, %v4809_v15  ;;  %v4859_v38 = vcombine.high %v4793_v8, %v4809_v15  ;;  %v440_v8 = vld [vmem:[%s9321_s1 + $0x18] sm:$0xff] }
 0xb31   : > { %v4713_v62 = vrot.slane %v4457_v42, %v10033_v19  ;;  %v4818_v19 = vrot.slane %v4810_v13, %v10034_v56 }
 0xb32   : > { %v4857_v17 = vrot.slane %v4843_v45, %v10035_v55  ;;  %v4850_v49 = vrot.slane %v4842_v22, %v10035_v55  ;;  %v4866_v41 = vrot.slane %v4858_v5, %v10035_v55  ;;  %v4873_v51 = vrot.slane %v4859_v38, %v10035_v55 }
 0xb33   : > { %v4769_v40 = vsel %vm910_vm5, %v4713_v62, %v4768_v34 }
 0xb34   : > { %v4826_v12 = vcombine.low %v4755_v23, %v4769_v40  ;;  %v4827_v10 = vcombine.high %v4755_v23, %v4769_v40 }
 0xb36   : > { %v4834_v57 = vrot.slane %v4826_v12, %v10034_v56  ;;  %v4841_v63 = vrot.slane %v4827_v10, %v10034_v56  ;;  %v10050_v12 = vld [vmem:[#allocation12_spill] sm:$0xff] }
 0xb38   : > { %v4874_v30 = vcombine.low %v4818_v19, %v4834_v57  ;;  %v4875_v18 = vcombine.high %v4818_v19, %v4834_v57  ;;  %v4890_v27 = vcombine.low %v4825_v2, %v4841_v63  ;;  %v4891_v36 = vcombine.high %v4825_v2, %v4841_v63  ;;  %v10051_v19 = vld [vmem:[#allocation4_spill] sm:$0xff] }
 0xb3a   : > { %v4889_v3 = vrot.slane %v4875_v18, %v10035_v55  ;;  %v4882_v37 = vrot.slane %v4874_v30, %v10035_v55  ;;  %v4898_v1 = vrot.slane %v4890_v27, %v10035_v55  ;;  %v4905_v46 = vrot.slane %v4891_v36, %v10035_v55 }
 0xb3c   : > { %v4908_v4 = vcombine.low %v4857_v17, %v4889_v3  ;;  %v4907_v6 = vcombine.high %v4850_v49, %v4882_v37  ;;  %v4910_v14 = vcombine.low %v4866_v41, %v4898_v1  ;;  %v4909_v48 = vcombine.high %v4857_v17, %v4889_v3 }
 0xb3d   : > { %v4912_v44 = vcombine.low %v4873_v51, %v4905_v46  ;;  %v4911_v20 = vcombine.high %v4866_v41, %v4898_v1  ;;  %v4913_v24 = vcombine.high %v4873_v51, %v4905_v46  ;;  %v4906_v26 = vcombine.low %v4850_v49, %v4882_v37 }
 0xb3e   : > { %4919 = vrot.lane.b32.xlu1 %v4908_v4, %s9666_s17  ;;  %4915 = vrot.lane.b32.xlu0 %v4907_v6, %s9673_s6 }
 0xb42   : > { %4927 = vrot.lane.b32.xlu1 %v4910_v14, %s9653_s14  ;;  %4923 = vrot.lane.b32.xlu0 %v4909_v48, %s9661_s27 }
 0xb46   : > { %4935 = vrot.lane.b32.xlu1 %v4912_v44, %s9641_s16  ;;  %4931 = vrot.lane.b32.xlu0 %v4911_v20, %s9646_s4 }
 0xb4a   : > { %4939 = vrot.lane.b32.xlu0 %v4913_v24, %s9637_s20  ;;  %391 = vrot.lane.b32.xlu1 %v10036_v47, %s9673_s6 }
 0xb4e   : > { %416 = vrot.lane.b32.xlu0 %v10037_v31, %s9673_s6  ;;  %393 = vrot.lane.b32.xlu1 %v10038_v39, %s9666_s17 }
 0xb52   : > { %418 = vrot.lane.b32.xlu0 %v10039_v35, %s9666_s17  ;;  %395 = vrot.lane.b32.xlu1 %v10040_v7, %s9661_s27  ;;  %s10106_s17 = sshll.u32 %s10109_s13, 3 }
 0xb53   : > { %s168_s7 = scalar_lea.vmem %s9323_s3, %s10106_s17 }
 0xb56   : > { %420 = vrot.lane.b32.xlu0 %v10041_v58, %s9661_s27  ;;  %397 = vrot.lane.b32.xlu1 %v10042_v54, %s9653_s14 }
 0xb5a   : > { %422 = vrot.lane.b32.xlu0 %v10043_v25, %s9653_s14  ;;  %399 = vrot.lane.b32.xlu1 %v10044_v11, %s9646_s4 }
 0xb5e   : > { %424 = vrot.lane.b32.xlu0 %v10045_v52, %s9646_s4  ;;  %401 = vrot.lane.b32.xlu1 %v10046_v61, %s9641_s16  ;;  %v10054_v52 = vmov 0  ;;  %v10056_v61 = vmov 0 }
 0xb62   : > { %426 = vrot.lane.b32.xlu0 %v10047_v29, %s9641_s16  ;;  %403 = vrot.lane.b32.xlu1 %v10048_v21, %s9637_s20  ;;  %v10058_v29 = vmov 0  ;;  %v10060_v21 = vmov 0  ;;  %s6078_s16 = smov 121  }
 0xb66   : > { %428 = vrot.lane.b32.xlu0 %v10049_v43, %s9637_s20  ;;  %s6076_s20 = smov 71  }
 0xbb0   : > { %v4920_v53 = vpop.permute.xlu1 %4919  ;;  %v4916_v60 = vpop.permute.xlu0 %4915 }
 0xbb1   : > { %v4942_v9 = vsel %vm9567_vm7, %v4906_v26, %v4916_v60 }
 0xbb2   : > { %v4943_v16 = vsel %vm9568_vm0, %v4942_v9, %v4920_v53 }
 0xbb4   : > { %v4928_v33 = vpop.permute.xlu1 %4927  ;;  %v4924_v42 = vpop.permute.xlu0 %4923 }
 0xbb5   : > { %v4944_v56 = vsel %vm408_vm10, %v4943_v16, %v4924_v42  ;;  %v6073_v42 = vmov 4  }
 0xbb6   : > { %v4945_v62 = vsel %vm300_vm1, %v4944_v56, %v4928_v33  ;;  %5948 = vset.pattern.permute.xlu1 %v6073_v42  ;;  %5949 = vset.pattern.permute.xlu0 %v6073_v42  ;;  %v10072_v56 = vld [vmem:[#allocation20_spill] sm:$0xff] }
 0xbb8   : > { %v4936_v50 = vpop.permute.xlu1 %4935  ;;  %v4932_v15 = vpop.permute.xlu0 %4931 }
 0xbb9   : > { %v4946_v28 = vsel %vm411_vm11, %v4945_v62, %v4932_v15 }
 0xbba   : > { %v4947_v32 = vsel %vm302_vm2, %v4946_v28, %v4936_v50 }
 0xbbc   : > { %v4940_v13 = vpop.permute.xlu0 %4939  ;;  %v392_v34 = vpop.permute.xlu1 %391 }
 0xbbd   : > { %v4948_v0 = vsel %vm414_vm12, %v4947_v32, %v4940_v13  ;;  %v406_v10 = vsel %vm9567_vm7, %v10050_v12, %v392_v34 }
 0xbbe   : > { %5739 = vmatprep.subr.mxu0 %v4948_v0  ;;  %5757 = vmatpush3.msra.mxu1 %v4948_v0 }
 0xbbf   : > { %5740 = vmatpush3.msra.mxu0 %v4948_v0 }
 0xbc0   : > { %5742 = vmatmul.mubr.msk.f32.vlgmr.msra.gmra.mrb[2].mxu0 %vm9567_vm7, %v440_v8  ;;  %v417_v23 = vpop.permute.xlu0 %416  ;;  %v394_v40 = vpop.permute.xlu1 %393 }
 0xbc1   : > { %v407_v22 = vsel %vm9568_vm0, %v406_v10, %v394_v40  ;;  %v430_v2 = vsel %vm9567_vm7, %v10051_v19, %v417_v23  ;;  %v448_v23 = vld [vmem:[%s9322_s2] sm:$0xff]  ;;  %v6074_v40 = vmov 5   ;;  %v6080_v19 = vmov 6  }
 0xbc4   : > { %v419_v45 = vpop.permute.xlu0 %418  ;;  %v396_v5 = vpop.permute.xlu1 %395 }
 0xbc5   : > { %v409_v57 = vsel %vm408_vm10, %v407_v22, %v396_v5  ;;  %v431_v63 = vsel %vm9568_vm0, %v430_v2, %v419_v45  ;;  %v449_v5 = vld [vmem:[%s9322_s2 + $0x8] sm:$0xff]  ;;  %v6081_v2 = vmov 0.0|0.0  }
 0xbc6   : > { %5785 = vmatprep.subr.bf16.mxu0 %v6081_v2 }
 0xbc8   : > { %v421_v38 = vpop.permute.xlu0 %420  ;;  %v398_v30 = vpop.permute.xlu1 %397 }
 0xbc9   : > { %v410_v18 = vsel %vm300_vm1, %v409_v57, %v398_v30  ;;  %v432_v27 = vsel %vm408_vm10, %v431_v63, %v421_v38  ;;  %v10073_v57 = vmov 0.0  }
 0xbcc   : > { %v423_v36 = vpop.permute.xlu0 %422  ;;  %v400_v55 = vpop.permute.xlu1 %399 }
 0xbcd   : > { %v412_v17 = vsel %vm411_vm11, %v410_v18, %v400_v55  ;;  %v433_v49 = vsel %vm300_vm1, %v432_v27, %v423_v36  ;;  %v10074_v36 = vmov 0  }
 0xbd0   : > { %v425_v41 = vpop.permute.xlu0 %424  ;;  %v402_v3 = vpop.permute.xlu1 %401 }
 0xbd1   : > { %v434_v37 = vsel %vm411_vm11, %v433_v49, %v425_v41  ;;  %v413_v1 = vsel %vm302_vm2, %v412_v17, %v402_v3 }
 0xbd4   : > { %v427_v46 = vpop.permute.xlu0 %426  ;;  %v404_v51 = vpop.permute.xlu1 %403 }
 0xbd5   : > { %v415_v4 = vsel %vm414_vm12, %v413_v1, %v404_v51  ;;  %v435_v6 = vsel %vm302_vm2, %v434_v37, %v427_v46 }
 0xbd6   : > { %v4949_v14 = vadd.s32 1, %v415_v4  ;;  %v5715_v48 = vadd.s32 4294967295, %v415_v4  ;;  %vm5135_vm2 = vcmp.ge.s32.totalorder %v415_v4, 0  ;;  %vm5136_vm13 = vcmp.lt.s32.totalorder %v415_v4, 8 }
 0xbd7   : > { %vm9050_vm4 = vmand %vm5135_vm2, %vm5136_vm13 }
 0xbd8   : > { %vm4950_vm15 = vcmp.lt.s32.totalorder %v4949_v14, 7  ;;  %vm4953_vm8 = vcmp.gt.s32.totalorder %v5715_v48, 0  ;;  %v429_v44 = vpop.permute.xlu0 %428  ;;  %vm5069_vm5 = vcmp.ge.s32.totalorder %v5715_v48, 0  ;;  %vm5070_vm10 = vcmp.lt.s32.totalorder %v5715_v48, 8 }
 0xbd9   : > { %v4951_v20 = vsel %vm4950_vm15, %v4949_v14, 7  ;;  %v4954_v24 = vsel %vm4953_vm8, %v5715_v48, 0  ;;  %v436_v26 = vsel %vm414_vm12, %v435_v6, %v429_v44  ;;  %vm5071_vm11 = vmand %vm5069_vm5, %vm5070_vm10  ;;  %vm5174_vm3 = vcmp.ge.s32.totalorder %v4949_v14, 0 }
 0xbda   : > { %v4955_v59 = vsub.s32 %v4951_v20, %v4954_v24  ;;  %v4957_v47 = vadd.s32 1, %v436_v26  ;;  %v5716_v31 = vadd.s32 4294967295, %v436_v26  ;;  %vm9571_vm14 = vcmp.ge.s32.totalorder %v436_v26, 0 }
 0xbdb   : > { %vm9570_vm9 = vcmp.lt.s32.totalorder %v436_v26, 8  ;;  %vm5096_vm12 = vmand %vm5071_vm11, %vm9571_vm14 }
 0xbdc   : > { %vm4958_vm1 = vcmp.lt.s32.totalorder %v4957_v47, 7  ;;  %vm4961_vm6 = vcmp.gt.s32.totalorder %v5716_v31, 0  ;;  %v4956_v7 = vadd.s32 1, %v4955_v59  ;;  %vm5073_vm15 = vcmp.ge.s32.totalorder %v5716_v31, 0  ;;  %vm9056_vm8 = vmand %vm5096_vm12, %vm9570_vm9 }
 0xbdd   : > { %v4959_v39 = vsel %vm4958_vm1, %v4957_v47, 7  ;;  %v4962_v35 = vsel %vm4961_vm6, %v5716_v31, 0  ;;  %v10055_v52 = vsel %vm9056_vm8, 4294967295, %v10054_v52  ;;  %vm5115_vm1 = vcmp.ge.s32.totalorder %v4957_v47, 0  ;;  %vm5074_vm6 = vmand %vm5071_vm11, %vm5073_vm15 }
 0xbde   : > { %v4963_v58 = vsub.s32 %v4959_v39, %v4962_v35  ;;  %vm5075_vm7 = vcmp.lt.s32.totalorder %v5716_v31, 8  ;;  %vm5117_vm2 = vcmp.lt.s32.totalorder %v4957_v47, 8  ;;  %vm5116_vm0 = vmand %vm5071_vm11, %vm5115_vm1  ;;  %vm10067_vm8 = vcmp.lt.s32.totalorder %v436_v26, 8 }
 0xbdf   : > { %vm9061_vm13 = vmand %vm5074_vm6, %vm5075_vm7  ;;  %vm5175_vm6 = vcmp.lt.s32.totalorder %v4949_v14, 8 }
 0xbe0   : > { %v4964_v54 = vadd.s32 1, %v4963_v58  ;;  %v10057_v61 = vsel %vm9061_vm13, 4294967295, %v10056_v61  ;;  %vm9067_vm5 = vmand %vm5116_vm0, %vm5117_vm2 }
 0xbe1   : > { %v10059_v29 = vsel %vm9067_vm5, 4294967295, %v10058_v29  ;;  %vm5138_vm10 = vmand %vm9050_vm4, %vm5073_vm15 }
 0xbe2   : > { %v4965_v25 = vmul.u32 %v4964_v54, %v4956_v7  ;;  %vm9074_vm12 = vmand %vm5138_vm10, %vm5075_vm7  ;;  %vm10066_vm10 = vcmp.ge.s32.totalorder %v436_v26, 0 }
 0xbe3   : > { %v10061_v21 = vsel %vm9074_vm12, 4294967295, %v10060_v21  ;;  %vm5156_vm9 = vmand %vm9050_vm4, %vm5115_vm1 }
 0xbe4   : > { %vm9082_vm11 = vmand %vm5156_vm9, %vm5117_vm2  ;;  %v4966_v33 = vcvt.s32.f32 %v4965_v25 }
 0xbe5   : > { %vm5176_vm0 = vmand %vm5174_vm3, %vm5175_vm6  ;;  %vm5055_vm3 = vcmask 1048064   ;;  %v5158_v44 = vsel %vm9082_vm11, 1, %v10074_v36 }
 0xbe6   : > { %vm5177_vm14 = vmand %vm5176_vm0, %vm5073_vm15  ;;  %5976 = vrsqrt.f32 %v4966_v33  ;;  %vm10076_vm15 = vnez %v10055_v52  ;;  %v5162_v35 = vrot.slane %v5158_v44, %v10072_v56 }
 0xbe7   : > { %vm9087_vm5 = vmand %vm5177_vm14, %vm5075_vm7  ;;  %vm6082_vm7 = vmmov 0   ;;  %vm10075_vm14 = vnez %v10057_v61  ;;  %v5099_v17 = vsel %vm10076_vm15, 1, %v10074_v36 }
 0xbe8   : > { %vm5195_vm12 = vmand %vm5176_vm0, %vm10066_vm10  ;;  %5748 = vmatprep.mubr.msk.f32.mxu0 %vm6082_vm7, %v10073_v57  ;;  %5758 = vmatprep.mubr.msk.f32.mxu1 %vm6082_vm7, %v10073_v57  ;;  %v5077_v55 = vsel %vm10075_vm14, 1, %v10074_v36  ;;  %v5103_v1 = vrot.slane %v5099_v17, %v10072_v56  ;;  %v5179_v47 = vsel %vm9087_vm5, 1, %v10074_v36  ;;  %vm9210_vm11 = vcmp.eq.s32.totalorder %v5162_v35, 1 }
 0xbe9   : > { %vm9093_vm13 = vmand %vm5195_vm12, %vm10067_vm8  ;;  %v5081_v41 = vrot.slane %v5077_v55, %v10072_v56  ;;  %vm10077_vm8 = vnez %v10059_v29  ;;  %v5183_v61 = vrot.slane %v5179_v47, %v10072_v56 }
 0xbea   : > { %vm5213_vm4 = vmand %vm5176_vm0, %vm5115_vm1  ;;  %v5119_v37 = vsel %vm10077_vm8, 1, %v10074_v36  ;;  %vm10078_vm1 = vnez %v10061_v21  ;;  %vm9178_vm12 = vcmp.eq.s32.totalorder %v5103_v1, 1  ;;  %v5197_v54 = vsel %vm9093_vm13, 1, %v10074_v36 }
 0xbeb   : > { %vm9099_vm9 = vmand %vm5213_vm4, %vm5117_vm2  ;;  %v5140_v46 = vsel %vm10078_vm1, 1, %v10074_v36  ;;  %vm9168_vm2 = vcmp.eq.s32.totalorder %v5081_v41, 1  ;;  %v5123_v6 = vrot.slane %v5119_v37, %v10072_v56  ;;  %v5201_v33 = vrot.slane %v5197_v54, %v10072_v56 }
 0xbec   : > { %v5144_v24 = vrot.slane %v5140_v46, %v10072_v56  ;;  %vm9223_vm13 = vcmp.eq.s32.totalorder %v5183_v61, 1  ;;  %vm10095_vm4 = vcmask 523264  }
 0xbed   : > { %vm9189_vm6 = vcmp.eq.s32.totalorder %v5123_v6, 1  ;;  %vm9231_vm0 = vcmp.eq.s32.totalorder %v5201_v33, 1  ;;  %vm10097_vm14 = vmmov %vm10095_vm4 }
 0xbee   : > { %vm9201_vm5 = vcmp.eq.s32.totalorder %v5144_v24, 1  ;;  %vm10098_vm15 = vmmov %vm10095_vm4 }
 0xbf0   : > { %v5977_v16 = vpop.eup %5976 }
 0xbf1   : > { %v9104_v50 = vrot.slane %v5977_v16, %v10072_v56 }
 0xc93   : > { %v5743_v15 = vpop.f32.mrb[2].mxu0 }
 0xc94   : > { %v9107_v62 = vmul.f32 %v5743_v15, %v9104_v50  ;;  %v5040_v28 = vpop.f32.mrb[3].mxu0 }
 0xc95   : > { %v9110_v13 = vmul.f32 %v9104_v50, %v5040_v28  ;;  %v5215_v28 = vsel %vm9099_vm9, 1, %v10074_v36  ;;  %vm10096_vm9 = vmmov %vm10095_vm4 }
 0xc96   : > { %5059 = vrot.lane.b32.xlu0 %v9107_v62, %s9632_s15 }
 0xc97   : > { %5056 = vrot.lane.b32.xlu1 %v9110_v13, %s9632_s15 }
 0xd08   : > { %v5060_v32 = vpop.permute.xlu0 %5059 }
 0xd09   : > { %v5061_v34 = vsel %vm5055_vm3, %v5060_v32, %v9107_v62  ;;  %v5057_v0 = vpop.permute.xlu1 %5056 }
 0xd0a   : > { %v5058_v8 = vsel %vm5055_vm3, %v5057_v0, %v9110_v13  ;;  %5064 = vrot.lane.b32.xlu0 %v5061_v34, %s9632_s15 }
 0xd0b   : > { %5062 = vrot.lane.b32.xlu1 %v5058_v8, %s9632_s15 }
 0xd0f   : > { %5235 = vperm.xlu1 %5948, %v448_v23  }
 0xd13   : > { %5951 = vset.pattern.permute.xlu1 %v6074_v40 }
 0xd7c   : > { %v5065_v12 = vpop.permute.xlu0 %5064 }
 0xd7d   : > { %v5067_v10 = vsel %vm5055_vm3, %v5065_v12, %v9107_v62  ;;  %v5063_v22 = vpop.permute.xlu1 %5062  ;;  %v5219_v12 = vrot.slane %v5215_v28, %v10072_v56 }
 0xd7e   : > { %v5066_v45 = vsel %vm5055_vm3, %v5063_v22, %v9110_v13  ;;  %5087 = vrot.lane.b32.xlu0 %v5067_v10, %s6075_s26 }
 0xd7f   : > { %5085 = vrot.lane.b32.xlu1 %v5066_v45, %s6075_s26  ;;  %vm9242_vm10 = vcmp.eq.s32.totalorder %v5219_v12, 1 }
 0xd82   : > { %5107 = vrot.lane.b32.xlu0 %v5067_v10, %s9626_s21 }
 0xd83   : > { %5105 = vrot.lane.b32.xlu1 %v5066_v45, %s9626_s21 }
 0xd86   : > { %5127 = vrot.lane.b32.xlu0 %v5067_v10, %s6076_s20 }
 0xd87   : > { %5125 = vrot.lane.b32.xlu1 %v5066_v45, %s6076_s20 }
 0xd8a   : > { %5148 = vrot.lane.b32.xlu0 %v5067_v10, %s6077_s19 }
 0xd8b   : > { %5146 = vrot.lane.b32.xlu1 %v5066_v45, %s6077_s19 }
 0xd8e   : > { %5166 = vrot.lane.b32.xlu0 %v5067_v10, %s9654_s25  ;;  %v9152_v63 = vpop.permute.xlu1 %5235 }
 0xd8f   : > { %5164 = vrot.lane.b32.xlu1 %v5066_v45, %s9654_s25 }
 0xd92   : > { %5187 = vrot.lane.b32.xlu0 %v5067_v10, %s6078_s16 }
 0xd93   : > { %5185 = vrot.lane.b32.xlu1 %v5066_v45, %s6078_s16 }
 0xd96   : > { %5205 = vrot.lane.b32.xlu0 %v5067_v10, %s6023_s29 }
 0xd97   : > { %5203 = vrot.lane.b32.xlu1 %v5066_v45, %s6023_s29 }
 0xd9a   : > { %5240 = vperm.xlu0 %5949, %v449_v5  }
 0xd9b   : > { %5221 = vrot.lane.b32.xlu1 %v5066_v45, %s6079_s8 }
 0xd9e   : > { %5950 = vset.pattern.permute.xlu0 %v6074_v40 }
 0xd9f   : > { %5223 = vrot.lane.b32.xlu1 %v5067_v10, %s6079_s8  ;;  %5277 = vperm.xlu0 %5950, %v448_v23  }
 0xda3   : > { %5281 = vperm.xlu1 %5951, %v449_v5   ;;  %5953 = vset.pattern.permute.xlu0 %v6080_v19 }
 0xda4   : > { %5291 = vperm.xlu0 %5953, %v449_v5  }
 0xda7   : > { %5952 = vset.pattern.permute.xlu1 %v6080_v19 }
 0xda8   : > { %5287 = vperm.xlu1 %5952, %v448_v23  }
 0xdf0   : > { %v5088_v38 = vpop.permute.xlu0 %5087 }
 0xdf1   : > { %v5086_v30 = vpop.permute.xlu1 %5085  ;;  %v5092_v25 = vsel %vm9168_vm2, %v5088_v38, 0.0 }
 0xdf2   : > { %v5091_v48 = vsel %vm9168_vm2, %v5086_v30, 0.0  ;;  %v5094_v42 = vadd.f32 %v5092_v25, %v9107_v62 }
 0xdf3   : > { %v5093_v31 = vadd.f32 %v5091_v48, %v9110_v13 }
 0xdf4   : > { %v5108_v18 = vpop.permute.xlu0 %5107 }
 0xdf5   : > { %v5106_v27 = vpop.permute.xlu1 %5105  ;;  %v5112_v21 = vsel %vm9178_vm12, %v5108_v18, 0.0 }
 0xdf6   : > { %v5111_v26 = vsel %vm9178_vm12, %v5106_v27, 0.0  ;;  %v5114_v0 = vadd.f32 %v5112_v21, %v5094_v42 }
 0xdf7   : > { %v5113_v11 = vadd.f32 %v5111_v26, %v5093_v31 }
 0xdf8   : > { %v5128_v49 = vpop.permute.xlu0 %5127 }
 0xdf9   : > { %v5126_v3 = vpop.permute.xlu1 %5125  ;;  %v5132_v13 = vsel %vm9189_vm6, %v5128_v49, 0.0 }
 0xdfa   : > { %v5131_v58 = vsel %vm9189_vm6, %v5126_v3, 0.0  ;;  %v5134_v10 = vadd.f32 %v5132_v13, %v5114_v0 }
 0xdfb   : > { %v5133_v43 = vadd.f32 %v5131_v58, %v5113_v11 }
 0xdfc   : > { %v5149_v51 = vpop.permute.xlu0 %5148 }
 0xdfd   : > { %v5147_v14 = vpop.permute.xlu1 %5146  ;;  %v5153_v8 = vsel %vm9201_vm5, %v5149_v51, 0.0 }
 0xdfe   : > { %v5152_v29 = vsel %vm9201_vm5, %v5147_v14, 0.0  ;;  %v5155_v19 = vadd.f32 %v5153_v8, %v5134_v10 }
 0xdff   : > { %v5154_v32 = vadd.f32 %v5152_v29, %v5133_v43 }
 0xe00   : > { %v5167_v59 = vpop.permute.xlu0 %5166 }
 0xe01   : > { %v5165_v7 = vpop.permute.xlu1 %5164  ;;  %v5171_v45 = vsel %vm9210_vm11, %v5167_v59, 0.0 }
 0xe02   : > { %v5170_v16 = vsel %vm9210_vm11, %v5165_v7, 0.0  ;;  %v5173_v56 = vadd.f32 %v5171_v45, %v5155_v19 }
 0xe03   : > { %v5172_v23 = vadd.f32 %v5170_v16, %v5154_v32 }
 0xe04   : > { %v5188_v15 = vpop.permute.xlu0 %5187 }
 0xe05   : > { %v5186_v60 = vpop.permute.xlu1 %5185  ;;  %v5192_v38 = vsel %vm9223_vm13, %v5188_v15, 0.0 }
 0xe06   : > { %v5191_v62 = vsel %vm9223_vm13, %v5186_v60, 0.0  ;;  %v5194_v49 = vadd.f32 %v5192_v38, %v5173_v56 }
 0xe07   : > { %v5193_v5 = vadd.f32 %v5191_v62, %v5172_v23 }
 0xe08   : > { %v5206_v2 = vpop.permute.xlu0 %5205 }
 0xe09   : > { %v5204_v9 = vpop.permute.xlu1 %5203  ;;  %v5210_v55 = vsel %vm9231_vm0, %v5206_v2, 0.0 }
 0xe0a   : > { %v5209_v22 = vsel %vm9231_vm0, %v5204_v9, 0.0  ;;  %v5212_v3 = vadd.f32 %v5210_v55, %v5194_v49 }
 0xe0b   : > { %v5211_v30 = vadd.f32 %v5209_v22, %v5193_v5 }
 0xe0d   : > { %v5222_v27 = vpop.permute.xlu1 %5221 }
 0xe0e   : > { %v5227_v36 = vsel %vm9242_vm10, %v5222_v27, 0.0 }
 0xe0f   : > { %v5229_v17 = vadd.f32 %v5227_v36, %v5211_v30 }
 0xe11   : > { %v5224_v41 = vpop.permute.xlu1 %5223  ;;  %v5231_v37 = vmul.f32 %v5229_v17, %v9104_v50 }
 0xe12   : > { %v5228_v1 = vsel %vm9242_vm10, %v5224_v41, 0.0 }
 0xe13   : > { %v5230_v46 = vadd.f32 %v5228_v1, %v5212_v3  ;;  %v5243_v51 = vadd.f32 %v9152_v63, %v5231_v37  ;;  %v441_v1 = vld [vmem:[%s9321_s1 + $0x20] sm:$0xff] }
 0xe15   : > { %v5232_v6 = vmul.f32 %v5230_v46, %v9104_v50  ;;  %v5255_v48 = vmul.f32 %v5243_v51, %v5243_v51  ;;  %v5245_v24 = vsel %vm10095_vm4, %v5243_v51, 0.0  ;;  %vm10099_vm4 = vcmask 130048  }
 0xe17   : > { %v5257_v31 = vsel %vm10097_vm14, %v5255_v48, 0.0 }
 0xe19   : > { %v5241_v14 = vpop.permute.xlu0 %5240 }
 0xe1a   : > { %v5244_v44 = vadd.f32 %v5241_v14, %v5232_v6  ;;  %v6083_v14 = vmov 7  }
 0xe1b   : > { %5954 = vset.pattern.permute.xlu1 %v6083_v14 }
 0xe1c   : > { %v5246_v26 = vsel %vm10096_vm9, %v5244_v44, 0.0  ;;  %v5256_v59 = vmul.f32 %v5244_v44, %v5244_v44 }
 0xe1d   : > { %v5247_v47 = vadd.f32 %v5246_v26, %v5245_v24  ;;  %v6084_v24 = vmov 9  }
 0xe1e   : > { %v5258_v35 = vsel %vm10098_vm15, %v5256_v59, 0.0  ;;  %v5278_v62 = vpop.permute.xlu0 %5277  ;;  %5956 = vset.pattern.permute.xlu0 %v6084_v24 }
 0xe1f   : > { %v5248_v7 = vrot.slane %v5247_v47, 4  ;;  %v5259_v58 = vadd.f32 %v5258_v35, %v5257_v31  ;;  %v442_v31 = vld [vmem:[%s9321_s1 + $0x28] sm:$0xff]  ;;  %v6086_v35 = vmov 10  }
 0xe21   : > { %v5249_v54 = vadd.f32 %v5248_v7, %v5247_v47  ;;  %v5260_v25 = vrot.slane %v5259_v58, 4  ;;  %v6085_v47 = vmov 8  }
 0xe22   : > { %v5282_v8 = vpop.permute.xlu1 %5281 }
 0xe23   : > { %v5250_v63 = vrot.slane %v5249_v54, 2  ;;  %v5261_v11 = vadd.f32 %v5260_v25, %v5259_v58  ;;  %v5292_v45 = vpop.permute.xlu0 %5291 }
 0xe25   : > { %v5251_v61 = vadd.f32 %v5250_v63, %v5249_v54  ;;  %v5262_v29 = vrot.slane %v5261_v11, 2 }
 0xe27   : > { %v5263_v21 = vadd.f32 %v5262_v29, %v5261_v11  ;;  %v5252_v43 = vrot.slane %v5251_v61, 1  ;;  %v5288_v5 = vpop.permute.xlu1 %5287 }
 0xe29   : > { %v5264_v60 = vrot.slane %v5263_v21, 1  ;;  %v5253_v33 = vadd.f32 %v5252_v43, %v5251_v61 }
 0xe2b   : > { %v5265_v42 = vadd.f32 %v5264_v60, %v5263_v21  ;;  %v5254_v16 = vmul.f32 0.0625, %v5253_v33 }
 0xe2d   : > { %v5266_v15 = vmul.f32 0.0625, %v5265_v42  ;;  %v5267_v28 = vmul.f32 %v5254_v16, %v5254_v16  ;;  %v5270_v23 = vsub.f32 %v5243_v51, %v5254_v16  ;;  %v5271_v9 = vsub.f32 %v5244_v44, %v5254_v16 }
 0xe2f   : > { %v5268_v13 = vsub.f32 %v5266_v15, %v5267_v28 }
 0xe31   : > { %v5269_v32 = vmax.f32 %v5268_v13, 0.0 }
 0xe33   : > { %v5272_v0 = vadd.f32 1e-05, %v5269_v32 }
 0xe35   : > { %5978 = vrsqrt.f32 %v5272_v0 }
 0xe3f   : > { %v5979_v12 = vpop.eup %5978 }
 0xe40   : > { %v5274_v10 = vmul.f32 %v5979_v12, %v5270_v23  ;;  %v5275_v22 = vmul.f32 %v5979_v12, %v5271_v9 }
 0xe42   : > { %v5284_v19 = vmul.f32 %v5278_v62, %v5274_v10  ;;  %v5285_v2 = vmul.f32 %v5282_v8, %v5275_v22 }
 0xe44   : > { %v5295_v38 = vadd.f32 %v5292_v45, %v5285_v2  ;;  %v5294_v30 = vadd.f32 %v5288_v5, %v5284_v19 }
 0xe46   : > { %v5300_v27 = vmul.f32 1.442695, %v5295_v38  ;;  %v5298_v56 = vmul.f32 1.442695, %v5294_v30  ;;  %vm5297_vm8 = vcmp.gt.f32.partialorder %v5295_v38, 0.0  ;;  %vm5296_vm1 = vcmp.gt.f32.partialorder %v5294_v30, 0.0 }
 0xe48   : > { %5980 = vpow2.f32 %v5300_v27 }
 0xe49   : > { %5982 = vpow2.f32 %v5298_v56 }
 0xe52   : > { %v5981_v36 = vpop.eup %5980 }
 0xe53   : > { %v5983_v55 = vpop.eup %5982  ;;  %v5720_v17 = vadd.f32 -1.0, %v5981_v36 }
 0xe54   : > { %v5719_v49 = vadd.f32 -1.0, %v5983_v55 }
 0xe55   : > { %v5305_v41 = vsel %vm5297_vm8, %v5295_v38, %v5720_v17 }
 0xe56   : > { %v5304_v3 = vsel %vm5296_vm1, %v5294_v30, %v5719_v49 }
 0xe57   : > { %v5786_v37 = vpack.c.bf16 %v5305_v41, %v5304_v3 }
 0xe59   : > { %5787 = vmatpush3.bf16.msra.mxu0 %v5786_v37 }
 0xe5a   : > { %5751 = vmatprep.subr.mxu0 %v10073_v57 }
 0xe5c   : > { %5749 = vmatmul.mubr.msk.f32.vlgmr.msra.gmra.mrb[4].mxu0 %vm10099_vm4, %v441_v1 }
 0xe5d   : > { %5753 = vmatprep.mubr.msk.f32.mxu0 %vm6082_vm7, %v10073_v57  ;;  %v5992_v57 = vld [vmem:[%s9322_s2] sm:$0xff]  ;;  %vm10101_vm7 = vmmov %vm10096_vm9 }
 0xf2f   : > { %v5375_v46 = vpop.f32.mrb[4].mxu0 }
 0xf30   : > { %v5379_v51 = vmul.f32 %v5375_v46, %v9104_v50  ;;  %v5750_v6 = vpop.f32.mrb[5].mxu0 }
 0xf32   : > { %5380 = vrot.lane.b32.xlu1 %v5379_v51, %s9632_s15 }
 0xfa4   : > { %v5381_v48 = vpop.permute.xlu1 %5380 }
 0xfa5   : > { %v5382_v44 = vsel %vm5055_vm3, %v5381_v48, %v5379_v51 }
 0xfa6   : > { %5383 = vrot.lane.b32.xlu1 %v5382_v44, %s9632_s15 }
0x1018   : > { %v5384_v26 = vpop.permute.xlu1 %5383 }
0x1019   : > { %v5385_v59 = vsel %vm5055_vm3, %v5384_v26, %v5379_v51  ;;  %vm10100_vm3 = vcmask 64512   ;;  %v443_v26 = vld [vmem:[%s9321_s1 + $0x30] sm:$0xff] }
0x101a   : > { %5392 = vrot.lane.b32.xlu1 %v5385_v59, %s9626_s21  ;;  %5387 = vrot.lane.b32.xlu0 %v5385_v59, %s6075_s26 }
0x101b   : > { %5759 = vmatmul.mubr.msk.f32.vlgmr.msra.gmra.mrb[2].mxu1 %vm10100_vm3, %v442_v31 }
0x101e   : > { %5402 = vrot.lane.b32.xlu1 %v5385_v59, %s6077_s19  ;;  %5397 = vrot.lane.b32.xlu0 %v5385_v59, %s6076_s20 }
0x1022   : > { %5412 = vrot.lane.b32.xlu1 %v5385_v59, %s6078_s16  ;;  %5407 = vrot.lane.b32.xlu0 %v5385_v59, %s9654_s25 }
0x1026   : > { %5429 = vperm.xlu1 %5954, %v5992_v57   ;;  %5417 = vrot.lane.b32.xlu0 %v5385_v59, %s6023_s29 }
0x102a   : > { %5422 = vrot.lane.b32.xlu0 %v5385_v59, %s6079_s8  ;;  %5955 = vset.pattern.permute.xlu1 %v6085_v47 }
0x102b   : > { %5458 = vperm.xlu1 %5955, %v5992_v57  }
0x102e   : > { %5463 = vperm.xlu0 %5956, %v5992_v57  }
0x102f   : > { %5957 = vset.pattern.permute.xlu1 %v6086_v35 }
0x1030   : > { %5619 = vperm.xlu1 %5957, %v5992_v57  }
0x1032   : > { %5958 = vset.pattern.permute.xlu0 %v6086_v35 }
0x108c   : > { %v5393_v7 = vpop.permute.xlu1 %5392  ;;  %v5388_v58 = vpop.permute.xlu0 %5387 }
0x108d   : > { %v5390_v54 = vsel %vm9168_vm2, %v5388_v58, 0.0  ;;  %v5395_v63 = vsel %vm9178_vm12, %v5393_v7, 0.0  ;;  %vm10102_vm2 = vmmov %vm10101_vm7 }
0x108e   : > { %v5391_v25 = vadd.f32 %v5390_v54, %v5379_v51 }
0x1090   : > { %v5403_v11 = vpop.permute.xlu1 %5402  ;;  %v5396_v61 = vadd.f32 %v5395_v63, %v5391_v25  ;;  %v5398_v29 = vpop.permute.xlu0 %5397 }
0x1091   : > { %v5400_v21 = vsel %vm9189_vm6, %v5398_v29, 0.0  ;;  %v5405_v60 = vsel %vm9201_vm5, %v5403_v11, 0.0  ;;  %vm10103_vm6 = vmmov %vm10100_vm3 }
0x1092   : > { %v5401_v43 = vadd.f32 %v5400_v21, %v5396_v61  ;;  %vm10104_vm5 = vmmov %vm10102_vm2 }
0x1094   : > { %v5406_v33 = vadd.f32 %v5405_v60, %v5401_v43  ;;  %v5408_v42 = vpop.permute.xlu0 %5407  ;;  %v5413_v16 = vpop.permute.xlu1 %5412 }
0x1095   : > { %v5410_v4 = vsel %vm9210_vm11, %v5408_v42, 0.0  ;;  %v5415_v20 = vsel %vm9223_vm13, %v5413_v16, 0.0  ;;  %vm10105_vm11 = vmmov %vm10102_vm2 }
0x1096   : > { %v5411_v15 = vadd.f32 %v5410_v4, %v5406_v33 }
0x1098   : > { %v5418_v28 = vpop.permute.xlu0 %5417  ;;  %v5416_v13 = vadd.f32 %v5415_v20, %v5411_v15 }
0x1099   : > { %v5420_v39 = vsel %vm9231_vm0, %v5418_v28, 0.0  ;;  %vm10107_vm0 = vmmov %vm10102_vm2 }
0x109a   : > { %v5421_v0 = vadd.f32 %v5420_v39, %v5416_v13 }
0x109c   : > { %v5423_v32 = vpop.permute.xlu0 %5422 }
0x109d   : > { %v5425_v52 = vsel %vm9242_vm10, %v5423_v32, 0.0 }
0x109e   : > { %v5426_v62 = vadd.f32 %v5425_v52, %v5421_v0 }
0x10a0   : > { %v5427_v8 = vmul.f32 %v5426_v62, %v9104_v50 }
0x10a5   : > { %v5430_v53 = vpop.permute.xlu1 %5429 }
0x10a6   : > { %v5432_v23 = vadd.f32 %v5430_v53, %v5427_v8 }
0x10a8   : > { %v5433_v9 = vsel %vm10101_vm7, %v5432_v23, 0.0  ;;  %v5441_v12 = vmul.f32 %v5432_v23, %v5432_v23 }
0x10a9   : > { %v5434_v10 = vrot.slane %v5433_v9, 4 }
0x10aa   : > { %v5442_v34 = vsel %vm10102_vm2, %v5441_v12, 0.0  ;;  %v5459_v1 = vpop.permute.xlu1 %5458 }
0x10ab   : > { %v5435_v22 = vadd.f32 %v5434_v10, %v5433_v9  ;;  %v5443_v45 = vrot.slane %v5442_v34, 4 }
0x10ad   : > { %v5436_v40 = vrot.slane %v5435_v22, 2  ;;  %v5444_v5 = vadd.f32 %v5443_v45, %v5442_v34  ;;  %v5464_v51 = vpop.permute.xlu0 %5463 }
0x10af   : > { %v5437_v19 = vadd.f32 %v5436_v40, %v5435_v22  ;;  %v5445_v2 = vrot.slane %v5444_v5, 2  ;;  %v5620_v35 = vpop.permute.xlu1 %5619 }
0x10b1   : > { %v5446_v18 = vadd.f32 %v5445_v2, %v5444_v5  ;;  %v5438_v38 = vrot.slane %v5437_v19, 1 }
0x10b3   : > { %v5447_v30 = vrot.slane %v5446_v18, 1  ;;  %v5439_v27 = vadd.f32 %v5438_v38, %v5437_v19 }
0x10b5   : > { %v5448_v56 = vadd.f32 %v5447_v30, %v5446_v18  ;;  %v5440_v50 = vmul.f32 0.125, %v5439_v27 }
0x10b7   : > { %v5449_v36 = vmul.f32 0.125, %v5448_v56  ;;  %v5450_v55 = vmul.f32 %v5440_v50, %v5440_v50  ;;  %v5453_v3 = vsub.f32 %v5432_v23, %v5440_v50 }
0x10b9   : > { %v5451_v17 = vsub.f32 %v5449_v36, %v5450_v55 }
0x10bb   : > { %v5452_v49 = vmax.f32 %v5451_v17, 0.0 }
0x10bd   : > { %v5454_v41 = vadd.f32 1e-05, %v5452_v49 }
0x10bf   : > { %5984 = vrsqrt.f32 %v5454_v41 }
0x10c9   : > { %v5985_v37 = vpop.eup %5984 }
0x10ca   : > { %v5456_v46 = vmul.f32 %v5985_v37, %v5453_v3 }
0x10cc   : > { %v5461_v6 = vmul.f32 %v5459_v1, %v5456_v46 }
0x10ce   : > { %v5466_v14 = vadd.f32 %v5464_v51, %v5461_v6 }
0x10d0   : > { %v5468_v48 = vmul.f32 1.442695, %v5466_v14  ;;  %vm5467_vm12 = vcmp.gt.f32.partialorder %v5466_v14, 0.0 }
0x10d2   : > { %5986 = vpow2.f32 %v5468_v48 }
0x10dc   : > { %v5987_v44 = vpop.eup %5986 }
0x10dd   : > { %v5722_v24 = vadd.f32 -1.0, %v5987_v44 }
0x10df   : > { %v5471_v59 = vsel %vm5467_vm12, %v5466_v14, %v5722_v24 }
0x10e0   : > { %5752 = vmatpush3.msra.mxu0 %v5471_v59 }
0x10e1   : > { %5754 = vmatmul.mubr.msk.f32.vlgmr.msra.gmra.mrb[6].mxu0 %vm10103_vm6, %v443_v26 }
0x10ee   : > { %v5614_v57 = vpop.f32.mrb[2].mxu1 }
0x10ef   : > { %v5760_v47 = vpop.f32.mrb[3].mxu1 }
0x11b4   : > { %v5541_v31 = vpop.f32.mrb[6].mxu0 }
0x11b5   : > { %v5615_v7 = vadd.f32 %v5614_v57, %v5541_v31  ;;  %v5755_v58 = vpop.f32.mrb[7].mxu0 }
0x11b7   : > { %v5622_v54 = vadd.f32 %v5620_v35, %v5615_v7 }
0x11b9   : > { %v5623_v25 = vsel %vm10104_vm5, %v5622_v54, 0.0  ;;  %v5627_v63 = vmul.f32 %v5622_v54, %v5622_v54 }
0x11ba   : > { %5624 = vadd.xlane.f32.xlu1 %v5623_v25 }
0x11bb   : > { %v5628_v11 = vsel %vm10105_vm11, %v5627_v63, 0.0 }
0x11bc   : > { %5629 = vadd.xlane.f32.xlu0 %v5628_v11 }
0x1247   : > { %v5625_v61 = vpop.xlane.xlu1 %5624 }
0x1248   : > { %v5626_v29 = vmul.f32 0.015625, %v5625_v61 }
0x1249   : > { %v5630_v21 = vpop.xlane.xlu0 %5629 }
0x124a   : > { %v5632_v43 = vmul.f32 %v5626_v29, %v5626_v29  ;;  %v5631_v60 = vmul.f32 0.015625, %v5630_v21  ;;  %v5635_v16 = vsub.f32 %v5622_v54, %v5626_v29 }
0x124c   : > { %v5633_v33 = vsub.f32 %v5631_v60, %v5632_v43 }
0x124e   : > { %v5634_v42 = vmax.f32 %v5633_v33, 0.0 }
0x1250   : > { %v5636_v4 = vadd.f32 1e-05, %v5634_v42 }
0x1252   : > { %5988 = vrsqrt.f32 %v5636_v4 }
0x125c   : > { %v5989_v15 = vpop.eup %5988 }
0x125d   : > { %v5638_v28 = vmul.f32 %v5989_v15, %v5635_v16 }
0x125f   : > { %v5640_v20 = vmul.f32 1.442695, %v5638_v28  ;;  %vm5639_vm13 = vcmp.gt.f32.partialorder %v5638_v28, 0.0 }
0x1261   : > { %5990 = vpow2.f32 %v5640_v20 }
0x126b   : > { %v5991_v13 = vpop.eup %5990 }
0x126c   : > { %v5725_v39 = vadd.f32 -1.0, %v5991_v13 }
0x126e   : > { %v5643_v32 = vsel %vm5639_vm13, %v5638_v28, %v5725_v39 }
0x126f   : > { %5644 = vst.msk [vmem:[%s168_s7] sm:$0xff] %vm10107_vm0, %v5643_v32 }
0x1270 PF: > { %s13_s12 = sadd.s32 1, %s5999_s12  }
0x1271   : > { %p10_p4 = scmp.ge.s32.totalorder %s13_s12, 4  }
0x1273   :  { %12 = sbr.rel (!%p10_p4) target bundleno = 1 (0x1), region = 62 }

</bundles_post_ra>
